<compile_context>
chip_gen: v7x
topology: tpu7x:2x2x1
jax: 0.10.0
libtpu: 0.0.40
codegen_flags: <defaults>
</compile_context>

<pallas_src>
import functools

import jax
import jax.numpy as jnp
from jax.experimental import pallas as pl
from jax.experimental.pallas import tpu as pltpu


def _round_up(x, m):
    return (x + m - 1) // m * m


# ----------------------------------------------------------------------------
# Kernel 1: GEMM (bf16 operands, f32 accumulation) + bias (+ fused LeakyReLU)
#   grid = (M tiles,); full (unpadded) K block; single lane-dense N tile.
# ----------------------------------------------------------------------------
def _gemm_bias_kernel(x_ref, w_ref, b_ref, o_ref, *, leaky):
    r = jnp.dot(x_ref[...], w_ref[...],
                preferred_element_type=jnp.float32) + b_ref[...]
    if leaky:
        r = jnp.where(r >= 0, r, 0.2 * r)
    o_ref[...] = r.astype(o_ref.dtype)


def conv_gemm_bias_leaky(patches, w_mat, bias, *, leaky, tm=512):
    M, K = patches.shape
    _, N = w_mat.shape
    Np = _round_up(N, 128)                       # lane-dense output tile
    tm = min(tm, _round_up(M, 8))
    Mp = _round_up(M, tm)

    x = jnp.pad(patches, ((0, Mp - M), (0, 0))).astype(jnp.bfloat16)
    w = jnp.pad(w_mat, ((0, 0), (0, Np - N))).astype(jnp.bfloat16)
    b = jnp.pad(bias, (0, Np - N)).astype(jnp.float32).reshape(1, Np)

    out = pl.pallas_call(
        functools.partial(_gemm_bias_kernel, leaky=leaky),
        out_shape=jax.ShapeDtypeStruct((Mp, Np), jnp.float32),
        grid_spec=pltpu.PrefetchScalarGridSpec(
            num_scalar_prefetch=0,
            grid=(Mp // tm,),
            in_specs=[pl.BlockSpec((tm, K), lambda i: (i, 0)),   # full-K block
                      pl.BlockSpec((K, Np), lambda i: (0, 0)),   # weights resident
                      pl.BlockSpec((1, Np), lambda i: (0, 0))],
            out_specs=pl.BlockSpec((tm, Np), lambda i: (i, 0)),
        ),
        compiler_params=pltpu.CompilerParams(
            dimension_semantics=("parallel",)),
    )(x, w, b)
    return out[:M, :N]


# ----------------------------------------------------------------------------
# Kernel 2: fully fused ConvBlock
#   conv GEMM + BatchNorm batch stats + normalize + LeakyReLU(0.2),
#   one pallas_call, one grid step -- the conv output never leaves VMEM.
# ----------------------------------------------------------------------------
def _conv_block_fused_kernel(x_ref, w_ref, g_ref, b_ref, o_ref, *, eps):
    out = jnp.dot(x_ref[...], w_ref[...], preferred_element_type=jnp.float32)
    mean = jnp.mean(out, axis=0, keepdims=True)
    var = jnp.mean(out * out, axis=0, keepdims=True) - mean * mean
    var = jnp.maximum(var, 0.0)                  # guard f32 cancellation
    scale = g_ref[...] * jax.lax.rsqrt(var + eps)
    shift = b_ref[...] - mean * scale
    y = out * scale + shift
    o_ref[...] = jnp.where(y >= 0, y, 0.2 * y)


def conv_block(patches, w_mat, gamma, beta, *, eps=1e-5):
    M, K = patches.shape
    _, N = w_mat.shape
    Np = _round_up(N, 128)

    # Rough VMEM footprint (bf16 operands, f32 output + intermediates,
    # double-buffered by the pipeline).  PatchGAN block shapes are tiny
    # (<2 MB), far under the scoped VMEM limit on every TPU generation.
    approx_bytes = 2 * (M * K * 2 + K * Np * 2) + 4 * (M * Np * 4)
    if approx_bytes > (8 << 20):
        return _conv_block_tiled(patches, w_mat, gamma, beta, eps=eps)

    x = patches.astype(jnp.bfloat16)
    w = jnp.pad(w_mat, ((0, 0), (0, Np - N))).astype(jnp.bfloat16)
    g = jnp.pad(gamma, (0, Np - N)).astype(jnp.float32).reshape(1, Np)
    b = jnp.pad(beta, (0, Np - N)).astype(jnp.float32).reshape(1, Np)

    out = pl.pallas_call(
        functools.partial(_conv_block_fused_kernel, eps=eps),
        out_shape=jax.ShapeDtypeStruct((M, Np), jnp.float32),
        grid_spec=pltpu.PrefetchScalarGridSpec(
            num_scalar_prefetch=0,
            grid=(1,),
            in_specs=[pl.BlockSpec((M, K), lambda i: (0, 0)),
                      pl.BlockSpec((K, Np), lambda i: (0, 0)),
                      pl.BlockSpec((1, Np), lambda i: (0, 0)),
                      pl.BlockSpec((1, Np), lambda i: (0, 0))],
            out_specs=pl.BlockSpec((M, Np), lambda i: (0, 0)),
        ),
        compiler_params=pltpu.CompilerParams(
            dimension_semantics=("arbitrary",)),
    )(x, w, g, b)
    return out[:, :N]


# ----------------------------------------------------------------------------
# Fallback path for oversized blocks: tiled GEMM, then BN apply + LeakyReLU
# with large (full-width, lane-dense) tiles.
# ----------------------------------------------------------------------------
def _bn_leaky_kernel(x_ref, sc_ref, sh_ref, o_ref):
    y = x_ref[...] * sc_ref[...] + sh_ref[...]
    o_ref[...] = jnp.where(y >= 0, y, 0.2 * y)


def _bn_leaky_apply(x, scale, shift, *, tm=1024):
    M, N = x.shape
    Np = _round_up(N, 128)
    tm = min(tm, _round_up(M, 8))
    Mp = _round_up(M, tm)
    xp = jnp.pad(x, ((0, Mp - M), (0, Np - N)))
    sc = jnp.pad(scale, (0, Np - N)).reshape(1, Np)
    sh = jnp.pad(shift, (0, Np - N)).reshape(1, Np)
    out = pl.pallas_call(
        _bn_leaky_kernel,
        out_shape=jax.ShapeDtypeStruct((Mp, Np), jnp.float32),
        grid_spec=pltpu.PrefetchScalarGridSpec(
            num_scalar_prefetch=0,
            grid=(Mp // tm,),
            in_specs=[pl.BlockSpec((tm, Np), lambda i: (i, 0)),
                      pl.BlockSpec((1, Np), lambda i: (0, 0)),
                      pl.BlockSpec((1, Np), lambda i: (0, 0))],
            out_specs=pl.BlockSpec((tm, Np), lambda i: (i, 0)),
        ),
        compiler_params=pltpu.CompilerParams(
            dimension_semantics=("parallel",)),
    )(xp, sc, sh)
    return out[:M, :N]


def _conv_block_tiled(patches, w_mat, gamma, beta, *, eps):
    # TODO(synk): for very large M, fuse the sum/sumsq accumulation into the
    # GEMM epilogue (extra (1, Np) accumulated outputs) so `flat` is not
    # re-read from HBM for the batch statistics.
    N = w_mat.shape[1]
    flat = conv_gemm_bias_leaky(patches, w_mat,
                                jnp.zeros((N,), jnp.float32), leaky=False)
    mean = jnp.mean(flat, axis=0)
    var = jnp.maximum(jnp.mean(flat * flat, axis=0) - mean * mean, 0.0)
    scale = gamma * jax.lax.rsqrt(var + eps)
    shift = beta - mean * scale
    return _bn_leaky_apply(flat, scale, shift)


# ----------------------------------------------------------------------------
# JAX glue: reflect padding + im2col patch extraction
# ----------------------------------------------------------------------------
def _reflect_pad_nhwc(x, p):
    if p == 0:
        return x
    return jnp.pad(x, ((0, 0), (p, p), (p, p), (0, 0)), mode="reflect")


def _im2col(x, kh, kw, stride):
    B, H, W, C = x.shape
    Ho = (H - kh) // stride + 1
    Wo = (W - kw) // stride + 1
    cols = []
    for di in range(kh):
        for dj in range(kw):
            cols.append(x[:, di:H - kh + di + 1:stride,
                          dj:W - kw + dj + 1:stride, :])
    patches = jnp.stack(cols, axis=3)                 # (B, Ho, Wo, kh*kw, C)
    return patches.reshape(B * Ho * Wo, kh * kw * C), (B, Ho, Wo)


# ----------------------------------------------------------------------------
# Discriminator parameters + forward
# ----------------------------------------------------------------------------
def init_params(key, in_channels=3, features=(16, 32, 64, 128)):
    def normal(k, shape, fan_in):
        return jax.random.normal(k, shape, jnp.float32) / jnp.sqrt(fan_in)

    keys = jax.random.split(key, 2 + 2 * len(features))
    ki = iter(keys)
    params = {
        # start: Conv2d(in_channels, f0, k=4, s=1, p=1, reflect, bias=True)
        "start_w": normal(next(ki), (4, 4, in_channels, features[0]),
                          4 * 4 * in_channels),
        "start_b": 0.01 * jax.random.normal(next(ki), (features[0],), jnp.float32),
        "blocks": [],
        # end: Conv2d(f[-1], 1, k=4, s=1, p=1, reflect, bias=True)
        "end_w": normal(next(ki), (4, 4, features[-1], 1), 4 * 4 * features[-1]),
        "end_b": 0.01 * jax.random.normal(next(ki), (1,), jnp.float32),
    }
    for idx in range(1, len(features)):
        cin, cout = features[idx - 1], features[idx]
        params["blocks"].append({
            # ConvBlock: Conv2d(cin, cout, k=4, s=2, p=0, bias=False) + BN + LeakyReLU
            "w": normal(next(ki), (4, 4, cin, cout), 4 * 4 * cin),
            "gamma": jnp.ones((cout,), jnp.float32),   # BatchNorm2d default init
            "beta": jnp.zeros((cout,), jnp.float32),
        })
    return params


def discriminator_forward(params, x_nchw, y_nchw, should_collapse=True):
    d = 3 if should_collapse else 1
    x = jnp.concatenate((x_nchw, y_nchw), axis=d)     # torch.cat((x, y), dim=d)
    x = jnp.transpose(x, (0, 2, 3, 1))                # NCHW -> NHWC

    # start: conv(k4, s1, p1, reflect) + LeakyReLU(0.2), fused in the GEMM kernel
    kh, kw, cin, cout = params["start_w"].shape
    patches, (B, Ho, Wo) = _im2col(_reflect_pad_nhwc(x, 1), kh, kw, 1)
    flat = conv_gemm_bias_leaky(patches,
                                params["start_w"].reshape(kh * kw * cin, cout),
                                params["start_b"], leaky=True)
    x = flat.reshape(B, Ho, Wo, cout)

    # blocks: conv(k4, s2, p0, no bias) + BatchNorm2d(train) + LeakyReLU(0.2),
    # fully fused per block.
    for blk in params["blocks"]:
        kh, kw, cin, cout = blk["w"].shape
        patches, (B, Ho, Wo) = _im2col(x, kh, kw, 2)
        flat = conv_block(patches, blk["w"].reshape(kh * kw * cin, cout),
                          blk["gamma"], blk["beta"])
        x = flat.reshape(B, Ho, Wo, cout)
    # TODO(synk): BatchNorm running-stat buffer updates (training side effect)
    # are not modeled; they do not affect the forward output.

    # end: conv(k4, s1, p1, reflect), linear output.  M=B*Ho*Wo (~10), N=1 ->
    # a Pallas launch here is pure padding/launch overhead (perf review), so
    # this tiny GEMM runs as a plain XLA dot.
    kh, kw, cin, cout = params["end_w"].shape
    patches, (B, Ho, Wo) = _im2col(_reflect_pad_nhwc(x, 1), kh, kw, 1)
    flat = patches @ params["end_w"].reshape(kh * kw * cin, cout) + params["end_b"]
    x = flat.reshape(B, Ho, Wo, cout)
    return jnp.transpose(x, (0, 3, 1, 2))             # NHWC -> NCHW


if __name__ == "__main__":
    key = jax.random.PRNGKey(0)
    kx, ky, kp = jax.random.split(key, 3)

    B, C, H, W = 2, 3, 32, 32
    x = jax.random.normal(kx, (B, C, H, W), jnp.float32)
    y = jax.random.normal(ky, (B, C, H, W), jnp.float32)

    params = init_params(kp, in_channels=C, features=(16, 32, 64, 128))

    fwd = jax.jit(functools.partial(discriminator_forward, should_collapse=True))
    out = fwd(params, x, y)
    jax.block_until_ready(out)

    assert out.shape == (B, 1, 1, 5), out.shape       # NCHW PatchGAN logits
    assert jnp.all(jnp.isfinite(out))
    print("KERNEL_OK")
</pallas_src>

<mosaic_0001>
module attributes {stable_mosaic.version = 11 : i64} {
  func.func @_gemm_bias_kernel(%arg0: i32, %arg1: memref<512x48xbf16, #tpu.memory_space<vmem>>, %arg2: memref<48x128xbf16, #tpu.memory_space<vmem>>, %arg3: memref<1x128xf32, #tpu.memory_space<vmem>>, %arg4: memref<512x128xf32, #tpu.memory_space<vmem>>) attributes {dimension_semantics = [#tpu.dimension_semantics<parallel>], iteration_bounds = array<i64: 8>, scalar_prefetch = 0 : i64, scratch_operands = 0 : i64, tpu.core_type = #tpu.core_type<tc>, window_params = [{transform_indices = @transform_0, window_bounds = array<i64: 512, 48>}, {pipeline_mode = #tpu.pipeline_mode<synchronous>, transform_indices = @transform_1, window_bounds = array<i64: 48, 128>}, {pipeline_mode = #tpu.pipeline_mode<synchronous>, transform_indices = @transform_2, window_bounds = array<i64: 1, 128>}, {transform_indices = @transform_3, window_bounds = array<i64: 512, 128>}]} {
    %c0 = arith.constant 0 : index
    %c0_0 = arith.constant 0 : index
    %0 = vector.load %arg1[%c0, %c0_0] : memref<512x48xbf16, #tpu.memory_space<vmem>>, vector<512x48xbf16>
    %c0_1 = arith.constant 0 : index
    %c0_2 = arith.constant 0 : index
    %1 = vector.load %arg2[%c0_1, %c0_2] : memref<48x128xbf16, #tpu.memory_space<vmem>>, vector<48x128xbf16>
    %cst = arith.constant dense<0.000000e+00> : vector<512x128xf32>
    %2 = tpu.matmul %0, %1, %cst {dimension_numbers = #tpu.dot_dimension_numbers<[1], [0], [0], [1], [0, 0, 1, 1], [], []>} : vector<512x48xbf16>, vector<48x128xbf16>, vector<512x128xf32> -> vector<512x128xf32>
    %c0_3 = arith.constant 0 : index
    %c0_4 = arith.constant 0 : index
    %3 = vector.load %arg3[%c0_3, %c0_4] : memref<1x128xf32, #tpu.memory_space<vmem>>, vector<1x128xf32>
    %4 = vector.broadcast %3 : vector<1x128xf32> to vector<512x128xf32>
    %5 = arith.addf %2, %4 : vector<512x128xf32>
    %cst_5 = arith.constant 0.000000e+00 : f32
    %6 = vector.broadcast %cst_5 : f32 to vector<512x128xf32>
    %7 = arith.cmpf oge, %5, %6 : vector<512x128xf32>
    %cst_6 = arith.constant 2.000000e-01 : f32
    %8 = vector.broadcast %cst_6 : f32 to vector<512x128xf32>
    %9 = arith.mulf %8, %5 : vector<512x128xf32>
    %10 = arith.select %7, %5, %9 : vector<512x128xi1>, vector<512x128xf32>
    %c0_7 = arith.constant 0 : index
    %c0_8 = arith.constant 0 : index
    %11 = vector.load %arg4[%c0_7, %c0_8] : memref<512x128xf32, #tpu.memory_space<vmem>>, vector<512x128xf32>
    tpu.vector_store %arg4[%c0_7, %c0_8], %10 {strides = array<i32>} : memref<512x128xf32, #tpu.memory_space<vmem>>, vector<512x128xf32>,
    return
  }
  func.func @transform_0(%arg0: i32) -> (i32, i32) {
    %c0_i32 = arith.constant 0 : i32
    %c0_i32_0 = arith.constant 0 : i32
    return %arg0, %c0_i32 : i32, i32
  }
  func.func @transform_1(%arg0: i32) -> (i32, i32) {
    %c0_i32 = arith.constant 0 : i32
    %c0_i32_0 = arith.constant 0 : i32
    %c0_i32_1 = arith.constant 0 : i32
    return %c0_i32, %c0_i32_0 : i32, i32
  }
  func.func @transform_2(%arg0: i32) -> (i32, i32) {
    %c0_i32 = arith.constant 0 : i32
    %c0_i32_0 = arith.constant 0 : i32
    %c0_i32_1 = arith.constant 0 : i32
    return %c0_i32, %c0_i32_0 : i32, i32
  }
  func.func @transform_3(%arg0: i32) -> (i32, i32) {
    %c0_i32 = arith.constant 0 : i32
    %c0_i32_0 = arith.constant 0 : i32
    return %arg0, %c0_i32 : i32, i32
  }
}

module attributes {stable_mosaic.version = 11 : i64} {
  func.func @_conv_block_fused_kernel(%arg0: i32, %arg1: memref<840x256xbf16, #tpu.memory_space<vmem>>, %arg2: memref<256x128xbf16, #tpu.memory_space<vmem>>, %arg3: memref<1x128xf32, #tpu.memory_space<vmem>>, %arg4: memref<1x128xf32, #tpu.memory_space<vmem>>, %arg5: memref<840x128xf32, #tpu.memory_space<vmem>>) attributes {dimension_semantics = [#tpu.dimension_semantics<arbitrary>], iteration_bounds = array<i64: 1>, scalar_prefetch = 0 : i64, scratch_operands = 0 : i64, tpu.core_type = #tpu.core_type<tc>, window_params = [{pipeline_mode = #tpu.pipeline_mode<synchronous>, transform_indices = @transform_0, window_bounds = array<i64: 840, 256>}, {pipeline_mode = #tpu.pipeline_mode<synchronous>, transform_indices = @transform_1, window_bounds = array<i64: 256, 128>}, {pipeline_mode = #tpu.pipeline_mode<synchronous>, transform_indices = @transform_2, window_bounds = array<i64: 1, 128>}, {pipeline_mode = #tpu.pipeline_mode<synchronous>, transform_indices = @transform_3, window_bounds = array<i64: 1, 128>}, {pipeline_mode = #tpu.pipeline_mode<synchronous>, transform_indices = @transform_4, window_bounds = array<i64: 840, 128>}]} {
    %c0 = arith.constant 0 : index
    %c0_0 = arith.constant 0 : index
    %0 = vector.load %arg1[%c0, %c0_0] : memref<840x256xbf16, #tpu.memory_space<vmem>>, vector<840x256xbf16>
    %c0_1 = arith.constant 0 : index
    %c0_2 = arith.constant 0 : index
    %1 = vector.load %arg2[%c0_1, %c0_2] : memref<256x128xbf16, #tpu.memory_space<vmem>>, vector<256x128xbf16>
    %cst = arith.constant dense<0.000000e+00> : vector<840x128xf32>
    %2 = tpu.matmul %0, %1, %cst {dimension_numbers = #tpu.dot_dimension_numbers<[1], [0], [0], [1], [0, 0, 1, 1], [], []>} : vector<840x256xbf16>, vector<256x128xbf16>, vector<840x128xf32> -> vector<840x128xf32>
    %cst_3 = arith.constant dense<0.000000e+00> : vector<128xf32>
    %3 = vector.multi_reduction <add>, %2, %cst_3 [0] : vector<840x128xf32> to vector<128xf32>
    %4 = vector.shape_cast %3 : vector<128xf32> to vector<1x128xf32>
    %cst_4 = arith.constant 8.400000e+02 : f32
    %5 = vector.broadcast %cst_4 : f32 to vector<1x128xf32>
    %6 = arith.divf %4, %5 : vector<1x128xf32>
    %7 = arith.mulf %2, %2 : vector<840x128xf32>
    %cst_5 = arith.constant dense<0.000000e+00> : vector<128xf32>
    %8 = vector.multi_reduction <add>, %7, %cst_5 [0] : vector<840x128xf32> to vector<128xf32>
    %9 = vector.shape_cast %8 : vector<128xf32> to vector<1x128xf32>
    %cst_6 = arith.constant 8.400000e+02 : f32
    %10 = vector.broadcast %cst_6 : f32 to vector<1x128xf32>
    %11 = arith.divf %9, %10 : vector<1x128xf32>
    %12 = arith.mulf %6, %6 : vector<1x128xf32>
    %13 = arith.subf %11, %12 : vector<1x128xf32>
    %cst_7 = arith.constant 0.000000e+00 : f32
    %14 = vector.broadcast %cst_7 : f32 to vector<1x128xf32>
    %15 = arith.maximumf %13, %14 : vector<1x128xf32>
    %c0_8 = arith.constant 0 : index
    %c0_9 = arith.constant 0 : index
    %16 = vector.load %arg3[%c0_8, %c0_9] : memref<1x128xf32, #tpu.memory_space<vmem>>, vector<1x128xf32>
    %cst_10 = arith.constant 9.99999974E-6 : f32
    %17 = vector.broadcast %cst_10 : f32 to vector<1x128xf32>
    %18 = arith.addf %15, %17 : vector<1x128xf32>
    %19 = math.rsqrt %18 : vector<1x128xf32>
    %20 = arith.mulf %16, %19 : vector<1x128xf32>
    %c0_11 = arith.constant 0 : index
    %c0_12 = arith.constant 0 : index
    %21 = vector.load %arg4[%c0_11, %c0_12] : memref<1x128xf32, #tpu.memory_space<vmem>>, vector<1x128xf32>
    %22 = arith.mulf %6, %20 : vector<1x128xf32>
    %23 = arith.subf %21, %22 : vector<1x128xf32>
    %24 = vector.broadcast %20 : vector<1x128xf32> to vector<840x128xf32>
    %25 = arith.mulf %2, %24 : vector<840x128xf32>
    %26 = vector.broadcast %23 : vector<1x128xf32> to vector<840x128xf32>
    %27 = arith.addf %25, %26 : vector<840x128xf32>
    %cst_13 = arith.constant 0.000000e+00 : f32
    %28 = vector.broadcast %cst_13 : f32 to vector<840x128xf32>
    %29 = arith.cmpf oge, %27, %28 : vector<840x128xf32>
    %cst_14 = arith.constant 2.000000e-01 : f32
    %30 = vector.broadcast %cst_14 : f32 to vector<840x128xf32>
    %31 = arith.mulf %30, %27 : vector<840x128xf32>
    %32 = arith.select %29, %27, %31 : vector<840x128xi1>, vector<840x128xf32>
    %c0_15 = arith.constant 0 : index
    %c0_16 = arith.constant 0 : index
    %33 = vector.load %arg5[%c0_15, %c0_16] : memref<840x128xf32, #tpu.memory_space<vmem>>, vector<840x128xf32>
    tpu.vector_store %arg5[%c0_15, %c0_16], %32 {strides = array<i32>} : memref<840x128xf32, #tpu.memory_space<vmem>>, vector<840x128xf32>,
    return
  }
  func.func @transform_0(%arg0: i32) -> (i32, i32) {
    %c0_i32 = arith.constant 0 : i32
    %c0_i32_0 = arith.constant 0 : i32
    %c0_i32_1 = arith.constant 0 : i32
    return %c0_i32, %c0_i32_0 : i32, i32
  }
  func.func @transform_1(%arg0: i32) -> (i32, i32) {
    %c0_i32 = arith.constant 0 : i32
    %c0_i32_0 = arith.constant 0 : i32
    %c0_i32_1 = arith.constant 0 : i32
    return %c0_i32, %c0_i32_0 : i32, i32
  }
  func.func @transform_2(%arg0: i32) -> (i32, i32) {
    %c0_i32 = arith.constant 0 : i32
    %c0_i32_0 = arith.constant 0 : i32
    %c0_i32_1 = arith.constant 0 : i32
    return %c0_i32, %c0_i32_0 : i32, i32
  }
  func.func @transform_3(%arg0: i32) -> (i32, i32) {
    %c0_i32 = arith.constant 0 : i32
    %c0_i32_0 = arith.constant 0 : i32
    %c0_i32_1 = arith.constant 0 : i32
    return %c0_i32, %c0_i32_0 : i32, i32
  }
  func.func @transform_4(%arg0: i32) -> (i32, i32) {
    %c0_i32 = arith.constant 0 : i32
    %c0_i32_0 = arith.constant 0 : i32
    %c0_i32_1 = arith.constant 0 : i32
    return %c0_i32, %c0_i32_0 : i32, i32
  }
}

module attributes {stable_mosaic.version = 11 : i64} {
  func.func @_conv_block_fused_kernel(%arg0: i32, %arg1: memref<168x512xbf16, #tpu.memory_space<vmem>>, %arg2: memref<512x128xbf16, #tpu.memory_space<vmem>>, %arg3: memref<1x128xf32, #tpu.memory_space<vmem>>, %arg4: memref<1x128xf32, #tpu.memory_space<vmem>>, %arg5: memref<168x128xf32, #tpu.memory_space<vmem>>) attributes {dimension_semantics = [#tpu.dimension_semantics<arbitrary>], iteration_bounds = array<i64: 1>, scalar_prefetch = 0 : i64, scratch_operands = 0 : i64, tpu.core_type = #tpu.core_type<tc>, window_params = [{pipeline_mode = #tpu.pipeline_mode<synchronous>, transform_indices = @transform_0, window_bounds = array<i64: 168, 512>}, {pipeline_mode = #tpu.pipeline_mode<synchronous>, transform_indices = @transform_1, window_bounds = array<i64: 512, 128>}, {pipeline_mode = #tpu.pipeline_mode<synchronous>, transform_indices = @transform_2, window_bounds = array<i64: 1, 128>}, {pipeline_mode = #tpu.pipeline_mode<synchronous>, transform_indices = @transform_3, window_bounds = array<i64: 1, 128>}, {pipeline_mode = #tpu.pipeline_mode<synchronous>, transform_indices = @transform_4, window_bounds = array<i64: 168, 128>}]} {
    %c0 = arith.constant 0 : index
    %c0_0 = arith.constant 0 : index
    %0 = vector.load %arg1[%c0, %c0_0] : memref<168x512xbf16, #tpu.memory_space<vmem>>, vector<168x512xbf16>
    %c0_1 = arith.constant 0 : index
    %c0_2 = arith.constant 0 : index
    %1 = vector.load %arg2[%c0_1, %c0_2] : memref<512x128xbf16, #tpu.memory_space<vmem>>, vector<512x128xbf16>
    %cst = arith.constant dense<0.000000e+00> : vector<168x128xf32>
    %2 = tpu.matmul %0, %1, %cst {dimension_numbers = #tpu.dot_dimension_numbers<[1], [0], [0], [1], [0, 0, 1, 1], [], []>} : vector<168x512xbf16>, vector<512x128xbf16>, vector<168x128xf32> -> vector<168x128xf32>
    %cst_3 = arith.constant dense<0.000000e+00> : vector<128xf32>
    %3 = vector.multi_reduction <add>, %2, %cst_3 [0] : vector<168x128xf32> to vector<128xf32>
    %4 = vector.shape_cast %3 : vector<128xf32> to vector<1x128xf32>
    %cst_4 = arith.constant 1.680000e+02 : f32
    %5 = vector.broadcast %cst_4 : f32 to vector<1x128xf32>
    %6 = arith.divf %4, %5 : vector<1x128xf32>
    %7 = arith.mulf %2, %2 : vector<168x128xf32>
    %cst_5 = arith.constant dense<0.000000e+00> : vector<128xf32>
    %8 = vector.multi_reduction <add>, %7, %cst_5 [0] : vector<168x128xf32> to vector<128xf32>
    %9 = vector.shape_cast %8 : vector<128xf32> to vector<1x128xf32>
    %cst_6 = arith.constant 1.680000e+02 : f32
    %10 = vector.broadcast %cst_6 : f32 to vector<1x128xf32>
    %11 = arith.divf %9, %10 : vector<1x128xf32>
    %12 = arith.mulf %6, %6 : vector<1x128xf32>
    %13 = arith.subf %11, %12 : vector<1x128xf32>
    %cst_7 = arith.constant 0.000000e+00 : f32
    %14 = vector.broadcast %cst_7 : f32 to vector<1x128xf32>
    %15 = arith.maximumf %13, %14 : vector<1x128xf32>
    %c0_8 = arith.constant 0 : index
    %c0_9 = arith.constant 0 : index
    %16 = vector.load %arg3[%c0_8, %c0_9] : memref<1x128xf32, #tpu.memory_space<vmem>>, vector<1x128xf32>
    %cst_10 = arith.constant 9.99999974E-6 : f32
    %17 = vector.broadcast %cst_10 : f32 to vector<1x128xf32>
    %18 = arith.addf %15, %17 : vector<1x128xf32>
    %19 = math.rsqrt %18 : vector<1x128xf32>
    %20 = arith.mulf %16, %19 : vector<1x128xf32>
    %c0_11 = arith.constant 0 : index
    %c0_12 = arith.constant 0 : index
    %21 = vector.load %arg4[%c0_11, %c0_12] : memref<1x128xf32, #tpu.memory_space<vmem>>, vector<1x128xf32>
    %22 = arith.mulf %6, %20 : vector<1x128xf32>
    %23 = arith.subf %21, %22 : vector<1x128xf32>
    %24 = vector.broadcast %20 : vector<1x128xf32> to vector<168x128xf32>
    %25 = arith.mulf %2, %24 : vector<168x128xf32>
    %26 = vector.broadcast %23 : vector<1x128xf32> to vector<168x128xf32>
    %27 = arith.addf %25, %26 : vector<168x128xf32>
    %cst_13 = arith.constant 0.000000e+00 : f32
    %28 = vector.broadcast %cst_13 : f32 to vector<168x128xf32>
    %29 = arith.cmpf oge, %27, %28 : vector<168x128xf32>
    %cst_14 = arith.constant 2.000000e-01 : f32
    %30 = vector.broadcast %cst_14 : f32 to vector<168x128xf32>
    %31 = arith.mulf %30, %27 : vector<168x128xf32>
    %32 = arith.select %29, %27, %31 : vector<168x128xi1>, vector<168x128xf32>
    %c0_15 = arith.constant 0 : index
    %c0_16 = arith.constant 0 : index
    %33 = vector.load %arg5[%c0_15, %c0_16] : memref<168x128xf32, #tpu.memory_space<vmem>>, vector<168x128xf32>
    tpu.vector_store %arg5[%c0_15, %c0_16], %32 {strides = array<i32>} : memref<168x128xf32, #tpu.memory_space<vmem>>, vector<168x128xf32>,
    return
  }
  func.func @transform_0(%arg0: i32) -> (i32, i32) {
    %c0_i32 = arith.constant 0 : i32
    %c0_i32_0 = arith.constant 0 : i32
    %c0_i32_1 = arith.constant 0 : i32
    return %c0_i32, %c0_i32_0 : i32, i32
  }
  func.func @transform_1(%arg0: i32) -> (i32, i32) {
    %c0_i32 = arith.constant 0 : i32
    %c0_i32_0 = arith.constant 0 : i32
    %c0_i32_1 = arith.constant 0 : i32
    return %c0_i32, %c0_i32_0 : i32, i32
  }
  func.func @transform_2(%arg0: i32) -> (i32, i32) {
    %c0_i32 = arith.constant 0 : i32
    %c0_i32_0 = arith.constant 0 : i32
    %c0_i32_1 = arith.constant 0 : i32
    return %c0_i32, %c0_i32_0 : i32, i32
  }
  func.func @transform_3(%arg0: i32) -> (i32, i32) {
    %c0_i32 = arith.constant 0 : i32
    %c0_i32_0 = arith.constant 0 : i32
    %c0_i32_1 = arith.constant 0 : i32
    return %c0_i32, %c0_i32_0 : i32, i32
  }
  func.func @transform_4(%arg0: i32) -> (i32, i32) {
    %c0_i32 = arith.constant 0 : i32
    %c0_i32_0 = arith.constant 0 : i32
    %c0_i32_1 = arith.constant 0 : i32
    return %c0_i32, %c0_i32_0 : i32, i32
  }
}

module attributes {stable_mosaic.version = 11 : i64} {
  func.func @_conv_block_fused_kernel(%arg0: i32, %arg1: memref<24x1024xbf16, #tpu.memory_space<vmem>>, %arg2: memref<1024x128xbf16, #tpu.memory_space<vmem>>, %arg3: memref<1x128xf32, #tpu.memory_space<vmem>>, %arg4: memref<1x128xf32, #tpu.memory_space<vmem>>, %arg5: memref<24x128xf32, #tpu.memory_space<vmem>>) attributes {dimension_semantics = [#tpu.dimension_semantics<arbitrary>], iteration_bounds = array<i64: 1>, scalar_prefetch = 0 : i64, scratch_operands = 0 : i64, tpu.core_type = #tpu.core_type<tc>, window_params = [{pipeline_mode = #tpu.pipeline_mode<synchronous>, transform_indices = @transform_0, window_bounds = array<i64: 24, 1024>}, {pipeline_mode = #tpu.pipeline_mode<synchronous>, transform_indices = @transform_1, window_bounds = array<i64: 1024, 128>}, {pipeline_mode = #tpu.pipeline_mode<synchronous>, transform_indices = @transform_2, window_bounds = array<i64: 1, 128>}, {pipeline_mode = #tpu.pipeline_mode<synchronous>, transform_indices = @transform_3, window_bounds = array<i64: 1, 128>}, {pipeline_mode = #tpu.pipeline_mode<synchronous>, transform_indices = @transform_4, window_bounds = array<i64: 24, 128>}]} {
    %c0 = arith.constant 0 : index
    %c0_0 = arith.constant 0 : index
    %0 = vector.load %arg1[%c0, %c0_0] : memref<24x1024xbf16, #tpu.memory_space<vmem>>, vector<24x1024xbf16>
    %c0_1 = arith.constant 0 : index
    %c0_2 = arith.constant 0 : index
    %1 = vector.load %arg2[%c0_1, %c0_2] : memref<1024x128xbf16, #tpu.memory_space<vmem>>, vector<1024x128xbf16>
    %cst = arith.constant dense<0.000000e+00> : vector<24x128xf32>
    %2 = tpu.matmul %0, %1, %cst {dimension_numbers = #tpu.dot_dimension_numbers<[1], [0], [0], [1], [0, 0, 1, 1], [], []>} : vector<24x1024xbf16>, vector<1024x128xbf16>, vector<24x128xf32> -> vector<24x128xf32>
    %cst_3 = arith.constant dense<0.000000e+00> : vector<128xf32>
    %3 = vector.multi_reduction <add>, %2, %cst_3 [0] : vector<24x128xf32> to vector<128xf32>
    %4 = vector.shape_cast %3 : vector<128xf32> to vector<1x128xf32>
    %cst_4 = arith.constant 2.400000e+01 : f32
    %5 = vector.broadcast %cst_4 : f32 to vector<1x128xf32>
    %6 = arith.divf %4, %5 : vector<1x128xf32>
    %7 = arith.mulf %2, %2 : vector<24x128xf32>
    %cst_5 = arith.constant dense<0.000000e+00> : vector<128xf32>
    %8 = vector.multi_reduction <add>, %7, %cst_5 [0] : vector<24x128xf32> to vector<128xf32>
    %9 = vector.shape_cast %8 : vector<128xf32> to vector<1x128xf32>
    %cst_6 = arith.constant 2.400000e+01 : f32
    %10 = vector.broadcast %cst_6 : f32 to vector<1x128xf32>
    %11 = arith.divf %9, %10 : vector<1x128xf32>
    %12 = arith.mulf %6, %6 : vector<1x128xf32>
    %13 = arith.subf %11, %12 : vector<1x128xf32>
    %cst_7 = arith.constant 0.000000e+00 : f32
    %14 = vector.broadcast %cst_7 : f32 to vector<1x128xf32>
    %15 = arith.maximumf %13, %14 : vector<1x128xf32>
    %c0_8 = arith.constant 0 : index
    %c0_9 = arith.constant 0 : index
    %16 = vector.load %arg3[%c0_8, %c0_9] : memref<1x128xf32, #tpu.memory_space<vmem>>, vector<1x128xf32>
    %cst_10 = arith.constant 9.99999974E-6 : f32
    %17 = vector.broadcast %cst_10 : f32 to vector<1x128xf32>
    %18 = arith.addf %15, %17 : vector<1x128xf32>
    %19 = math.rsqrt %18 : vector<1x128xf32>
    %20 = arith.mulf %16, %19 : vector<1x128xf32>
    %c0_11 = arith.constant 0 : index
    %c0_12 = arith.constant 0 : index
    %21 = vector.load %arg4[%c0_11, %c0_12] : memref<1x128xf32, #tpu.memory_space<vmem>>, vector<1x128xf32>
    %22 = arith.mulf %6, %20 : vector<1x128xf32>
    %23 = arith.subf %21, %22 : vector<1x128xf32>
    %24 = vector.broadcast %20 : vector<1x128xf32> to vector<24x128xf32>
    %25 = arith.mulf %2, %24 : vector<24x128xf32>
    %26 = vector.broadcast %23 : vector<1x128xf32> to vector<24x128xf32>
    %27 = arith.addf %25, %26 : vector<24x128xf32>
    %cst_13 = arith.constant 0.000000e+00 : f32
    %28 = vector.broadcast %cst_13 : f32 to vector<24x128xf32>
    %29 = arith.cmpf oge, %27, %28 : vector<24x128xf32>
    %cst_14 = arith.constant 2.000000e-01 : f32
    %30 = vector.broadcast %cst_14 : f32 to vector<24x128xf32>
    %31 = arith.mulf %30, %27 : vector<24x128xf32>
    %32 = arith.select %29, %27, %31 : vector<24x128xi1>, vector<24x128xf32>
    %c0_15 = arith.constant 0 : index
    %c0_16 = arith.constant 0 : index
    %33 = vector.load %arg5[%c0_15, %c0_16] : memref<24x128xf32, #tpu.memory_space<vmem>>, vector<24x128xf32>
    tpu.vector_store %arg5[%c0_15, %c0_16], %32 {strides = array<i32>} : memref<24x128xf32, #tpu.memory_space<vmem>>, vector<24x128xf32>,
    return
  }
  func.func @transform_0(%arg0: i32) -> (i32, i32) {
    %c0_i32 = arith.constant 0 : i32
    %c0_i32_0 = arith.constant 0 : i32
    %c0_i32_1 = arith.constant 0 : i32
    return %c0_i32, %c0_i32_0 : i32, i32
  }
  func.func @transform_1(%arg0: i32) -> (i32, i32) {
    %c0_i32 = arith.constant 0 : i32
    %c0_i32_0 = arith.constant 0 : i32
    %c0_i32_1 = arith.constant 0 : i32
    return %c0_i32, %c0_i32_0 : i32, i32
  }
  func.func @transform_2(%arg0: i32) -> (i32, i32) {
    %c0_i32 = arith.constant 0 : i32
    %c0_i32_0 = arith.constant 0 : i32
    %c0_i32_1 = arith.constant 0 : i32
    return %c0_i32, %c0_i32_0 : i32, i32
  }
  func.func @transform_3(%arg0: i32) -> (i32, i32) {
    %c0_i32 = arith.constant 0 : i32
    %c0_i32_0 = arith.constant 0 : i32
    %c0_i32_1 = arith.constant 0 : i32
    return %c0_i32, %c0_i32_0 : i32, i32
  }
  func.func @transform_4(%arg0: i32) -> (i32, i32) {
    %c0_i32 = arith.constant 0 : i32
    %c0_i32_0 = arith.constant 0 : i32
    %c0_i32_1 = arith.constant 0 : i32
    return %c0_i32, %c0_i32_0 : i32, i32
  }
}

</mosaic_0001>

<bundles_post_ra>
// kernel: discriminator_forward.4
= control target key start
LH: loop header
LB: loop body
LE: loop exit
PB: predicated region body
PF: predicated region fallthrough
CT: control target
= control target key end

     0   :  { %s1389_s12 = smov 0   ;;  %s1620_s0 = inlined_call_operand.vmem [shape: bf16[4096,48], index: 0, kind: input, shape index: {}]   ;;  %s1621_s1 = inlined_call_operand.vmem [shape: bf16[48,128], index: 1, kind: input, shape index: {}]   ;;  %s1622_s2 = inlined_call_operand.vmem [shape: f32[1,128], index: 2, kind: input, shape index: {}]   ;;  %s1623_s3 = inlined_call_operand.vmem [shape: f32[4096,128], index: 3, kind: output, shape index: {}]  }
   0x1 LB: > { %s1128_s13 = sadd.s32 4294967295, %s1367_s12   ;;  %p1132_p0 = scmp.ge.s32.totalorder %s1367_s12, 1  ;;  %s1367_s12 = sphi %s1389_s12, %s13_s12  }
   0x2   : > { %p138_p1 = scmp.lt.s32.totalorder %s1367_s12, 9 }
   0x4   : > { %p139_p2 = pnand %p1132_p0, %p138_p1 }
   0x5   : > { %v1326_v0 = vld [vmem:[%s1621_s1] sm:$0xff] (!%p139_p2)   ;;  %s1133_s16 = sshll.u32 (!%p139_p2), %s1128_s13, 6  ;;  %v1327_v1 = vld [vmem:[%s1621_s1 + $0x8] sm:$0xff] (!%p139_p2)   ;;  %v1328_v2 = vld [vmem:[%s1621_s1 + $0x10] sm:$0xff] (!%p139_p2)   ;;  %vm430_vm0 = vcmask (!%p139_p2), 392192  }
   0x6   : > { %142 = sbr.rel (%p139_p2) target bundleno = 300 (0x12c), region = 32  ;;  %p163_p3 = scmp.lt.s32.totalorder (!%p139_p2), %s1133_s16, 511  ;;  %1242 = vmatprep.subr.bf16.mxu0 (!%p139_p2), %v1326_v0  ;;  %1312 = vmatprep.subr.bf16.mxu1 (!%p139_p2), %v1326_v0  ;;  %v1481_v35 = vld [vmem:[%s1622_s2] ss:$0 sm:$0xff] (!%p139_p2) }
   0x7   : > { %1243 = vmatpush3.bf16.msra.mxu0 (!%p139_p2), %v1326_v0  ;;  %1315 = vmatpush3.bf16.msra.mxu1 (!%p139_p2), %v1326_v0 }
   0x8   : > { %1244 = vmatprep.subr.bf16.mxu0 (!%p139_p2), %v1327_v1  ;;  %1313 = vmatprep.subr.bf16.mxu1 (!%p139_p2), %v1327_v1 }
   0xb   : > { %1245 = vmatpush3.bf16.msra.mxu0 (!%p139_p2), %v1327_v1  ;;  %1316 = vmatpush3.bf16.msra.mxu1 (!%p139_p2), %v1327_v1 }
   0xc   : > { %1246 = vmatprep.subr.bf16.mxu0 (!%p139_p2), %v1328_v2  ;;  %1314 = vmatprep.subr.bf16.mxu1 (!%p139_p2), %v1328_v2 }
   0xd   : > { %s1625_s16 = smov (!%p163_p3, %s1133_s16), 511 }
   0xe   : > { %s1134_s21 = sshll.u32 %s1625_s16, 2  ;;  %s1136_s27 = sshll.u32 %s1625_s16, 3 }
   0xf   : > { %s1412_s24 = scalar_lea.vmem %s1620_s0, %s1134_s21  ;;  %1247 = vmatpush3.bf16.msra.mxu0 %v1328_v2  ;;  %1317 = vmatpush3.bf16.msra.mxu1 %v1328_v2  ;;  %s1491_s30 = scalar_lea.vmem %s1623_s3, %s1136_s27 }
  0x10   : > { %v1329_v3 = vld [vmem:[%s1412_s24] sm:$0xff]   ;;  %v1331_v5 = vld [vmem:[%s1412_s24 + $0x8] sm:$0xff]   ;;  %v1333_v7 = vld [vmem:[%s1412_s24 + $0x10] sm:$0xff]  }
  0x11   : > { %v1330_v4 = vld [vmem:[%s1412_s24 + $0x80] sm:$0xff]   ;;  %1248 = vmatprep.mubr.msk.bf16.mxu0 %vm430_vm0, %v1329_v3  ;;  %v1332_v6 = vld [vmem:[%s1412_s24 + $0x88] sm:$0xff]   ;;  %v1334_v8 = vld [vmem:[%s1412_s24 + $0x90] sm:$0xff]  }
  0x12   : > { %1280 = vmatprep.mubr.msk.bf16.mxu1 %vm430_vm0, %v1330_v4  ;;  %1249 = vmatmul.mubr.msk.bf16.vlgmr.msra.gmra.mrb[0].mxu0 %vm430_vm0, %v1331_v5  ;;  %v1335_v9 = vld [vmem:[%s1412_s24 + $0x18] sm:$0xff]   ;;  %v1337_v11 = vld [vmem:[%s1412_s24 + $0x20] sm:$0xff]   ;;  %v1339_v13 = vld [vmem:[%s1412_s24 + $0x28] sm:$0xff]  }
  0x13   : > { %1281 = vmatmul.mubr.msk.bf16.vlgmr.msra.gmra.mrb[0].mxu1 %vm430_vm0, %v1332_v6  ;;  %1252 = vmatprep.mubr.msk.bf16.mxu0 %vm430_vm0, %v1333_v7  ;;  %v1336_v10 = vld [vmem:[%s1412_s24 + $0x98] sm:$0xff]   ;;  %v1338_v12 = vld [vmem:[%s1412_s24 + $0xa0] sm:$0xff]   ;;  %v1340_v14 = vld [vmem:[%s1412_s24 + $0xa8] sm:$0xff]  }
  0x14   : > { %1284 = vmatprep.mubr.msk.bf16.mxu1 %vm430_vm0, %v1334_v8  ;;  %v1341_v15 = vld [vmem:[%s1412_s24 + $0x30] sm:$0xff]   ;;  %v1343_v17 = vld [vmem:[%s1412_s24 + $0x38] sm:$0xff]   ;;  %v1345_v19 = vld [vmem:[%s1412_s24 + $0x40] sm:$0xff]  }
  0x15   : > { %v1342_v16 = vld [vmem:[%s1412_s24 + $0xb0] sm:$0xff]   ;;  %v1344_v18 = vld [vmem:[%s1412_s24 + $0xb8] sm:$0xff]   ;;  %v1346_v20 = vld [vmem:[%s1412_s24 + $0xc0] sm:$0xff]  }
  0x16   : > { %v1347_v21 = vld [vmem:[%s1412_s24 + $0x48] sm:$0xff]   ;;  %v1349_v23 = vld [vmem:[%s1412_s24 + $0x50] sm:$0xff]   ;;  %v1351_v25 = vld [vmem:[%s1412_s24 + $0x58] sm:$0xff]  }
  0x17   : > { %v1348_v22 = vld [vmem:[%s1412_s24 + $0xc8] sm:$0xff]   ;;  %v1350_v24 = vld [vmem:[%s1412_s24 + $0xd0] sm:$0xff]   ;;  %v1352_v26 = vld [vmem:[%s1412_s24 + $0xd8] sm:$0xff]  }
  0x18   : > { %v1353_v27 = vld [vmem:[%s1412_s24 + $0x60] sm:$0xff]   ;;  %v1355_v29 = vld [vmem:[%s1412_s24 + $0x68] sm:$0xff]   ;;  %v1357_v31 = vld [vmem:[%s1412_s24 + $0x70] sm:$0xff]  }
  0x19   : > { %v1354_v28 = vld [vmem:[%s1412_s24 + $0xe0] sm:$0xff]   ;;  %v1356_v30 = vld [vmem:[%s1412_s24 + $0xe8] sm:$0xff]   ;;  %v1358_v32 = vld [vmem:[%s1412_s24 + $0xf0] sm:$0xff]  }
  0x1a   : > { %1253 = vmatmul.mubr.msk.bf16.gmra.mrb[4].mxu0 %vm430_vm0, %v1335_v9  ;;  %v1359_v33 = vld [vmem:[%s1412_s24 + $0x78] sm:$0xff]  }
  0x1b   : > { %1285 = vmatmul.mubr.msk.bf16.gmra.mrb[4].mxu1 %vm430_vm0, %v1336_v10  ;;  %1256 = vmatprep.mubr.msk.bf16.mxu0 %vm430_vm0, %v1337_v11  ;;  %v1360_v34 = vld [vmem:[%s1412_s24 + $0xf8] sm:$0xff]  }
  0x1c   : > { %1288 = vmatprep.mubr.msk.bf16.mxu1 %vm430_vm0, %v1338_v12 }
  0x22   : > { %1257 = vmatmul.mubr.msk.bf16.gmra.mrb[8].mxu0 %vm430_vm0, %v1339_v13 }
  0x23   : > { %1289 = vmatmul.mubr.msk.bf16.gmra.mrb[8].mxu1 %vm430_vm0, %v1340_v14  ;;  %1260 = vmatprep.mubr.msk.bf16.mxu0 %vm430_vm0, %v1341_v15 }
  0x24   : > { %1292 = vmatprep.mubr.msk.bf16.mxu1 %vm430_vm0, %v1342_v16 }
  0x2a   : > { %1261 = vmatmul.mubr.msk.bf16.gmra.mrb[12].mxu0 %vm430_vm0, %v1343_v17 }
  0x2b   : > { %1293 = vmatmul.mubr.msk.bf16.gmra.mrb[12].mxu1 %vm430_vm0, %v1344_v18  ;;  %1264 = vmatprep.mubr.msk.bf16.mxu0 %vm430_vm0, %v1345_v19 }
  0x2c   : > { %1296 = vmatprep.mubr.msk.bf16.mxu1 %vm430_vm0, %v1346_v20 }
  0x32   : > { %1265 = vmatmul.mubr.msk.bf16.gmra.mrb[16].mxu0 %vm430_vm0, %v1347_v21 }
  0x33   : > { %1297 = vmatmul.mubr.msk.bf16.gmra.mrb[16].mxu1 %vm430_vm0, %v1348_v22  ;;  %1268 = vmatprep.mubr.msk.bf16.mxu0 %vm430_vm0, %v1349_v23 }
  0x34   : > { %1300 = vmatprep.mubr.msk.bf16.mxu1 %vm430_vm0, %v1350_v24 }
  0x3a   : > { %1269 = vmatmul.mubr.msk.bf16.gmra.mrb[20].mxu0 %vm430_vm0, %v1351_v25 }
  0x3b   : > { %1301 = vmatmul.mubr.msk.bf16.gmra.mrb[20].mxu1 %vm430_vm0, %v1352_v26  ;;  %1272 = vmatprep.mubr.msk.bf16.mxu0 %vm430_vm0, %v1353_v27 }
  0x3c   : > { %1304 = vmatprep.mubr.msk.bf16.mxu1 %vm430_vm0, %v1354_v28 }
  0x42   : > { %1273 = vmatmul.mubr.msk.bf16.gmra.mrb[24].mxu0 %vm430_vm0, %v1355_v29 }
  0x43   : > { %1305 = vmatmul.mubr.msk.bf16.gmra.mrb[24].mxu1 %vm430_vm0, %v1356_v30  ;;  %1276 = vmatprep.mubr.msk.bf16.mxu0 %vm430_vm0, %v1357_v31 }
  0x44   : > { %1308 = vmatprep.mubr.msk.bf16.mxu1 %vm430_vm0, %v1358_v32 }
  0x4a   : > { %1277 = vmatmul.mubr.msk.bf16.gmra.mrb[28].mxu0 %vm430_vm0, %v1359_v33 }
  0x4b   : > { %1309 = vmatmul.mubr.msk.bf16.gmra.mrb[28].mxu1 %vm430_vm0, %v1360_v34 }
  0xe5   : > { %v1250_v36 = vpop.f32.mrb[0].mxu0 }
  0xe6   : > { %v1282_v37 = vpop.f32.mrb[0].mxu1  ;;  %v570_v38 = vadd.f32 %v1250_v36, %v1481_v35  ;;  %v561_v40 = vpop.f32.mrb[1].mxu0 }
  0xe7   : > { %v698_v39 = vadd.f32 %v1282_v37, %v1481_v35  ;;  %v689_v41 = vpop.f32.mrb[1].mxu1  ;;  %v562_v42 = vadd.f32 %v1481_v35, %v561_v40  ;;  %v1251_v44 = vpop.f32.mrb[2].mxu0 }
  0xe8   : > { %v690_v43 = vadd.f32 %v1481_v35, %v689_v41  ;;  %v1283_v45 = vpop.f32.mrb[2].mxu1  ;;  %vm818_vm1 = vcmp.ge.f32.partialorder %v570_v38, 0.0  ;;  %v882_v46 = vmul.f32 0.2, %v570_v38  ;;  %v573_v52 = vadd.f32 %v1251_v44, %v1481_v35  ;;  %v564_v54 = vpop.f32.mrb[3].mxu0 }
  0xe9   : > { %vm850_vm2 = vcmp.ge.f32.partialorder %v698_v39, 0.0  ;;  %v914_v47 = vmul.f32 0.2, %v698_v39  ;;  %vm816_vm3 = vcmp.ge.f32.partialorder %v562_v42, 0.0  ;;  %v880_v48 = vmul.f32 0.2, %v562_v42 }
  0xea   : > { %vm848_vm4 = vcmp.ge.f32.partialorder %v690_v43, 0.0  ;;  %v912_v49 = vmul.f32 0.2, %v690_v43  ;;  %v946_v50 = vsel %vm818_vm1, %v570_v38, %v882_v46  ;;  %v701_v53 = vadd.f32 %v1283_v45, %v1481_v35  ;;  %v692_v55 = vpop.f32.mrb[3].mxu1 }
  0xeb   : > { %v978_v51 = vsel %vm850_vm2, %v698_v39, %v914_v47  ;;  %1010 = vst [vmem:[%s1491_s30 + $0x10] sm:$0xff] %v946_v50  ;;  %v944_v56 = vsel %vm816_vm3, %v562_v42, %v880_v48  ;;  %v565_v58 = vadd.f32 %v1481_v35, %v564_v54  ;;  %v693_v59 = vadd.f32 %v1481_v35, %v692_v55 }
  0xec   : > { %1042 = vst [vmem:[%s1491_s30 + $0x110] sm:$0xff] %v978_v51  ;;  %v976_v57 = vsel %vm848_vm4, %v690_v43, %v912_v49  ;;  %1008 = vst [vmem:[%s1491_s30] sm:$0xff] %v944_v56  ;;  %vm819_vm5 = vcmp.ge.f32.partialorder %v573_v52, 0.0  ;;  %v883_v60 = vmul.f32 0.2, %v573_v52  ;;  %vm851_vm6 = vcmp.ge.f32.partialorder %v701_v53, 0.0 }
  0xed   : > { %1040 = vst [vmem:[%s1491_s30 + $0x100] sm:$0xff] %v976_v57  ;;  %v915_v61 = vmul.f32 0.2, %v701_v53  ;;  %vm817_vm7 = vcmp.ge.f32.partialorder %v565_v58, 0.0  ;;  %v881_v62 = vmul.f32 0.2, %v565_v58 }
  0xee   : > { %vm849_vm8 = vcmp.ge.f32.partialorder %v693_v59, 0.0  ;;  %v913_v63 = vmul.f32 0.2, %v693_v59  ;;  %v947_v0 = vsel %vm819_vm5, %v573_v52, %v883_v60  ;;  %v1254_v2 = vpop.f32.mrb[4].mxu0  ;;  %v1286_v3 = vpop.f32.mrb[4].mxu1 }
  0xef   : > { %v979_v1 = vsel %vm851_vm6, %v701_v53, %v915_v61  ;;  %1011 = vst [vmem:[%s1491_s30 + $0x18] sm:$0xff] %v947_v0  ;;  %v945_v4 = vsel %vm817_vm7, %v565_v58, %v881_v62  ;;  %v586_v6 = vadd.f32 %v1254_v2, %v1481_v35  ;;  %v714_v7 = vadd.f32 %v1286_v3, %v1481_v35  ;;  %v577_v8 = vpop.f32.mrb[5].mxu0  ;;  %v705_v9 = vpop.f32.mrb[5].mxu1 }
  0xf0   : > { %1043 = vst [vmem:[%s1491_s30 + $0x118] sm:$0xff] %v979_v1  ;;  %v977_v5 = vsel %vm849_vm8, %v693_v59, %v913_v63  ;;  %1009 = vst [vmem:[%s1491_s30 + $0x8] sm:$0xff] %v945_v4  ;;  %v578_v10 = vadd.f32 %v1481_v35, %v577_v8  ;;  %v706_v11 = vadd.f32 %v1481_v35, %v705_v9  ;;  %v1255_v12 = vpop.f32.mrb[6].mxu0  ;;  %v1287_v13 = vpop.f32.mrb[6].mxu1 }
  0xf1   : > { %1041 = vst [vmem:[%s1491_s30 + $0x108] sm:$0xff] %v977_v5  ;;  %vm822_vm9 = vcmp.ge.f32.partialorder %v586_v6, 0.0  ;;  %v886_v14 = vmul.f32 0.2, %v586_v6  ;;  %vm854_vm10 = vcmp.ge.f32.partialorder %v714_v7, 0.0  ;;  %v589_v20 = vadd.f32 %v1255_v12, %v1481_v35  ;;  %v580_v22 = vpop.f32.mrb[7].mxu0 }
  0xf2   : > { %v918_v15 = vmul.f32 0.2, %v714_v7  ;;  %vm820_vm11 = vcmp.ge.f32.partialorder %v578_v10, 0.0  ;;  %v884_v16 = vmul.f32 0.2, %v578_v10  ;;  %vm852_vm12 = vcmp.ge.f32.partialorder %v706_v11, 0.0 }
  0xf3   : > { %v916_v17 = vmul.f32 0.2, %v706_v11  ;;  %v950_v18 = vsel %vm822_vm9, %v586_v6, %v886_v14  ;;  %v717_v21 = vadd.f32 %v1287_v13, %v1481_v35  ;;  %v708_v23 = vpop.f32.mrb[7].mxu1  ;;  %v581_v26 = vadd.f32 %v1481_v35, %v580_v22 }
  0xf4   : > { %v982_v19 = vsel %vm854_vm10, %v714_v7, %v918_v15  ;;  %1014 = vst [vmem:[%s1491_s30 + $0x30] sm:$0xff] %v950_v18  ;;  %v948_v24 = vsel %vm820_vm11, %v578_v10, %v884_v16  ;;  %v709_v27 = vadd.f32 %v1481_v35, %v708_v23  ;;  %vm823_vm13 = vcmp.ge.f32.partialorder %v589_v20, 0.0 }
  0xf5   : > { %1046 = vst [vmem:[%s1491_s30 + $0x130] sm:$0xff] %v982_v19  ;;  %v980_v25 = vsel %vm852_vm12, %v706_v11, %v916_v17  ;;  %1012 = vst [vmem:[%s1491_s30 + $0x20] sm:$0xff] %v948_v24  ;;  %v887_v28 = vmul.f32 0.2, %v589_v20  ;;  %vm855_vm14 = vcmp.ge.f32.partialorder %v717_v21, 0.0  ;;  %vm821_vm15 = vcmp.ge.f32.partialorder %v581_v26, 0.0 }
  0xf6   : > { %1044 = vst [vmem:[%s1491_s30 + $0x120] sm:$0xff] %v980_v25  ;;  %v919_v29 = vmul.f32 0.2, %v717_v21  ;;  %v885_v30 = vmul.f32 0.2, %v581_v26  ;;  %vm853_vm0 = vcmp.ge.f32.partialorder %v709_v27, 0.0 }
  0xf7   : > { %v917_v31 = vmul.f32 0.2, %v709_v27  ;;  %v951_v32 = vsel %vm823_vm13, %v589_v20, %v887_v28  ;;  %v1258_v34 = vpop.f32.mrb[8].mxu0  ;;  %v1290_v36 = vpop.f32.mrb[8].mxu1 }
  0xf8   : > { %v983_v33 = vsel %vm855_vm14, %v717_v21, %v919_v29  ;;  %1015 = vst [vmem:[%s1491_s30 + $0x38] sm:$0xff] %v951_v32  ;;  %v949_v37 = vsel %vm821_vm15, %v581_v26, %v885_v30  ;;  %v602_v39 = vadd.f32 %v1258_v34, %v1481_v35  ;;  %v730_v40 = vadd.f32 %v1290_v36, %v1481_v35  ;;  %v593_v41 = vpop.f32.mrb[9].mxu0  ;;  %v721_v42 = vpop.f32.mrb[9].mxu1 }
  0xf9   : > { %1047 = vst [vmem:[%s1491_s30 + $0x138] sm:$0xff] %v983_v33  ;;  %v981_v38 = vsel %vm853_vm0, %v709_v27, %v917_v31  ;;  %1013 = vst [vmem:[%s1491_s30 + $0x28] sm:$0xff] %v949_v37  ;;  %v594_v43 = vadd.f32 %v1481_v35, %v593_v41  ;;  %v722_v44 = vadd.f32 %v1481_v35, %v721_v42  ;;  %v1259_v45 = vpop.f32.mrb[10].mxu0  ;;  %v1291_v46 = vpop.f32.mrb[10].mxu1 }
  0xfa   : > { %1045 = vst [vmem:[%s1491_s30 + $0x128] sm:$0xff] %v981_v38  ;;  %vm826_vm1 = vcmp.ge.f32.partialorder %v602_v39, 0.0  ;;  %v890_v47 = vmul.f32 0.2, %v602_v39  ;;  %vm858_vm2 = vcmp.ge.f32.partialorder %v730_v40, 0.0  ;;  %v605_v53 = vadd.f32 %v1259_v45, %v1481_v35  ;;  %v596_v55 = vpop.f32.mrb[11].mxu0 }
  0xfb   : > { %v922_v48 = vmul.f32 0.2, %v730_v40  ;;  %vm824_vm3 = vcmp.ge.f32.partialorder %v594_v43, 0.0  ;;  %v888_v49 = vmul.f32 0.2, %v594_v43  ;;  %vm856_vm4 = vcmp.ge.f32.partialorder %v722_v44, 0.0 }
  0xfc   : > { %v920_v50 = vmul.f32 0.2, %v722_v44  ;;  %v954_v51 = vsel %vm826_vm1, %v602_v39, %v890_v47  ;;  %v733_v54 = vadd.f32 %v1291_v46, %v1481_v35  ;;  %v724_v56 = vpop.f32.mrb[11].mxu1  ;;  %v597_v59 = vadd.f32 %v1481_v35, %v596_v55 }
  0xfd   : > { %v986_v52 = vsel %vm858_vm2, %v730_v40, %v922_v48  ;;  %1018 = vst [vmem:[%s1491_s30 + $0x50] sm:$0xff] %v954_v51  ;;  %v952_v57 = vsel %vm824_vm3, %v594_v43, %v888_v49  ;;  %v725_v60 = vadd.f32 %v1481_v35, %v724_v56  ;;  %v1262_v61 = vpop.f32.mrb[12].mxu0  ;;  %vm827_vm5 = vcmp.ge.f32.partialorder %v605_v53, 0.0 }
  0xfe   : > { %1050 = vst [vmem:[%s1491_s30 + $0x150] sm:$0xff] %v986_v52  ;;  %v984_v58 = vsel %vm856_vm4, %v722_v44, %v920_v50  ;;  %v1294_v62 = vpop.f32.mrb[12].mxu1  ;;  %1016 = vst [vmem:[%s1491_s30 + $0x40] sm:$0xff] %v952_v57  ;;  %v891_v63 = vmul.f32 0.2, %v605_v53  ;;  %vm859_vm6 = vcmp.ge.f32.partialorder %v733_v54, 0.0  ;;  %v618_v5 = vadd.f32 %v1262_v61, %v1481_v35 }
  0xff   : > { %1048 = vst [vmem:[%s1491_s30 + $0x140] sm:$0xff] %v984_v58  ;;  %v923_v0 = vmul.f32 0.2, %v733_v54  ;;  %vm825_vm7 = vcmp.ge.f32.partialorder %v597_v59, 0.0  ;;  %v889_v1 = vmul.f32 0.2, %v597_v59  ;;  %v746_v6 = vadd.f32 %v1294_v62, %v1481_v35 }
 0x100   : > { %vm857_vm8 = vcmp.ge.f32.partialorder %v725_v60, 0.0  ;;  %v921_v2 = vmul.f32 0.2, %v725_v60  ;;  %v955_v3 = vsel %vm827_vm5, %v605_v53, %v891_v63  ;;  %v609_v7 = vpop.f32.mrb[13].mxu0  ;;  %v737_v8 = vpop.f32.mrb[13].mxu1  ;;  %vm830_vm9 = vcmp.ge.f32.partialorder %v618_v5, 0.0 }
 0x101   : > { %v987_v4 = vsel %vm859_vm6, %v733_v54, %v923_v0  ;;  %1019 = vst [vmem:[%s1491_s30 + $0x58] sm:$0xff] %v955_v3  ;;  %v953_v9 = vsel %vm825_vm7, %v597_v59, %v889_v1  ;;  %v610_v11 = vadd.f32 %v1481_v35, %v609_v7  ;;  %v738_v12 = vadd.f32 %v1481_v35, %v737_v8  ;;  %v1263_v13 = vpop.f32.mrb[14].mxu0  ;;  %v1295_v14 = vpop.f32.mrb[14].mxu1 }
 0x102   : > { %1051 = vst [vmem:[%s1491_s30 + $0x158] sm:$0xff] %v987_v4  ;;  %v985_v10 = vsel %vm857_vm8, %v725_v60, %v921_v2  ;;  %1017 = vst [vmem:[%s1491_s30 + $0x48] sm:$0xff] %v953_v9  ;;  %v894_v15 = vmul.f32 0.2, %v618_v5  ;;  %vm862_vm10 = vcmp.ge.f32.partialorder %v746_v6, 0.0  ;;  %v621_v21 = vadd.f32 %v1263_v13, %v1481_v35  ;;  %v612_v23 = vpop.f32.mrb[15].mxu0 }
 0x103   : > { %1049 = vst [vmem:[%s1491_s30 + $0x148] sm:$0xff] %v985_v10  ;;  %v926_v16 = vmul.f32 0.2, %v746_v6  ;;  %vm828_vm11 = vcmp.ge.f32.partialorder %v610_v11, 0.0  ;;  %v892_v17 = vmul.f32 0.2, %v610_v11  ;;  %v749_v22 = vadd.f32 %v1295_v14, %v1481_v35 }
 0x104   : > { %vm860_vm12 = vcmp.ge.f32.partialorder %v738_v12, 0.0  ;;  %v924_v18 = vmul.f32 0.2, %v738_v12  ;;  %v958_v19 = vsel %vm830_vm9, %v618_v5, %v894_v15  ;;  %v740_v24 = vpop.f32.mrb[15].mxu1  ;;  %v613_v27 = vadd.f32 %v1481_v35, %v612_v23 }
 0x105   : > { %v990_v20 = vsel %vm862_vm10, %v746_v6, %v926_v16  ;;  %1022 = vst [vmem:[%s1491_s30 + $0x70] sm:$0xff] %v958_v19  ;;  %v956_v25 = vsel %vm828_vm11, %v610_v11, %v892_v17  ;;  %v741_v28 = vadd.f32 %v1481_v35, %v740_v24  ;;  %v1266_v29 = vpop.f32.mrb[16].mxu0  ;;  %vm831_vm13 = vcmp.ge.f32.partialorder %v621_v21, 0.0 }
 0x106   : > { %1054 = vst [vmem:[%s1491_s30 + $0x170] sm:$0xff] %v990_v20  ;;  %v988_v26 = vsel %vm860_vm12, %v738_v12, %v924_v18  ;;  %v1298_v30 = vpop.f32.mrb[16].mxu1  ;;  %1020 = vst [vmem:[%s1491_s30 + $0x60] sm:$0xff] %v956_v25  ;;  %v895_v31 = vmul.f32 0.2, %v621_v21  ;;  %vm863_vm14 = vcmp.ge.f32.partialorder %v749_v22, 0.0  ;;  %v634_v38 = vadd.f32 %v1266_v29, %v1481_v35 }
 0x107   : > { %1052 = vst [vmem:[%s1491_s30 + $0x160] sm:$0xff] %v988_v26  ;;  %v927_v32 = vmul.f32 0.2, %v749_v22  ;;  %vm829_vm15 = vcmp.ge.f32.partialorder %v613_v27, 0.0  ;;  %v893_v33 = vmul.f32 0.2, %v613_v27  ;;  %v762_v39 = vadd.f32 %v1298_v30, %v1481_v35 }
 0x108   : > { %vm861_vm0 = vcmp.ge.f32.partialorder %v741_v28, 0.0  ;;  %v925_v34 = vmul.f32 0.2, %v741_v28  ;;  %v959_v36 = vsel %vm831_vm13, %v621_v21, %v895_v31  ;;  %v625_v40 = vpop.f32.mrb[17].mxu0  ;;  %v753_v41 = vpop.f32.mrb[17].mxu1  ;;  %vm834_vm1 = vcmp.ge.f32.partialorder %v634_v38, 0.0 }
 0x109   : > { %v991_v37 = vsel %vm863_vm14, %v749_v22, %v927_v32  ;;  %1023 = vst [vmem:[%s1491_s30 + $0x78] sm:$0xff] %v959_v36  ;;  %v957_v42 = vsel %vm829_vm15, %v613_v27, %v893_v33  ;;  %v626_v44 = vadd.f32 %v1481_v35, %v625_v40  ;;  %v754_v45 = vadd.f32 %v1481_v35, %v753_v41  ;;  %v1267_v46 = vpop.f32.mrb[18].mxu0  ;;  %v1299_v47 = vpop.f32.mrb[18].mxu1 }
 0x10a   : > { %1055 = vst [vmem:[%s1491_s30 + $0x178] sm:$0xff] %v991_v37  ;;  %v989_v43 = vsel %vm861_vm0, %v741_v28, %v925_v34  ;;  %1021 = vst [vmem:[%s1491_s30 + $0x68] sm:$0xff] %v957_v42  ;;  %v898_v48 = vmul.f32 0.2, %v634_v38  ;;  %vm866_vm2 = vcmp.ge.f32.partialorder %v762_v39, 0.0  ;;  %v637_v54 = vadd.f32 %v1267_v46, %v1481_v35  ;;  %v628_v56 = vpop.f32.mrb[19].mxu0 }
 0x10b   : > { %1053 = vst [vmem:[%s1491_s30 + $0x168] sm:$0xff] %v989_v43  ;;  %v930_v49 = vmul.f32 0.2, %v762_v39  ;;  %vm832_vm3 = vcmp.ge.f32.partialorder %v626_v44, 0.0  ;;  %v896_v50 = vmul.f32 0.2, %v626_v44  ;;  %v765_v55 = vadd.f32 %v1299_v47, %v1481_v35 }
 0x10c   : > { %vm864_vm4 = vcmp.ge.f32.partialorder %v754_v45, 0.0  ;;  %v928_v51 = vmul.f32 0.2, %v754_v45  ;;  %v962_v52 = vsel %vm834_vm1, %v634_v38, %v898_v48  ;;  %v756_v57 = vpop.f32.mrb[19].mxu1  ;;  %v629_v60 = vadd.f32 %v1481_v35, %v628_v56 }
 0x10d   : > { %v994_v53 = vsel %vm866_vm2, %v762_v39, %v930_v49  ;;  %1026 = vst [vmem:[%s1491_s30 + $0x90] sm:$0xff] %v962_v52  ;;  %v960_v58 = vsel %vm832_vm3, %v626_v44, %v896_v50  ;;  %v757_v61 = vadd.f32 %v1481_v35, %v756_v57  ;;  %v1270_v62 = vpop.f32.mrb[20].mxu0  ;;  %vm835_vm5 = vcmp.ge.f32.partialorder %v637_v54, 0.0 }
 0x10e   : > { %1058 = vst [vmem:[%s1491_s30 + $0x190] sm:$0xff] %v994_v53  ;;  %v992_v59 = vsel %vm864_vm4, %v754_v45, %v928_v51  ;;  %v1302_v63 = vpop.f32.mrb[20].mxu1  ;;  %1024 = vst [vmem:[%s1491_s30 + $0x80] sm:$0xff] %v960_v58  ;;  %v899_v0 = vmul.f32 0.2, %v637_v54  ;;  %vm867_vm6 = vcmp.ge.f32.partialorder %v765_v55, 0.0  ;;  %v650_v6 = vadd.f32 %v1270_v62, %v1481_v35 }
 0x10f   : > { %1056 = vst [vmem:[%s1491_s30 + $0x180] sm:$0xff] %v992_v59  ;;  %v931_v1 = vmul.f32 0.2, %v765_v55  ;;  %vm833_vm7 = vcmp.ge.f32.partialorder %v629_v60, 0.0  ;;  %v897_v2 = vmul.f32 0.2, %v629_v60  ;;  %v778_v7 = vadd.f32 %v1302_v63, %v1481_v35 }
 0x110   : > { %vm865_vm8 = vcmp.ge.f32.partialorder %v757_v61, 0.0  ;;  %v929_v3 = vmul.f32 0.2, %v757_v61  ;;  %v963_v4 = vsel %vm835_vm5, %v637_v54, %v899_v0  ;;  %v641_v8 = vpop.f32.mrb[21].mxu0  ;;  %v769_v9 = vpop.f32.mrb[21].mxu1  ;;  %vm838_vm9 = vcmp.ge.f32.partialorder %v650_v6, 0.0 }
 0x111   : > { %v995_v5 = vsel %vm867_vm6, %v765_v55, %v931_v1  ;;  %1027 = vst [vmem:[%s1491_s30 + $0x98] sm:$0xff] %v963_v4  ;;  %v961_v10 = vsel %vm833_vm7, %v629_v60, %v897_v2  ;;  %v642_v12 = vadd.f32 %v1481_v35, %v641_v8  ;;  %v770_v13 = vadd.f32 %v1481_v35, %v769_v9  ;;  %v1271_v14 = vpop.f32.mrb[22].mxu0  ;;  %v1303_v15 = vpop.f32.mrb[22].mxu1 }
 0x112   : > { %1059 = vst [vmem:[%s1491_s30 + $0x198] sm:$0xff] %v995_v5  ;;  %v993_v11 = vsel %vm865_vm8, %v757_v61, %v929_v3  ;;  %1025 = vst [vmem:[%s1491_s30 + $0x88] sm:$0xff] %v961_v10  ;;  %v902_v16 = vmul.f32 0.2, %v650_v6  ;;  %vm870_vm10 = vcmp.ge.f32.partialorder %v778_v7, 0.0  ;;  %v653_v22 = vadd.f32 %v1271_v14, %v1481_v35  ;;  %v644_v24 = vpop.f32.mrb[23].mxu0 }
 0x113   : > { %1057 = vst [vmem:[%s1491_s30 + $0x188] sm:$0xff] %v993_v11  ;;  %v934_v17 = vmul.f32 0.2, %v778_v7  ;;  %vm836_vm11 = vcmp.ge.f32.partialorder %v642_v12, 0.0  ;;  %v900_v18 = vmul.f32 0.2, %v642_v12  ;;  %v781_v23 = vadd.f32 %v1303_v15, %v1481_v35 }
 0x114   : > { %vm868_vm12 = vcmp.ge.f32.partialorder %v770_v13, 0.0  ;;  %v932_v19 = vmul.f32 0.2, %v770_v13  ;;  %v966_v20 = vsel %vm838_vm9, %v650_v6, %v902_v16  ;;  %v772_v25 = vpop.f32.mrb[23].mxu1  ;;  %v645_v28 = vadd.f32 %v1481_v35, %v644_v24 }
 0x115   : > { %v998_v21 = vsel %vm870_vm10, %v778_v7, %v934_v17  ;;  %1030 = vst [vmem:[%s1491_s30 + $0xb0] sm:$0xff] %v966_v20  ;;  %v964_v26 = vsel %vm836_vm11, %v642_v12, %v900_v18  ;;  %v773_v29 = vadd.f32 %v1481_v35, %v772_v25  ;;  %v1274_v30 = vpop.f32.mrb[24].mxu0  ;;  %vm839_vm13 = vcmp.ge.f32.partialorder %v653_v22, 0.0 }
 0x116   : > { %1062 = vst [vmem:[%s1491_s30 + $0x1b0] sm:$0xff] %v998_v21  ;;  %v996_v27 = vsel %vm868_vm12, %v770_v13, %v932_v19  ;;  %v1306_v31 = vpop.f32.mrb[24].mxu1  ;;  %1028 = vst [vmem:[%s1491_s30 + $0xa0] sm:$0xff] %v964_v26  ;;  %v903_v32 = vmul.f32 0.2, %v653_v22  ;;  %vm871_vm14 = vcmp.ge.f32.partialorder %v781_v23, 0.0  ;;  %v666_v39 = vadd.f32 %v1274_v30, %v1481_v35 }
 0x117   : > { %1060 = vst [vmem:[%s1491_s30 + $0x1a0] sm:$0xff] %v996_v27  ;;  %v935_v33 = vmul.f32 0.2, %v781_v23  ;;  %vm837_vm15 = vcmp.ge.f32.partialorder %v645_v28, 0.0  ;;  %v901_v34 = vmul.f32 0.2, %v645_v28  ;;  %v794_v40 = vadd.f32 %v1306_v31, %v1481_v35 }
 0x118   : > { %vm869_vm0 = vcmp.ge.f32.partialorder %v773_v29, 0.0  ;;  %v933_v36 = vmul.f32 0.2, %v773_v29  ;;  %v967_v37 = vsel %vm839_vm13, %v653_v22, %v903_v32  ;;  %v657_v41 = vpop.f32.mrb[25].mxu0  ;;  %v785_v42 = vpop.f32.mrb[25].mxu1  ;;  %vm842_vm1 = vcmp.ge.f32.partialorder %v666_v39, 0.0 }
 0x119   : > { %v999_v38 = vsel %vm871_vm14, %v781_v23, %v935_v33  ;;  %1031 = vst [vmem:[%s1491_s30 + $0xb8] sm:$0xff] %v967_v37  ;;  %v965_v43 = vsel %vm837_vm15, %v645_v28, %v901_v34  ;;  %v658_v45 = vadd.f32 %v1481_v35, %v657_v41  ;;  %v786_v46 = vadd.f32 %v1481_v35, %v785_v42  ;;  %v1275_v47 = vpop.f32.mrb[26].mxu0  ;;  %v1307_v48 = vpop.f32.mrb[26].mxu1 }
 0x11a   : > { %1063 = vst [vmem:[%s1491_s30 + $0x1b8] sm:$0xff] %v999_v38  ;;  %v997_v44 = vsel %vm869_vm0, %v773_v29, %v933_v36  ;;  %1029 = vst [vmem:[%s1491_s30 + $0xa8] sm:$0xff] %v965_v43  ;;  %v906_v49 = vmul.f32 0.2, %v666_v39  ;;  %vm874_vm2 = vcmp.ge.f32.partialorder %v794_v40, 0.0  ;;  %v669_v55 = vadd.f32 %v1275_v47, %v1481_v35  ;;  %v660_v57 = vpop.f32.mrb[27].mxu0 }
 0x11b   : > { %1061 = vst [vmem:[%s1491_s30 + $0x1a8] sm:$0xff] %v997_v44  ;;  %v938_v50 = vmul.f32 0.2, %v794_v40  ;;  %vm840_vm3 = vcmp.ge.f32.partialorder %v658_v45, 0.0  ;;  %v904_v51 = vmul.f32 0.2, %v658_v45  ;;  %v797_v56 = vadd.f32 %v1307_v48, %v1481_v35 }
 0x11c   : > { %vm872_vm4 = vcmp.ge.f32.partialorder %v786_v46, 0.0  ;;  %v936_v52 = vmul.f32 0.2, %v786_v46  ;;  %v970_v53 = vsel %vm842_vm1, %v666_v39, %v906_v49  ;;  %v788_v58 = vpop.f32.mrb[27].mxu1  ;;  %v661_v61 = vadd.f32 %v1481_v35, %v660_v57 }
 0x11d   : > { %v1002_v54 = vsel %vm874_vm2, %v794_v40, %v938_v50  ;;  %1034 = vst [vmem:[%s1491_s30 + $0xd0] sm:$0xff] %v970_v53  ;;  %v968_v59 = vsel %vm840_vm3, %v658_v45, %v904_v51  ;;  %v789_v62 = vadd.f32 %v1481_v35, %v788_v58  ;;  %v1278_v63 = vpop.f32.mrb[28].mxu0  ;;  %vm843_vm5 = vcmp.ge.f32.partialorder %v669_v55, 0.0 }
 0x11e   : > { %1066 = vst [vmem:[%s1491_s30 + $0x1d0] sm:$0xff] %v1002_v54  ;;  %v1000_v60 = vsel %vm872_vm4, %v786_v46, %v936_v52  ;;  %v1310_v0 = vpop.f32.mrb[28].mxu1  ;;  %1032 = vst [vmem:[%s1491_s30 + $0xc0] sm:$0xff] %v968_v59  ;;  %v907_v1 = vmul.f32 0.2, %v669_v55  ;;  %vm875_vm6 = vcmp.ge.f32.partialorder %v797_v56, 0.0  ;;  %v682_v7 = vadd.f32 %v1278_v63, %v1481_v35 }
 0x11f   : > { %1064 = vst [vmem:[%s1491_s30 + $0x1c0] sm:$0xff] %v1000_v60  ;;  %v939_v2 = vmul.f32 0.2, %v797_v56  ;;  %vm841_vm7 = vcmp.ge.f32.partialorder %v661_v61, 0.0  ;;  %v905_v3 = vmul.f32 0.2, %v661_v61  ;;  %v810_v8 = vadd.f32 %v1310_v0, %v1481_v35 }
 0x120   : > { %vm873_vm8 = vcmp.ge.f32.partialorder %v789_v62, 0.0  ;;  %v937_v4 = vmul.f32 0.2, %v789_v62  ;;  %v971_v5 = vsel %vm843_vm5, %v669_v55, %v907_v1  ;;  %v673_v9 = vpop.f32.mrb[29].mxu0  ;;  %v801_v10 = vpop.f32.mrb[29].mxu1  ;;  %vm846_vm9 = vcmp.ge.f32.partialorder %v682_v7, 0.0 }
 0x121   : > { %v1003_v6 = vsel %vm875_vm6, %v797_v56, %v939_v2  ;;  %1035 = vst [vmem:[%s1491_s30 + $0xd8] sm:$0xff] %v971_v5  ;;  %v969_v11 = vsel %vm841_vm7, %v661_v61, %v905_v3  ;;  %v674_v13 = vadd.f32 %v1481_v35, %v673_v9  ;;  %v802_v14 = vadd.f32 %v1481_v35, %v801_v10  ;;  %v1279_v15 = vpop.f32.mrb[30].mxu0  ;;  %v1311_v16 = vpop.f32.mrb[30].mxu1 }
 0x122   : > { %1067 = vst [vmem:[%s1491_s30 + $0x1d8] sm:$0xff] %v1003_v6  ;;  %v1001_v12 = vsel %vm873_vm8, %v789_v62, %v937_v4  ;;  %1033 = vst [vmem:[%s1491_s30 + $0xc8] sm:$0xff] %v969_v11  ;;  %v910_v17 = vmul.f32 0.2, %v682_v7  ;;  %vm878_vm10 = vcmp.ge.f32.partialorder %v810_v8, 0.0  ;;  %v685_v23 = vadd.f32 %v1279_v15, %v1481_v35  ;;  %v676_v25 = vpop.f32.mrb[31].mxu0 }
 0x123   : > { %1065 = vst [vmem:[%s1491_s30 + $0x1c8] sm:$0xff] %v1001_v12  ;;  %v942_v18 = vmul.f32 0.2, %v810_v8  ;;  %vm844_vm11 = vcmp.ge.f32.partialorder %v674_v13, 0.0  ;;  %v908_v19 = vmul.f32 0.2, %v674_v13  ;;  %v813_v24 = vadd.f32 %v1311_v16, %v1481_v35 }
 0x124   : > { %vm876_vm12 = vcmp.ge.f32.partialorder %v802_v14, 0.0  ;;  %v940_v20 = vmul.f32 0.2, %v802_v14  ;;  %v974_v21 = vsel %vm846_vm9, %v682_v7, %v910_v17  ;;  %v804_v26 = vpop.f32.mrb[31].mxu1  ;;  %v677_v29 = vadd.f32 %v1481_v35, %v676_v25 }
 0x125   : > { %v1006_v22 = vsel %vm878_vm10, %v810_v8, %v942_v18  ;;  %1038 = vst [vmem:[%s1491_s30 + $0xf0] sm:$0xff] %v974_v21  ;;  %v972_v27 = vsel %vm844_vm11, %v674_v13, %v908_v19  ;;  %v805_v30 = vadd.f32 %v1481_v35, %v804_v26  ;;  %vm847_vm13 = vcmp.ge.f32.partialorder %v685_v23, 0.0 }
 0x126   : > { %1070 = vst [vmem:[%s1491_s30 + $0x1f0] sm:$0xff] %v1006_v22  ;;  %v1004_v28 = vsel %vm876_vm12, %v802_v14, %v940_v20  ;;  %1036 = vst [vmem:[%s1491_s30 + $0xe0] sm:$0xff] %v972_v27  ;;  %v911_v31 = vmul.f32 0.2, %v685_v23  ;;  %vm879_vm14 = vcmp.ge.f32.partialorder %v813_v24, 0.0  ;;  %vm845_vm15 = vcmp.ge.f32.partialorder %v677_v29, 0.0 }
 0x127   : > { %1068 = vst [vmem:[%s1491_s30 + $0x1e0] sm:$0xff] %v1004_v28  ;;  %v943_v32 = vmul.f32 0.2, %v813_v24  ;;  %v909_v33 = vmul.f32 0.2, %v677_v29  ;;  %vm877_vm0 = vcmp.ge.f32.partialorder %v805_v30, 0.0 }
 0x128   : > { %v941_v34 = vmul.f32 0.2, %v805_v30  ;;  %v975_v36 = vsel %vm847_vm13, %v685_v23, %v911_v31 }
 0x129   : > { %v1007_v37 = vsel %vm879_vm14, %v813_v24, %v943_v32  ;;  %1039 = vst [vmem:[%s1491_s30 + $0xf8] sm:$0xff] %v975_v36  ;;  %v973_v38 = vsel %vm845_vm15, %v677_v29, %v909_v33 }
 0x12a   : > { %1071 = vst [vmem:[%s1491_s30 + $0x1f8] sm:$0xff] %v1007_v37  ;;  %v1005_v39 = vsel %vm877_vm0, %v805_v30, %v941_v34  ;;  %1037 = vst [vmem:[%s1491_s30 + $0xe8] sm:$0xff] %v973_v38 }
 0x12b   : > { %1069 = vst [vmem:[%s1491_s30 + $0x1e8] sm:$0xff] %v1005_v39 }
 0x12c PF: > { %s13_s12 = sadd.s32 1, %s1367_s12  }
 0x12d   : > { %p10_p4 = scmp.ge.s32.totalorder %s13_s12, 10  }
 0x12f   :  { %12 = sbr.rel (!%p10_p4) target bundleno = 1 (0x1), region = 62 }

// kernel: discriminator_forward.5
= control target key start
LH: loop header
LB: loop body
LE: loop exit
PB: predicated region body
PF: predicated region fallthrough
CT: control target
= control target key end

     0   :  { %v2549_v0 = vmov 0   ;;  %s5480_s1 = inlined_call_operand.vmem [shape: bf16[256,128], index: 1, kind: input, shape index: {}]   ;;  %s5481_s0 = inlined_call_operand.vmem [shape: bf16[840,256], index: 0, kind: input, shape index: {}]   ;;  %s5482_s2 = inlined_call_operand.vmem [shape: f32[1,128], index: 2, kind: input, shape index: {}]   ;;  %s5483_s3 = inlined_call_operand.vmem [shape: f32[1,128], index: 3, kind: input, shape index: {}]   ;;  %s5484_s4 = inlined_call_operand.vmem [shape: f32[840,128], index: 4, kind: output, shape index: {}]  }
   0x1   :  { %778 = vmatprep.subr.bf16.mxu0 %v2549_v0  ;;  %v2373_v1 = vld [vmem:[%s5480_s1] sm:$0xff]   ;;  %2340 = vmatprep.subr.bf16.mxu1 %v2549_v0  ;;  %v2374_v2 = vld [vmem:[%s5480_s1 + $0x8] sm:$0xff]   ;;  %v2375_v3 = vld [vmem:[%s5480_s1 + $0x10] sm:$0xff]  }
   0x2   :  { %779 = vmatpush1.bf16.msra.mxu0 %v2373_v1  ;;  %2356 = vmatpush1.bf16.msra.mxu1 %v2373_v1  ;;  %v2376_v4 = vld [vmem:[%s5480_s1 + $0x18] sm:$0xff]   ;;  %v2377_v5 = vld [vmem:[%s5480_s1 + $0x20] sm:$0xff]   ;;  %v2378_v7 = vld [vmem:[%s5480_s1 + $0x28] sm:$0xff]  }
   0x3   :  { %780 = vmatprep.subr.bf16.mxu0 %v2549_v0  ;;  %2341 = vmatprep.subr.bf16.mxu1 %v2549_v0  ;;  %v2391_v6 = vld [vmem:[%s5481_s0 + $0x4] ss:$8 sps:$4 sm:$0xff]   ;;  %v2379_v8 = vld [vmem:[%s5480_s1 + $0x30] sm:$0xff]   ;;  %v2380_v9 = vld [vmem:[%s5480_s1 + $0x38] sm:$0xff]  }
   0x4   :  { %810 = vmatprep.mubr.bf16.mxu0 %v2391_v6  ;;  %v2381_v10 = vld [vmem:[%s5480_s1 + $0x40] sm:$0xff]   ;;  %v2382_v11 = vld [vmem:[%s5480_s1 + $0x48] sm:$0xff]   ;;  %v2383_v12 = vld [vmem:[%s5480_s1 + $0x50] sm:$0xff]  }
   0x5   :  { %v2433_v13 = vld [vmem:[%s5481_s0 + $0x1b4] ss:$8 sps:$4 sm:$0xff]   ;;  %v2385_v15 = vld [vmem:[%s5480_s1 + $0x60] sm:$0xff]   ;;  %v2386_v16 = vld [vmem:[%s5480_s1 + $0x68] sm:$0xff]  }
   0x6   :  { %781 = vmatpush1.bf16.msra.mxu0 %v2374_v2  ;;  %2357 = vmatpush1.bf16.msra.mxu1 %v2374_v2  ;;  %v2384_v14 = vld [vmem:[%s5480_s1 + $0x58] sm:$0xff]   ;;  %v2387_v17 = vld [vmem:[%s5480_s1 + $0x70] sm:$0xff]   ;;  %v2389_v19 = vld [vmem:[%s5481_s0] ss:$8 sps:$4 sm:$0xff]  }
   0x7   :  { %782 = vmatprep.subr.bf16.mxu0 %v2549_v0  ;;  %2342 = vmatprep.subr.bf16.mxu1 %v2549_v0  ;;  %v2388_v18 = vld [vmem:[%s5480_s1 + $0x78] sm:$0xff]   ;;  %v2437_v22 = vld [vmem:[%s5481_s0 + $0x1c4] ss:$8 sps:$4 sm:$0xff]   ;;  %v2439_v24 = vld [vmem:[%s5481_s0 + $0x1c0] ss:$8 sps:$4 sm:$0xff]  }
   0x8   :  { %1026 = vmatprep.mubr.bf16.mxu1 %v2433_v13  ;;  %v2431_v20 = vld [vmem:[%s5481_s0 + $0x1b0] ss:$8 sps:$4 sm:$0xff]   ;;  %v2392_v21 = vld [vmem:[%s5481_s0 + $0x14] ss:$8 sps:$4 sm:$0xff]   ;;  %v2395_v25 = vld [vmem:[%s5481_s0 + $0x24] ss:$8 sps:$4 sm:$0xff]  }
   0x9   :  { %v2394_v23 = vld [vmem:[%s5481_s0 + $0x10] ss:$8 sps:$4 sm:$0xff]   ;;  %v2443_v26 = vld [vmem:[%s5481_s0 + $0x1d4] ss:$8 sps:$4 sm:$0xff]   ;;  %v2397_v27 = vld [vmem:[%s5481_s0 + $0x20] ss:$8 sps:$4 sm:$0xff]  }
   0xa   :  { %783 = vmatpush1.bf16.msra.mxu0 %v2375_v3  ;;  %2358 = vmatpush1.bf16.msra.mxu1 %v2375_v3  ;;  %v2445_v28 = vld [vmem:[%s5481_s0 + $0x1d0] ss:$8 sps:$4 sm:$0xff]   ;;  %v2398_v29 = vld [vmem:[%s5481_s0 + $0x34] ss:$8 sps:$4 sm:$0xff]   ;;  %v2449_v30 = vld [vmem:[%s5481_s0 + $0x1e4] ss:$8 sps:$4 sm:$0xff]  }
   0xb   :  { %784 = vmatprep.subr.bf16.mxu0 %v2549_v0  ;;  %2343 = vmatprep.subr.bf16.mxu1 %v2549_v0  ;;  %v2400_v31 = vld [vmem:[%s5481_s0 + $0x30] ss:$8 sps:$4 sm:$0xff]   ;;  %v2451_v32 = vld [vmem:[%s5481_s0 + $0x1e0] ss:$8 sps:$4 sm:$0xff]   ;;  %v2401_v33 = vld [vmem:[%s5481_s0 + $0x44] ss:$8 sps:$4 sm:$0xff]  }
   0xc   :  { %v2455_v34 = vld [vmem:[%s5481_s0 + $0x1f4] ss:$8 sps:$4 sm:$0xff]   ;;  %v2403_v35 = vld [vmem:[%s5481_s0 + $0x40] ss:$8 sps:$4 sm:$0xff]   ;;  %v2457_v36 = vld [vmem:[%s5481_s0 + $0x1f0] ss:$8 sps:$4 sm:$0xff]  }
   0xd   :  { %v2404_v37 = vld [vmem:[%s5481_s0 + $0x54] ss:$8 sps:$4 sm:$0xff]   ;;  %v2461_v38 = vld [vmem:[%s5481_s0 + $0x204] ss:$8 sps:$4 sm:$0xff]   ;;  %v2406_v39 = vld [vmem:[%s5481_s0 + $0x50] ss:$8 sps:$4 sm:$0xff]  }
   0xe   :  { %785 = vmatpush1.bf16.msra.mxu0 %v2376_v4  ;;  %2359 = vmatpush1.bf16.msra.mxu1 %v2376_v4  ;;  %v2463_v40 = vld [vmem:[%s5481_s0 + $0x200] ss:$8 sps:$4 sm:$0xff]   ;;  %v2407_v41 = vld [vmem:[%s5481_s0 + $0x64] ss:$8 sps:$4 sm:$0xff]   ;;  %v2467_v42 = vld [vmem:[%s5481_s0 + $0x214] ss:$8 sps:$4 sm:$0xff]  }
   0xf   :  { %786 = vmatprep.subr.bf16.mxu0 %v2549_v0  ;;  %2344 = vmatprep.subr.bf16.mxu1 %v2549_v0  ;;  %v2409_v43 = vld [vmem:[%s5481_s0 + $0x60] ss:$8 sps:$4 sm:$0xff]   ;;  %v2469_v44 = vld [vmem:[%s5481_s0 + $0x210] ss:$8 sps:$4 sm:$0xff]   ;;  %v2410_v45 = vld [vmem:[%s5481_s0 + $0x74] ss:$8 sps:$4 sm:$0xff]  }
  0x10   :  { %v2473_v46 = vld [vmem:[%s5481_s0 + $0x224] ss:$8 sps:$4 sm:$0xff]   ;;  %v2412_v47 = vld [vmem:[%s5481_s0 + $0x70] ss:$8 sps:$4 sm:$0xff]   ;;  %v2475_v48 = vld [vmem:[%s5481_s0 + $0x220] ss:$8 sps:$4 sm:$0xff]  }
  0x11   :  { %v2413_v49 = vld [vmem:[%s5481_s0 + $0x84] ss:$8 sps:$4 sm:$0xff]   ;;  %v2479_v50 = vld [vmem:[%s5481_s0 + $0x234] ss:$8 sps:$4 sm:$0xff]   ;;  %v2415_v51 = vld [vmem:[%s5481_s0 + $0x80] ss:$8 sps:$4 sm:$0xff]  }
  0x12   :  { %787 = vmatpush1.bf16.msra.mxu0 %v2377_v5  ;;  %2360 = vmatpush1.bf16.msra.mxu1 %v2377_v5  ;;  %v2481_v52 = vld [vmem:[%s5481_s0 + $0x230] ss:$8 sps:$4 sm:$0xff]   ;;  %v2416_v53 = vld [vmem:[%s5481_s0 + $0x94] ss:$8 sps:$4 sm:$0xff]   ;;  %v2485_v54 = vld [vmem:[%s5481_s0 + $0x244] ss:$8 sps:$4 sm:$0xff]  }
  0x13   :  { %788 = vmatprep.subr.bf16.mxu0 %v2549_v0  ;;  %2345 = vmatprep.subr.bf16.mxu1 %v2549_v0  ;;  %v2418_v55 = vld [vmem:[%s5481_s0 + $0x90] ss:$8 sps:$4 sm:$0xff]   ;;  %v2487_v56 = vld [vmem:[%s5481_s0 + $0x240] ss:$8 sps:$4 sm:$0xff]   ;;  %v2419_v57 = vld [vmem:[%s5481_s0 + $0xa4] ss:$8 sps:$4 sm:$0xff]  }
  0x14   :  { %v2491_v58 = vld [vmem:[%s5481_s0 + $0x254] ss:$8 sps:$4 sm:$0xff]   ;;  %v2421_v59 = vld [vmem:[%s5481_s0 + $0xa0] ss:$8 sps:$4 sm:$0xff]   ;;  %v2493_v60 = vld [vmem:[%s5481_s0 + $0x250] ss:$8 sps:$4 sm:$0xff]  }
  0x15   :  { %v2422_v61 = vld [vmem:[%s5481_s0 + $0xb4] ss:$8 sps:$4 sm:$0xff]   ;;  %v2497_v62 = vld [vmem:[%s5481_s0 + $0x264] ss:$8 sps:$4 sm:$0xff]   ;;  %v2424_v63 = vld [vmem:[%s5481_s0 + $0xb0] ss:$8 sps:$4 sm:$0xff]  }
  0x16   :  { %789 = vmatpush1.bf16.msra.mxu0 %v2378_v7  ;;  %2361 = vmatpush1.bf16.msra.mxu1 %v2378_v7  ;;  %v2425_v1 = vld [vmem:[%s5481_s0 + $0xc4] ss:$8 sps:$4 sm:$0xff]   ;;  %v2503_v2 = vld [vmem:[%s5481_s0 + $0x274] ss:$8 sps:$4 sm:$0xff]   ;;  %v2427_v3 = vld [vmem:[%s5481_s0 + $0xc0] ss:$8 sps:$4 sm:$0xff]  }
  0x17   :  { %790 = vmatprep.subr.bf16.mxu0 %v2549_v0  ;;  %2346 = vmatprep.subr.bf16.mxu1 %v2549_v0  ;;  %v2505_v4 = vld [vmem:[%s5481_s0 + $0x270] ss:$8 sps:$4 sm:$0xff]   ;;  %v2428_v5 = vld [vmem:[%s5481_s0 + $0xd4] ss:$8 sps:$4 sm:$0xff]   ;;  %v2509_v6 = vld [vmem:[%s5481_s0 + $0x284] ss:$8 sps:$4 sm:$0xff]  }
  0x18   :  { %v2430_v7 = vld [vmem:[%s5481_s0 + $0xd0] ss:$8 sps:$4 sm:$0xff]   ;;  %v2440_v13 = vld [vmem:[%s5481_s0 + $0xf4] ss:$8 sps:$4 sm:$0xff]  }
  0x1a   :  { %791 = vmatpush1.bf16.msra.mxu0 %v2379_v8  ;;  %2362 = vmatpush1.bf16.msra.mxu1 %v2379_v8  ;;  %v2511_v8 = vld [vmem:[%s5481_s0 + $0x280] ss:$8 sps:$4 sm:$0xff]  }
  0x1b   :  { %792 = vmatprep.subr.bf16.mxu0 %v2549_v0  ;;  %2347 = vmatprep.subr.bf16.mxu1 %v2549_v0 }
  0x1e   :  { %793 = vmatpush1.bf16.msra.mxu0 %v2380_v9  ;;  %2363 = vmatpush1.bf16.msra.mxu1 %v2380_v9  ;;  %v2434_v9 = vld [vmem:[%s5481_s0 + $0xe4] ss:$8 sps:$4 sm:$0xff]  }
  0x1f   :  { %794 = vmatprep.subr.bf16.mxu0 %v2549_v0  ;;  %2348 = vmatprep.subr.bf16.mxu1 %v2549_v0 }
  0x22   :  { %795 = vmatpush1.bf16.msra.mxu0 %v2381_v10  ;;  %2364 = vmatpush1.bf16.msra.mxu1 %v2381_v10  ;;  %v2512_v10 = vld [vmem:[%s5481_s0 + $0x294] ss:$8 sps:$4 sm:$0xff]  }
  0x23   :  { %796 = vmatprep.subr.bf16.mxu0 %v2549_v0  ;;  %2349 = vmatprep.subr.bf16.mxu1 %v2549_v0 }
  0x26   :  { %797 = vmatpush1.bf16.msra.mxu0 %v2382_v11  ;;  %2365 = vmatpush1.bf16.msra.mxu1 %v2382_v11  ;;  %v2436_v11 = vld [vmem:[%s5481_s0 + $0xe0] ss:$8 sps:$4 sm:$0xff]  }
  0x27   :  { %798 = vmatprep.subr.bf16.mxu0 %v2549_v0  ;;  %2350 = vmatprep.subr.bf16.mxu1 %v2549_v0 }
  0x2a   :  { %799 = vmatpush1.bf16.msra.mxu0 %v2383_v12  ;;  %2366 = vmatpush1.bf16.msra.mxu1 %v2383_v12  ;;  %v2514_v12 = vld [vmem:[%s5481_s0 + $0x290] ss:$8 sps:$4 sm:$0xff]  }
  0x2b   :  { %800 = vmatprep.subr.bf16.mxu0 %v2549_v0  ;;  %2351 = vmatprep.subr.bf16.mxu1 %v2549_v0 }
  0x2e   :  { %801 = vmatpush1.bf16.msra.mxu0 %v2384_v14  ;;  %2367 = vmatpush1.bf16.msra.mxu1 %v2384_v14  ;;  %v2515_v14 = vld [vmem:[%s5481_s0 + $0x2a4] ss:$8 sps:$4 sm:$0xff]  }
  0x2f   :  { %802 = vmatprep.subr.bf16.mxu0 %v2549_v0  ;;  %2352 = vmatprep.subr.bf16.mxu1 %v2549_v0 }
  0x32   :  { %803 = vmatpush1.bf16.msra.mxu0 %v2385_v15  ;;  %2368 = vmatpush1.bf16.msra.mxu1 %v2385_v15  ;;  %v2442_v15 = vld [vmem:[%s5481_s0 + $0xf0] ss:$8 sps:$4 sm:$0xff]  }
  0x33   :  { %804 = vmatprep.subr.bf16.mxu0 %v2549_v0  ;;  %2353 = vmatprep.subr.bf16.mxu1 %v2549_v0 }
  0x36   :  { %805 = vmatpush1.bf16.msra.mxu0 %v2386_v16  ;;  %2369 = vmatpush1.bf16.msra.mxu1 %v2386_v16  ;;  %v2517_v16 = vld [vmem:[%s5481_s0 + $0x2a0] ss:$8 sps:$4 sm:$0xff]  }
  0x37   :  { %806 = vmatprep.subr.bf16.mxu0 %v2549_v0  ;;  %2354 = vmatprep.subr.bf16.mxu1 %v2549_v0 }
  0x3a   :  { %807 = vmatpush1.bf16.msra.mxu0 %v2387_v17  ;;  %2370 = vmatpush1.bf16.msra.mxu1 %v2387_v17  ;;  %v2446_v17 = vld [vmem:[%s5481_s0 + $0x104] ss:$8 sps:$4 sm:$0xff]  }
  0x3b   :  { %808 = vmatprep.subr.bf16.mxu0 %v2549_v0  ;;  %2355 = vmatprep.subr.bf16.mxu1 %v2549_v0  ;;  %v2499_v0 = vld [vmem:[%s5481_s0 + $0x260] ss:$8 sps:$4 sm:$0xff]  }
  0x3e   :  { %809 = vmatpush1.bf16.msra.mxu0 %v2388_v18  ;;  %2371 = vmatpush1.bf16.msra.mxu1 %v2388_v18  ;;  %v2518_v18 = vld [vmem:[%s5481_s0 + $0x2b4] ss:$8 sps:$4 sm:$0xff]  }
  0x41   :  { %811 = vmatmul.mubr.bf16.vlgmr.msra.gmra.mrb[0].mxu0 %v2389_v19  ;;  %1027 = vmatmul.mubr.bf16.vlgmr.msra.gmra.mrb[0].mxu1 %v2431_v20  ;;  %v2448_v19 = vld [vmem:[%s5481_s0 + $0x100] ss:$8 sps:$4 sm:$0xff]   ;;  %v2520_v20 = vld [vmem:[%s5481_s0 + $0x2b0] ss:$8 sps:$4 sm:$0xff]  }
  0x42   :  { %818 = vmatprep.mubr.bf16.mxu0 %v2392_v21  ;;  %1034 = vmatprep.mubr.bf16.mxu1 %v2437_v22  ;;  %v2452_v21 = vld [vmem:[%s5481_s0 + $0x114] ss:$8 sps:$4 sm:$0xff]   ;;  %v2521_v22 = vld [vmem:[%s5481_s0 + $0x2c4] ss:$8 sps:$4 sm:$0xff]  }
  0x49   :  { %819 = vmatmul.mubr.bf16.gmra.mrb[4].mxu0 %v2394_v23  ;;  %1035 = vmatmul.mubr.bf16.gmra.mrb[4].mxu1 %v2439_v24  ;;  %v2454_v23 = vld [vmem:[%s5481_s0 + $0x110] ss:$8 sps:$4 sm:$0xff]   ;;  %v2523_v24 = vld [vmem:[%s5481_s0 + $0x2c0] ss:$8 sps:$4 sm:$0xff]  }
  0x4a   :  { %826 = vmatprep.mubr.bf16.mxu0 %v2395_v25  ;;  %1042 = vmatprep.mubr.bf16.mxu1 %v2443_v26  ;;  %v2458_v25 = vld [vmem:[%s5481_s0 + $0x124] ss:$8 sps:$4 sm:$0xff]   ;;  %v2524_v26 = vld [vmem:[%s5481_s0 + $0x2d4] ss:$8 sps:$4 sm:$0xff]  }
  0x51   :  { %827 = vmatmul.mubr.bf16.gmra.mrb[8].mxu0 %v2397_v27  ;;  %1043 = vmatmul.mubr.bf16.gmra.mrb[8].mxu1 %v2445_v28  ;;  %v2460_v27 = vld [vmem:[%s5481_s0 + $0x120] ss:$8 sps:$4 sm:$0xff]   ;;  %v2526_v28 = vld [vmem:[%s5481_s0 + $0x2d0] ss:$8 sps:$4 sm:$0xff]  }
  0x52   :  { %834 = vmatprep.mubr.bf16.mxu0 %v2398_v29  ;;  %1050 = vmatprep.mubr.bf16.mxu1 %v2449_v30  ;;  %v2464_v29 = vld [vmem:[%s5481_s0 + $0x134] ss:$8 sps:$4 sm:$0xff]   ;;  %v2527_v30 = vld [vmem:[%s5481_s0 + $0x2e4] ss:$8 sps:$4 sm:$0xff]  }
  0x59   :  { %835 = vmatmul.mubr.bf16.gmra.mrb[12].mxu0 %v2400_v31  ;;  %1051 = vmatmul.mubr.bf16.gmra.mrb[12].mxu1 %v2451_v32  ;;  %v2466_v31 = vld [vmem:[%s5481_s0 + $0x130] ss:$8 sps:$4 sm:$0xff]   ;;  %v2529_v32 = vld [vmem:[%s5481_s0 + $0x2e0] ss:$8 sps:$4 sm:$0xff]  }
  0x5a   :  { %842 = vmatprep.mubr.bf16.mxu0 %v2401_v33  ;;  %1058 = vmatprep.mubr.bf16.mxu1 %v2455_v34  ;;  %v2470_v33 = vld [vmem:[%s5481_s0 + $0x144] ss:$8 sps:$4 sm:$0xff]   ;;  %v2530_v34 = vld [vmem:[%s5481_s0 + $0x2f4] ss:$8 sps:$4 sm:$0xff]  }
  0x61   :  { %843 = vmatmul.mubr.bf16.gmra.mrb[16].mxu0 %v2403_v35  ;;  %1059 = vmatmul.mubr.bf16.gmra.mrb[16].mxu1 %v2457_v36  ;;  %v2472_v35 = vld [vmem:[%s5481_s0 + $0x140] ss:$8 sps:$4 sm:$0xff]   ;;  %v2532_v36 = vld [vmem:[%s5481_s0 + $0x2f0] ss:$8 sps:$4 sm:$0xff]  }
  0x62   :  { %850 = vmatprep.mubr.bf16.mxu0 %v2404_v37  ;;  %1066 = vmatprep.mubr.bf16.mxu1 %v2461_v38  ;;  %v2476_v37 = vld [vmem:[%s5481_s0 + $0x154] ss:$8 sps:$4 sm:$0xff]   ;;  %v2533_v38 = vld [vmem:[%s5481_s0 + $0x304] ss:$8 sps:$4 sm:$0xff]  }
  0x69   :  { %851 = vmatmul.mubr.bf16.gmra.mrb[20].mxu0 %v2406_v39  ;;  %1067 = vmatmul.mubr.bf16.gmra.mrb[20].mxu1 %v2463_v40  ;;  %v2478_v39 = vld [vmem:[%s5481_s0 + $0x150] ss:$8 sps:$4 sm:$0xff]   ;;  %v2535_v40 = vld [vmem:[%s5481_s0 + $0x300] ss:$8 sps:$4 sm:$0xff]  }
  0x6a   :  { %858 = vmatprep.mubr.bf16.mxu0 %v2407_v41  ;;  %1074 = vmatprep.mubr.bf16.mxu1 %v2467_v42  ;;  %v2482_v41 = vld [vmem:[%s5481_s0 + $0x164] ss:$8 sps:$4 sm:$0xff]   ;;  %v2536_v42 = vld [vmem:[%s5481_s0 + $0x314] ss:$8 sps:$4 sm:$0xff]  }
  0x71   :  { %859 = vmatmul.mubr.bf16.gmra.mrb[24].mxu0 %v2409_v43  ;;  %1075 = vmatmul.mubr.bf16.gmra.mrb[24].mxu1 %v2469_v44  ;;  %v2484_v43 = vld [vmem:[%s5481_s0 + $0x160] ss:$8 sps:$4 sm:$0xff]   ;;  %v2538_v44 = vld [vmem:[%s5481_s0 + $0x310] ss:$8 sps:$4 sm:$0xff]  }
  0x72   :  { %866 = vmatprep.mubr.bf16.mxu0 %v2410_v45  ;;  %1082 = vmatprep.mubr.bf16.mxu1 %v2473_v46  ;;  %v2488_v45 = vld [vmem:[%s5481_s0 + $0x174] ss:$8 sps:$4 sm:$0xff]   ;;  %v2539_v46 = vld [vmem:[%s5481_s0 + $0x324] ss:$8 sps:$4 sm:$0xff]  }
  0x79   :  { %867 = vmatmul.mubr.bf16.gmra.mrb[28].mxu0 %v2412_v47  ;;  %1083 = vmatmul.mubr.bf16.gmra.mrb[28].mxu1 %v2475_v48  ;;  %v2490_v47 = vld [vmem:[%s5481_s0 + $0x170] ss:$8 sps:$4 sm:$0xff]   ;;  %v2541_v48 = vld [vmem:[%s5481_s0 + $0x320] ss:$8 sps:$4 sm:$0xff]  }
  0x7a   :  { %874 = vmatprep.mubr.bf16.mxu0 %v2413_v49  ;;  %1090 = vmatprep.mubr.bf16.mxu1 %v2479_v50  ;;  %v2494_v49 = vld [vmem:[%s5481_s0 + $0x184] ss:$8 sps:$4 sm:$0xff]   ;;  %v2542_v50 = vld [vmem:[%s5481_s0 + $0x334] ss:$8 sps:$4 sm:$0xff]  }
  0x81   :  { %875 = vmatmul.mubr.bf16.gmra.mrb[32].mxu0 %v2415_v51  ;;  %1091 = vmatmul.mubr.bf16.gmra.mrb[32].mxu1 %v2481_v52  ;;  %v122_v51 = vld [vmem:[%s5481_s0 + $0x340] sm:$0xff] }
  0x82   :  { %882 = vmatprep.mubr.bf16.mxu0 %v2416_v53  ;;  %1098 = vmatprep.mubr.bf16.mxu1 %v2485_v54  ;;  %v2496_v52 = vld [vmem:[%s5481_s0 + $0x180] ss:$8 sps:$4 sm:$0xff]   ;;  %v2544_v53 = vld [vmem:[%s5481_s0 + $0x330] ss:$8 sps:$4 sm:$0xff]   ;;  %v2500_v54 = vld [vmem:[%s5481_s0 + $0x194] ss:$8 sps:$4 sm:$0xff]  }
  0x89   :  { %883 = vmatmul.mubr.bf16.gmra.mrb[36].mxu0 %v2418_v55  ;;  %1099 = vmatmul.mubr.bf16.gmra.mrb[36].mxu1 %v2487_v56  ;;  %v2323_v55 = vcombine.high %v122_v51, %v122_v51  ;;  %v2502_v56 = vld [vmem:[%s5481_s0 + $0x190] ss:$8 sps:$4 sm:$0xff]  }
  0x8a   :  { %890 = vmatprep.mubr.bf16.mxu0 %v2419_v57  ;;  %1106 = vmatprep.mubr.bf16.mxu1 %v2491_v58  ;;  %v2322_v57 = vcombine.low %v122_v51, %v122_v51  ;;  %v2506_v58 = vld [vmem:[%s5481_s0 + $0x1a4] ss:$8 sps:$4 sm:$0xff]  }
  0x91   :  { %891 = vmatmul.mubr.bf16.gmra.mrb[40].mxu0 %v2421_v59  ;;  %1107 = vmatmul.mubr.bf16.gmra.mrb[40].mxu1 %v2493_v60  ;;  %v2508_v59 = vld [vmem:[%s5481_s0 + $0x1a0] ss:$8 sps:$4 sm:$0xff]  }
  0x92   :  { %898 = vmatprep.mubr.bf16.mxu0 %v2422_v61  ;;  %1114 = vmatprep.mubr.bf16.mxu1 %v2497_v62 }
  0x99   :  { %899 = vmatmul.mubr.bf16.gmra.mrb[44].mxu0 %v2424_v63  ;;  %1115 = vmatmul.mubr.bf16.gmra.mrb[44].mxu1 %v2499_v0 }
  0x9a   :  { %906 = vmatprep.mubr.bf16.mxu0 %v2425_v1  ;;  %1122 = vmatprep.mubr.bf16.mxu1 %v2503_v2 }
  0xa1   :  { %907 = vmatmul.mubr.bf16.gmra.mrb[48].mxu0 %v2427_v3  ;;  %1123 = vmatmul.mubr.bf16.gmra.mrb[48].mxu1 %v2505_v4 }
  0xa2   :  { %914 = vmatprep.mubr.bf16.mxu0 %v2428_v5  ;;  %1130 = vmatprep.mubr.bf16.mxu1 %v2509_v6 }
  0xa9   :  { %915 = vmatmul.mubr.bf16.gmra.mrb[52].mxu0 %v2430_v7  ;;  %1131 = vmatmul.mubr.bf16.gmra.mrb[52].mxu1 %v2511_v8 }
  0xaa   :  { %922 = vmatprep.mubr.bf16.mxu0 %v2434_v9  ;;  %1138 = vmatprep.mubr.bf16.mxu1 %v2512_v10 }
  0xb1   :  { %923 = vmatmul.mubr.bf16.gmra.mrb[56].mxu0 %v2436_v11  ;;  %1139 = vmatmul.mubr.bf16.gmra.mrb[56].mxu1 %v2514_v12 }
  0xb2   :  { %930 = vmatprep.mubr.bf16.mxu0 %v2440_v13  ;;  %1146 = vmatprep.mubr.bf16.mxu1 %v2515_v14 }
  0xb9   :  { %931 = vmatmul.mubr.bf16.gmra.mrb[60].mxu0 %v2442_v15  ;;  %1147 = vmatmul.mubr.bf16.gmra.mrb[60].mxu1 %v2517_v16 }
  0xba   :  { %938 = vmatprep.mubr.bf16.mxu0 %v2446_v17  ;;  %1154 = vmatprep.mubr.bf16.mxu1 %v2518_v18 }
  0xc1   :  { %939 = vmatmul.mubr.bf16.gmra.mrb[64].mxu0 %v2448_v19  ;;  %1155 = vmatmul.mubr.bf16.gmra.mrb[64].mxu1 %v2520_v20 }
  0xc2   :  { %946 = vmatprep.mubr.bf16.mxu0 %v2452_v21  ;;  %1162 = vmatprep.mubr.bf16.mxu1 %v2521_v22 }
  0xc9   :  { %947 = vmatmul.mubr.bf16.gmra.mrb[68].mxu0 %v2454_v23  ;;  %1163 = vmatmul.mubr.bf16.gmra.mrb[68].mxu1 %v2523_v24 }
  0xca   :  { %954 = vmatprep.mubr.bf16.mxu0 %v2458_v25  ;;  %1170 = vmatprep.mubr.bf16.mxu1 %v2524_v26 }
  0xd1   :  { %955 = vmatmul.mubr.bf16.gmra.mrb[72].mxu0 %v2460_v27  ;;  %1171 = vmatmul.mubr.bf16.gmra.mrb[72].mxu1 %v2526_v28 }
  0xd2   :  { %962 = vmatprep.mubr.bf16.mxu0 %v2464_v29  ;;  %1178 = vmatprep.mubr.bf16.mxu1 %v2527_v30 }
  0xd9   :  { %963 = vmatmul.mubr.bf16.gmra.mrb[76].mxu0 %v2466_v31  ;;  %1179 = vmatmul.mubr.bf16.gmra.mrb[76].mxu1 %v2529_v32 }
  0xda   :  { %970 = vmatprep.mubr.bf16.mxu0 %v2470_v33  ;;  %1186 = vmatprep.mubr.bf16.mxu1 %v2530_v34 }
  0xe1   :  { %971 = vmatmul.mubr.bf16.gmra.mrb[80].mxu0 %v2472_v35  ;;  %1187 = vmatmul.mubr.bf16.gmra.mrb[80].mxu1 %v2532_v36 }
  0xe2   :  { %978 = vmatprep.mubr.bf16.mxu0 %v2476_v37  ;;  %1194 = vmatprep.mubr.bf16.mxu1 %v2533_v38 }
  0xe9   :  { %979 = vmatmul.mubr.bf16.gmra.mrb[84].mxu0 %v2478_v39  ;;  %1195 = vmatmul.mubr.bf16.gmra.mrb[84].mxu1 %v2535_v40 }
  0xea   :  { %986 = vmatprep.mubr.bf16.mxu0 %v2482_v41  ;;  %1202 = vmatprep.mubr.bf16.mxu1 %v2536_v42 }
  0xf1   :  { %987 = vmatmul.mubr.bf16.gmra.mrb[88].mxu0 %v2484_v43  ;;  %1203 = vmatmul.mubr.bf16.gmra.mrb[88].mxu1 %v2538_v44 }
  0xf2   :  { %994 = vmatprep.mubr.bf16.mxu0 %v2488_v45  ;;  %1210 = vmatprep.mubr.bf16.mxu1 %v2539_v46 }
  0xf9   :  { %995 = vmatmul.mubr.bf16.gmra.mrb[92].mxu0 %v2490_v47  ;;  %1211 = vmatmul.mubr.bf16.gmra.mrb[92].mxu1 %v2541_v48 }
  0xfa   :  { %1002 = vmatprep.mubr.bf16.mxu0 %v2494_v49  ;;  %1218 = vmatprep.mubr.bf16.mxu1 %v2542_v50 }
 0x101   :  { %1003 = vmatmul.mubr.bf16.gmra.mrb[96].mxu0 %v2496_v52  ;;  %1219 = vmatmul.mubr.bf16.gmra.mrb[96].mxu1 %v2544_v53 }
 0x102   :  { %1010 = vmatprep.mubr.bf16.mxu0 %v2500_v54  ;;  %1226 = vmatprep.mubr.bf16.mxu1 %v2323_v55 }
 0x109   :  { %1011 = vmatmul.mubr.bf16.gmra.mrb[100].mxu0 %v2502_v56  ;;  %1227 = vmatmul.mubr.bf16.gmra.mrb[100].mxu1 %v2322_v57 }
 0x10a   :  { %1018 = vmatprep.mubr.bf16.mxu0 %v2506_v58 }
 0x111   :  { %1019 = vmatmul.mubr.bf16.gmra.mrb[104].mxu0 %v2508_v59 }
 0x114   :  { %v2970_v60 = vpop.f32.mrb[0].mxu0  ;;  %v2972_v61 = vpop.f32.mrb[0].mxu1 }
 0x115   :  { %5659 = vst [vmem:[#allocation2_spill] sm:$0xff] %v2970_v60  ;;  %v814_v62 = vpop.f32.mrb[1].mxu0  ;;  %v1030_v63 = vpop.f32.mrb[1].mxu1  ;;  %v1346_v2 = vmul.f32 %v2970_v60, %v2970_v60 }
 0x116   :  { %v2974_v0 = vpop.f32.mrb[2].mxu0  ;;  %v2976_v1 = vpop.f32.mrb[2].mxu1 }
 0x117   :  { %5660 = vst [vmem:[#allocation3_spill] sm:$0xff] %v2974_v0  ;;  %v1234_v3 = vadd.f32 %v2974_v0, %v2970_v60  ;;  %v1347_v4 = vmul.f32 %v2974_v0, %v2974_v0  ;;  %v817_v5 = vpop.f32.mrb[3].mxu0  ;;  %v1033_v6 = vpop.f32.mrb[3].mxu1 }
 0x119   :  { %v1451_v7 = vadd.f32 %v1347_v4, %v1346_v2 }
 0x11c   :  { %v2984_v8 = vpop.f32.mrb[4].mxu0  ;;  %v2986_v9 = vpop.f32.mrb[4].mxu1 }
 0x11d   :  { %5661 = vst [vmem:[#allocation4_spill] sm:$0xff] %v2984_v8  ;;  %v1235_v10 = vadd.f32 %v1234_v3, %v2984_v8  ;;  %v1348_v11 = vmul.f32 %v2984_v8, %v2984_v8  ;;  %v822_v12 = vpop.f32.mrb[5].mxu0  ;;  %v1038_v13 = vpop.f32.mrb[5].mxu1 }
 0x11e   :  { %v2991_v14 = vpop.f32.mrb[6].mxu0  ;;  %v2993_v15 = vpop.f32.mrb[6].mxu1 }
 0x11f   :  { %5662 = vst [vmem:[#allocation5_spill] sm:$0xff] %v2991_v14  ;;  %v1452_v16 = vadd.f32 %v1451_v7, %v1348_v11  ;;  %v1236_v17 = vadd.f32 %v1235_v10, %v2991_v14  ;;  %v1349_v18 = vmul.f32 %v2991_v14, %v2991_v14  ;;  %v825_v19 = vpop.f32.mrb[7].mxu0  ;;  %v1041_v20 = vpop.f32.mrb[7].mxu1 }
 0x121   :  { %v1453_v21 = vadd.f32 %v1452_v16, %v1349_v18 }
 0x124   :  { %v2998_v22 = vpop.f32.mrb[8].mxu0  ;;  %v3000_v23 = vpop.f32.mrb[8].mxu1 }
 0x125   :  { %5663 = vst [vmem:[#allocation6_spill] sm:$0xff] %v2998_v22  ;;  %v1237_v24 = vadd.f32 %v1236_v17, %v2998_v22  ;;  %v1350_v25 = vmul.f32 %v2998_v22, %v2998_v22  ;;  %v830_v26 = vpop.f32.mrb[9].mxu0  ;;  %v1046_v27 = vpop.f32.mrb[9].mxu1 }
 0x126   :  { %v3005_v28 = vpop.f32.mrb[10].mxu0  ;;  %v3007_v29 = vpop.f32.mrb[10].mxu1 }
 0x127   :  { %5664 = vst [vmem:[#allocation7_spill] sm:$0xff] %v3005_v28  ;;  %v1454_v30 = vadd.f32 %v1453_v21, %v1350_v25  ;;  %v1238_v31 = vadd.f32 %v1237_v24, %v3005_v28  ;;  %v1351_v32 = vmul.f32 %v3005_v28, %v3005_v28  ;;  %v833_v33 = vpop.f32.mrb[11].mxu0  ;;  %v1049_v34 = vpop.f32.mrb[11].mxu1 }
 0x129   :  { %v1455_v35 = vadd.f32 %v1454_v30, %v1351_v32 }
 0x12c   :  { %v3012_v36 = vpop.f32.mrb[12].mxu0  ;;  %v3014_v37 = vpop.f32.mrb[12].mxu1 }
 0x12d   :  { %5665 = vst [vmem:[#allocation8_spill] sm:$0xff] %v3012_v36  ;;  %v1239_v38 = vadd.f32 %v1238_v31, %v3012_v36  ;;  %v1352_v39 = vmul.f32 %v3012_v36, %v3012_v36  ;;  %v838_v40 = vpop.f32.mrb[13].mxu0  ;;  %v1054_v41 = vpop.f32.mrb[13].mxu1 }
 0x12e   :  { %v3019_v42 = vpop.f32.mrb[14].mxu0  ;;  %v3021_v43 = vpop.f32.mrb[14].mxu1 }
 0x12f   :  { %5666 = vst [vmem:[#allocation9_spill] sm:$0xff] %v3019_v42  ;;  %v1456_v44 = vadd.f32 %v1455_v35, %v1352_v39  ;;  %v1240_v45 = vadd.f32 %v1239_v38, %v3019_v42  ;;  %v1353_v46 = vmul.f32 %v3019_v42, %v3019_v42  ;;  %v841_v47 = vpop.f32.mrb[15].mxu0  ;;  %v1057_v48 = vpop.f32.mrb[15].mxu1 }
 0x131   :  { %v1457_v49 = vadd.f32 %v1456_v44, %v1353_v46 }
 0x134   :  { %v3026_v50 = vpop.f32.mrb[16].mxu0  ;;  %v3028_v51 = vpop.f32.mrb[16].mxu1 }
 0x135   :  { %5667 = vst [vmem:[#allocation10_spill] sm:$0xff] %v3026_v50  ;;  %v1241_v52 = vadd.f32 %v1240_v45, %v3026_v50  ;;  %v1354_v53 = vmul.f32 %v3026_v50, %v3026_v50  ;;  %v846_v54 = vpop.f32.mrb[17].mxu0  ;;  %v1062_v55 = vpop.f32.mrb[17].mxu1 }
 0x136   :  { %v3033_v56 = vpop.f32.mrb[18].mxu0  ;;  %v3035_v57 = vpop.f32.mrb[18].mxu1 }
 0x137   :  { %5668 = vst [vmem:[#allocation11_spill] sm:$0xff] %v3033_v56  ;;  %v1458_v58 = vadd.f32 %v1457_v49, %v1354_v53  ;;  %v1242_v59 = vadd.f32 %v1241_v52, %v3033_v56  ;;  %v1355_v62 = vmul.f32 %v3033_v56, %v3033_v56  ;;  %v849_v63 = vpop.f32.mrb[19].mxu0  ;;  %v1065_v2 = vpop.f32.mrb[19].mxu1 }
 0x139   :  { %v1459_v3 = vadd.f32 %v1458_v58, %v1355_v62 }
 0x13c   :  { %v3040_v4 = vpop.f32.mrb[20].mxu0  ;;  %v3042_v5 = vpop.f32.mrb[20].mxu1 }
 0x13d   :  { %5669 = vst [vmem:[#allocation12_spill] sm:$0xff] %v3040_v4  ;;  %v1243_v6 = vadd.f32 %v1242_v59, %v3040_v4  ;;  %v1356_v7 = vmul.f32 %v3040_v4, %v3040_v4  ;;  %v854_v10 = vpop.f32.mrb[21].mxu0  ;;  %v1070_v11 = vpop.f32.mrb[21].mxu1 }
 0x13e   :  { %v3047_v12 = vpop.f32.mrb[22].mxu0  ;;  %v3049_v13 = vpop.f32.mrb[22].mxu1 }
 0x13f   :  { %5670 = vst [vmem:[#allocation13_spill] sm:$0xff] %v3047_v12  ;;  %v1460_v16 = vadd.f32 %v1459_v3, %v1356_v7  ;;  %v1244_v17 = vadd.f32 %v1243_v6, %v3047_v12  ;;  %v1357_v18 = vmul.f32 %v3047_v12, %v3047_v12  ;;  %v857_v19 = vpop.f32.mrb[23].mxu0  ;;  %v1073_v20 = vpop.f32.mrb[23].mxu1 }
 0x141   :  { %v1461_v21 = vadd.f32 %v1460_v16, %v1357_v18 }
 0x144   :  { %v3054_v24 = vpop.f32.mrb[24].mxu0  ;;  %v3056_v25 = vpop.f32.mrb[24].mxu1 }
 0x145   :  { %5671 = vst [vmem:[#allocation14_spill] sm:$0xff] %v3054_v24  ;;  %v1245_v26 = vadd.f32 %v1244_v17, %v3054_v24  ;;  %v1358_v27 = vmul.f32 %v3054_v24, %v3054_v24  ;;  %v862_v30 = vpop.f32.mrb[25].mxu0  ;;  %v1078_v31 = vpop.f32.mrb[25].mxu1 }
 0x146   :  { %v3061_v32 = vpop.f32.mrb[26].mxu0  ;;  %v3063_v33 = vpop.f32.mrb[26].mxu1 }
 0x147   :  { %5672 = vst [vmem:[#allocation15_spill] sm:$0xff] %v3061_v32  ;;  %v1462_v34 = vadd.f32 %v1461_v21, %v1358_v27  ;;  %v1246_v35 = vadd.f32 %v1245_v26, %v3061_v32  ;;  %v1359_v38 = vmul.f32 %v3061_v32, %v3061_v32  ;;  %v865_v39 = vpop.f32.mrb[27].mxu0  ;;  %v1081_v40 = vpop.f32.mrb[27].mxu1 }
 0x149   :  { %v1463_v41 = vadd.f32 %v1462_v34, %v1359_v38 }
 0x14c   :  { %v3068_v44 = vpop.f32.mrb[28].mxu0  ;;  %v3070_v45 = vpop.f32.mrb[28].mxu1 }
 0x14d   :  { %5673 = vst [vmem:[#allocation16_spill] sm:$0xff] %v3068_v44  ;;  %v1247_v46 = vadd.f32 %v1246_v35, %v3068_v44  ;;  %v1360_v47 = vmul.f32 %v3068_v44, %v3068_v44  ;;  %v870_v48 = vpop.f32.mrb[29].mxu0  ;;  %v1086_v49 = vpop.f32.mrb[29].mxu1 }
 0x14e   :  { %v3075_v52 = vpop.f32.mrb[30].mxu0  ;;  %v3077_v53 = vpop.f32.mrb[30].mxu1 }
 0x14f   :  { %5674 = vst [vmem:[#allocation17_spill] sm:$0xff] %v3075_v52  ;;  %v1464_v54 = vadd.f32 %v1463_v41, %v1360_v47  ;;  %v1248_v55 = vadd.f32 %v1247_v46, %v3075_v52  ;;  %v1361_v58 = vmul.f32 %v3075_v52, %v3075_v52  ;;  %v873_v59 = vpop.f32.mrb[31].mxu0  ;;  %v1089_v62 = vpop.f32.mrb[31].mxu1 }
 0x151   :  { %v1465_v63 = vadd.f32 %v1464_v54, %v1361_v58 }
 0x154   :  { %v3082_v2 = vpop.f32.mrb[32].mxu0  ;;  %v3084_v3 = vpop.f32.mrb[32].mxu1 }
 0x155   :  { %5675 = vst [vmem:[#allocation18_spill] sm:$0xff] %v3082_v2  ;;  %v1249_v6 = vadd.f32 %v1248_v55, %v3082_v2  ;;  %v1362_v7 = vmul.f32 %v3082_v2, %v3082_v2  ;;  %v878_v10 = vpop.f32.mrb[33].mxu0  ;;  %v1094_v11 = vpop.f32.mrb[33].mxu1 }
 0x156   :  { %v3089_v16 = vpop.f32.mrb[34].mxu0  ;;  %v3091_v17 = vpop.f32.mrb[34].mxu1 }
 0x157   :  { %5676 = vst [vmem:[#allocation19_spill] sm:$0xff] %v3089_v16  ;;  %v1466_v18 = vadd.f32 %v1465_v63, %v1362_v7  ;;  %v1250_v19 = vadd.f32 %v1249_v6, %v3089_v16  ;;  %v1363_v20 = vmul.f32 %v3089_v16, %v3089_v16  ;;  %v881_v21 = vpop.f32.mrb[35].mxu0  ;;  %v1097_v26 = vpop.f32.mrb[35].mxu1 }
 0x159   :  { %v1467_v27 = vadd.f32 %v1466_v18, %v1363_v20 }
 0x15c   :  { %v3096_v30 = vpop.f32.mrb[36].mxu0  ;;  %v3098_v31 = vpop.f32.mrb[36].mxu1 }
 0x15d   :  { %5677 = vst [vmem:[#allocation20_spill] sm:$0xff] %v3096_v30  ;;  %v1251_v34 = vadd.f32 %v1250_v19, %v3096_v30  ;;  %v1364_v35 = vmul.f32 %v3096_v30, %v3096_v30  ;;  %v886_v38 = vpop.f32.mrb[37].mxu0  ;;  %v1102_v39 = vpop.f32.mrb[37].mxu1 }
 0x15e   :  { %v3103_v40 = vpop.f32.mrb[38].mxu0  ;;  %v3105_v41 = vpop.f32.mrb[38].mxu1 }
 0x15f   :  { %5678 = vst [vmem:[#allocation21_spill] sm:$0xff] %v3103_v40  ;;  %v1468_v46 = vadd.f32 %v1467_v27, %v1364_v35  ;;  %v1252_v47 = vadd.f32 %v1251_v34, %v3103_v40  ;;  %v1365_v48 = vmul.f32 %v3103_v40, %v3103_v40  ;;  %v889_v49 = vpop.f32.mrb[39].mxu0  ;;  %v1105_v54 = vpop.f32.mrb[39].mxu1 }
 0x161   :  { %v1469_v55 = vadd.f32 %v1468_v46, %v1365_v48 }
 0x164   :  { %v3110_v58 = vpop.f32.mrb[40].mxu0  ;;  %v3112_v59 = vpop.f32.mrb[40].mxu1 }
 0x165   :  { %5679 = vst [vmem:[#allocation22_spill] sm:$0xff] %v3110_v58  ;;  %v1253_v62 = vadd.f32 %v1252_v47, %v3110_v58  ;;  %v1366_v63 = vmul.f32 %v3110_v58, %v3110_v58  ;;  %v894_v6 = vpop.f32.mrb[41].mxu0  ;;  %v1110_v7 = vpop.f32.mrb[41].mxu1 }
 0x166   :  { %v3117_v10 = vpop.f32.mrb[42].mxu0  ;;  %v3119_v11 = vpop.f32.mrb[42].mxu1 }
 0x167   :  { %5680 = vst [vmem:[#allocation23_spill] sm:$0xff] %v3117_v10  ;;  %v1470_v18 = vadd.f32 %v1469_v55, %v1366_v63  ;;  %v1254_v19 = vadd.f32 %v1253_v62, %v3117_v10  ;;  %v1367_v20 = vmul.f32 %v3117_v10, %v3117_v10  ;;  %v897_v21 = vpop.f32.mrb[43].mxu0  ;;  %v1113_v26 = vpop.f32.mrb[43].mxu1 }
 0x169   :  { %v1471_v27 = vadd.f32 %v1470_v18, %v1367_v20 }
 0x16c   :  { %v3124_v34 = vpop.f32.mrb[44].mxu0  ;;  %v3126_v35 = vpop.f32.mrb[44].mxu1 }
 0x16d   :  { %5681 = vst [vmem:[#allocation24_spill] sm:$0xff] %v3124_v34  ;;  %v1255_v38 = vadd.f32 %v1254_v19, %v3124_v34  ;;  %v1368_v39 = vmul.f32 %v3124_v34, %v3124_v34  ;;  %v902_v46 = vpop.f32.mrb[45].mxu0  ;;  %v1118_v47 = vpop.f32.mrb[45].mxu1 }
 0x16e   :  { %v3131_v48 = vpop.f32.mrb[46].mxu0  ;;  %v3133_v49 = vpop.f32.mrb[46].mxu1 }
 0x16f   :  { %5682 = vst [vmem:[#allocation25_spill] sm:$0xff] %v3131_v48  ;;  %v1472_v54 = vadd.f32 %v1471_v27, %v1368_v39  ;;  %v1256_v55 = vadd.f32 %v1255_v38, %v3131_v48  ;;  %v1369_v62 = vmul.f32 %v3131_v48, %v3131_v48  ;;  %v905_v63 = vpop.f32.mrb[47].mxu0  ;;  %v1121_v6 = vpop.f32.mrb[47].mxu1 }
 0x171   :  { %v1473_v7 = vadd.f32 %v1472_v54, %v1369_v62 }
 0x174   :  { %v3138_v18 = vpop.f32.mrb[48].mxu0  ;;  %v3140_v19 = vpop.f32.mrb[48].mxu1 }
 0x175   :  { %5683 = vst [vmem:[#allocation26_spill] sm:$0xff] %v3138_v18  ;;  %v1257_v20 = vadd.f32 %v1256_v55, %v3138_v18  ;;  %v1370_v21 = vmul.f32 %v3138_v18, %v3138_v18  ;;  %v910_v26 = vpop.f32.mrb[49].mxu0  ;;  %v1126_v46 = vpop.f32.mrb[49].mxu1 }
 0x176   :  { %v3145_v27 = vpop.f32.mrb[50].mxu0  ;;  %v3147_v38 = vpop.f32.mrb[50].mxu1 }
 0x177   :  { %5684 = vst [vmem:[#allocation27_spill] sm:$0xff] %v3145_v27  ;;  %v1474_v39 = vadd.f32 %v1473_v7, %v1370_v21  ;;  %v1258_v47 = vadd.f32 %v1257_v20, %v3145_v27  ;;  %v1371_v54 = vmul.f32 %v3145_v27, %v3145_v27  ;;  %v913_v62 = vpop.f32.mrb[51].mxu0  ;;  %v1129_v63 = vpop.f32.mrb[51].mxu1 }
 0x179   :  { %v1475_v6 = vadd.f32 %v1474_v39, %v1371_v54 }
 0x17c   :  { %v3152_v48 = vpop.f32.mrb[52].mxu0  ;;  %v3154_v55 = vpop.f32.mrb[52].mxu1 }
 0x17d   :  { %5685 = vst [vmem:[#allocation28_spill] sm:$0xff] %v3152_v48  ;;  %v1259_v26 = vadd.f32 %v1258_v47, %v3152_v48  ;;  %v1372_v46 = vmul.f32 %v3152_v48, %v3152_v48  ;;  %v918_v18 = vpop.f32.mrb[53].mxu0  ;;  %v1134_v34 = vpop.f32.mrb[53].mxu1 }
 0x17e   :  { %v3159_v7 = vpop.f32.mrb[54].mxu0  ;;  %v3161_v20 = vpop.f32.mrb[54].mxu1 }
 0x17f   :  { %5686 = vst [vmem:[#allocation29_spill] sm:$0xff] %v3159_v7  ;;  %v1476_v21 = vadd.f32 %v1475_v6, %v1372_v46  ;;  %v1260_v62 = vadd.f32 %v1259_v26, %v3159_v7  ;;  %v1373_v39 = vmul.f32 %v3159_v7, %v3159_v7  ;;  %v921_v54 = vpop.f32.mrb[55].mxu0  ;;  %v1137_v63 = vpop.f32.mrb[55].mxu1 }
 0x181   :  { %v1477_v27 = vadd.f32 %v1476_v21, %v1373_v39 }
 0x184   :  { %v3166_v10 = vpop.f32.mrb[56].mxu0  ;;  %v3168_v47 = vpop.f32.mrb[56].mxu1 }
 0x185   :  { %5687 = vst [vmem:[#allocation30_spill] sm:$0xff] %v3166_v10  ;;  %v1261_v18 = vadd.f32 %v1260_v62, %v3166_v10  ;;  %v1374_v34 = vmul.f32 %v3166_v10, %v3166_v10  ;;  %v926_v48 = vpop.f32.mrb[57].mxu0  ;;  %v1142_v58 = vpop.f32.mrb[57].mxu1 }
 0x186   :  { %v3173_v6 = vpop.f32.mrb[58].mxu0  ;;  %v3175_v26 = vpop.f32.mrb[58].mxu1 }
 0x187   :  { %5688 = vst [vmem:[#allocation31_spill] sm:$0xff] %v3173_v6  ;;  %v1478_v46 = vadd.f32 %v1477_v27, %v1374_v34  ;;  %v1262_v54 = vadd.f32 %v1261_v18, %v3173_v6  ;;  %v1375_v21 = vmul.f32 %v3173_v6, %v3173_v6  ;;  %v929_v39 = vpop.f32.mrb[59].mxu0  ;;  %v1145_v63 = vpop.f32.mrb[59].mxu1 }
 0x189   :  { %v1479_v7 = vadd.f32 %v1478_v46, %v1375_v21 }
 0x18c   :  { %v3180_v40 = vpop.f32.mrb[60].mxu0  ;;  %v3182_v62 = vpop.f32.mrb[60].mxu1 }
 0x18d   :  { %5689 = vst [vmem:[#allocation32_spill] sm:$0xff] %v3180_v40  ;;  %v1263_v48 = vadd.f32 %v1262_v54, %v3180_v40  ;;  %v1376_v58 = vmul.f32 %v3180_v40, %v3180_v40  ;;  %v934_v10 = vpop.f32.mrb[61].mxu0  ;;  %v1150_v30 = vpop.f32.mrb[61].mxu1 }
 0x18e   :  { %v3187_v27 = vpop.f32.mrb[62].mxu0  ;;  %v3189_v18 = vpop.f32.mrb[62].mxu1 }
 0x18f   :  { %5690 = vst [vmem:[#allocation33_spill] sm:$0xff] %v3187_v27  ;;  %v1480_v34 = vadd.f32 %v1479_v7, %v1376_v58  ;;  %v1264_v39 = vadd.f32 %v1263_v48, %v3187_v27  ;;  %v1377_v46 = vmul.f32 %v3187_v27, %v3187_v27  ;;  %v937_v21 = vpop.f32.mrb[63].mxu0  ;;  %v1153_v63 = vpop.f32.mrb[63].mxu1 }
 0x191   :  { %v1481_v6 = vadd.f32 %v1480_v34, %v1377_v46 }
 0x194   :  { %v3194_v16 = vpop.f32.mrb[64].mxu0  ;;  %v3196_v54 = vpop.f32.mrb[64].mxu1 }
 0x195   :  { %5691 = vst [vmem:[#allocation34_spill] sm:$0xff] %v3194_v16  ;;  %v1265_v10 = vadd.f32 %v1264_v39, %v3194_v16  ;;  %v1378_v30 = vmul.f32 %v3194_v16, %v3194_v16  ;;  %v942_v40 = vpop.f32.mrb[65].mxu0  ;;  %v1158_v2 = vpop.f32.mrb[65].mxu1 }
 0x196   :  { %v3201_v7 = vpop.f32.mrb[66].mxu0  ;;  %v3203_v48 = vpop.f32.mrb[66].mxu1 }
 0x197   :  { %5692 = vst [vmem:[#allocation35_spill] sm:$0xff] %v3201_v7  ;;  %v1482_v58 = vadd.f32 %v1481_v6, %v1378_v30  ;;  %v1266_v21 = vadd.f32 %v1265_v10, %v3201_v7  ;;  %v1379_v34 = vmul.f32 %v3201_v7, %v3201_v7  ;;  %v945_v46 = vpop.f32.mrb[67].mxu0  ;;  %v1161_v63 = vpop.f32.mrb[67].mxu1 }
 0x199   :  { %v1483_v27 = vadd.f32 %v1482_v58, %v1379_v34 }
 0x19c   :  { %v3208_v52 = vpop.f32.mrb[68].mxu0  ;;  %v3210_v39 = vpop.f32.mrb[68].mxu1 }
 0x19d   :  { %5693 = vst [vmem:[#allocation36_spill] sm:$0xff] %v3208_v52  ;;  %v1267_v40 = vadd.f32 %v1266_v21, %v3208_v52  ;;  %v1380_v2 = vmul.f32 %v3208_v52, %v3208_v52  ;;  %v950_v16 = vpop.f32.mrb[69].mxu0  ;;  %v1166_v44 = vpop.f32.mrb[69].mxu1 }
 0x19e   :  { %v3215_v6 = vpop.f32.mrb[70].mxu0  ;;  %v3217_v10 = vpop.f32.mrb[70].mxu1 }
 0x19f   :  { %5694 = vst [vmem:[#allocation37_spill] sm:$0xff] %v3215_v6  ;;  %v1484_v30 = vadd.f32 %v1483_v27, %v1380_v2  ;;  %v1268_v46 = vadd.f32 %v1267_v40, %v3215_v6  ;;  %v1381_v58 = vmul.f32 %v3215_v6, %v3215_v6  ;;  %v953_v34 = vpop.f32.mrb[71].mxu0  ;;  %v1169_v63 = vpop.f32.mrb[71].mxu1 }
 0x1a1   :  { %v1485_v7 = vadd.f32 %v1484_v30, %v1381_v58 }
 0x1a4   :  { %v3222_v32 = vpop.f32.mrb[72].mxu0  ;;  %v3224_v21 = vpop.f32.mrb[72].mxu1 }
 0x1a5   :  { %5695 = vst [vmem:[#allocation38_spill] sm:$0xff] %v3222_v32  ;;  %v1269_v16 = vadd.f32 %v1268_v46, %v3222_v32  ;;  %v1382_v44 = vmul.f32 %v3222_v32, %v3222_v32  ;;  %v958_v52 = vpop.f32.mrb[73].mxu0  ;;  %v1174_v24 = vpop.f32.mrb[73].mxu1 }
 0x1a6   :  { %v3229_v27 = vpop.f32.mrb[74].mxu0  ;;  %v3231_v40 = vpop.f32.mrb[74].mxu1 }
 0x1a7   :  { %5696 = vst [vmem:[#allocation39_spill] sm:$0xff] %v3229_v27  ;;  %v1486_v2 = vadd.f32 %v1485_v7, %v1382_v44  ;;  %v1270_v34 = vadd.f32 %v1269_v16, %v3229_v27  ;;  %v1383_v30 = vmul.f32 %v3229_v27, %v3229_v27  ;;  %v961_v58 = vpop.f32.mrb[75].mxu0  ;;  %v1177_v63 = vpop.f32.mrb[75].mxu1 }
 0x1a9   :  { %v1487_v6 = vadd.f32 %v1486_v2, %v1383_v30 }
 0x1ac   :  { %v3236_v12 = vpop.f32.mrb[76].mxu0  ;;  %v3238_v46 = vpop.f32.mrb[76].mxu1 }
 0x1ad   :  { %5697 = vst [vmem:[#allocation40_spill] sm:$0xff] %v3236_v12  ;;  %v1271_v52 = vadd.f32 %v1270_v34, %v3236_v12  ;;  %v1384_v24 = vmul.f32 %v3236_v12, %v3236_v12  ;;  %v966_v32 = vpop.f32.mrb[77].mxu0  ;;  %v1182_v4 = vpop.f32.mrb[77].mxu1 }
 0x1ae   :  { %v3243_v7 = vpop.f32.mrb[78].mxu0  ;;  %v3245_v16 = vpop.f32.mrb[78].mxu1 }
 0x1af   :  { %5698 = vst [vmem:[#allocation41_spill] sm:$0xff] %v3243_v7  ;;  %5699 = vst [vmem:[#allocation42_spill] sm:$0xff] %v3245_v16  ;;  %v1488_v44 = vadd.f32 %v1487_v6, %v1384_v24  ;;  %v1272_v58 = vadd.f32 %v1271_v52, %v3243_v7  ;;  %v1385_v2 = vmul.f32 %v3243_v7, %v3243_v7  ;;  %v969_v30 = vpop.f32.mrb[79].mxu0  ;;  %v1185_v63 = vpop.f32.mrb[79].mxu1 }
 0x1b1   :  { %v1489_v27 = vadd.f32 %v1488_v44, %v1385_v2 }
 0x1b4   :  { %v3250_v56 = vpop.f32.mrb[80].mxu0  ;;  %v3252_v34 = vpop.f32.mrb[80].mxu1 }
 0x1b5   :  { %5700 = vst [vmem:[#allocation43_spill] sm:$0xff] %v3250_v56  ;;  %5701 = vst [vmem:[#allocation44_spill] sm:$0xff] %v3252_v34  ;;  %v1273_v32 = vadd.f32 %v1272_v58, %v3250_v56  ;;  %v1386_v4 = vmul.f32 %v3250_v56, %v3250_v56  ;;  %v974_v12 = vpop.f32.mrb[81].mxu0  ;;  %v1190_v50 = vpop.f32.mrb[81].mxu1 }
 0x1b6   :  { %v3257_v6 = vpop.f32.mrb[82].mxu0  ;;  %v3259_v52 = vpop.f32.mrb[82].mxu1 }
 0x1b7   :  { %5702 = vst [vmem:[#allocation45_spill] sm:$0xff] %v3257_v6  ;;  %5703 = vst [vmem:[#allocation46_spill] sm:$0xff] %v3259_v52  ;;  %v1490_v24 = vadd.f32 %v1489_v27, %v1386_v4  ;;  %v1274_v30 = vadd.f32 %v1273_v32, %v3257_v6  ;;  %v1387_v44 = vmul.f32 %v3257_v6, %v3257_v6  ;;  %v977_v2 = vpop.f32.mrb[83].mxu0  ;;  %v1193_v63 = vpop.f32.mrb[83].mxu1 }
 0x1b9   :  { %v1491_v7 = vadd.f32 %v1490_v24, %v1387_v44 }
 0x1bc   :  { %v3264_v42 = vpop.f32.mrb[84].mxu0  ;;  %v3266_v58 = vpop.f32.mrb[84].mxu1 }
 0x1bd   :  { %5704 = vst [vmem:[#allocation47_spill] sm:$0xff] %v3264_v42  ;;  %5705 = vst [vmem:[#allocation48_spill] sm:$0xff] %v3266_v58  ;;  %v1275_v12 = vadd.f32 %v1274_v30, %v3264_v42  ;;  %v1388_v50 = vmul.f32 %v3264_v42, %v3264_v42  ;;  %v982_v56 = vpop.f32.mrb[85].mxu0  ;;  %v1198_v36 = vpop.f32.mrb[85].mxu1 }
 0x1be   :  { %v3271_v27 = vpop.f32.mrb[86].mxu0  ;;  %v3273_v32 = vpop.f32.mrb[86].mxu1 }
 0x1bf   :  { %5706 = vst [vmem:[#allocation49_spill] sm:$0xff] %v3271_v27  ;;  %5707 = vst [vmem:[#allocation50_spill] sm:$0xff] %v3273_v32  ;;  %v1492_v4 = vadd.f32 %v1491_v7, %v1388_v50  ;;  %v1276_v2 = vadd.f32 %v1275_v12, %v3271_v27  ;;  %v1389_v24 = vmul.f32 %v3271_v27, %v3271_v27  ;;  %v985_v44 = vpop.f32.mrb[87].mxu0  ;;  %v1201_v63 = vpop.f32.mrb[87].mxu1 }
 0x1c1   :  { %v1493_v6 = vadd.f32 %v1492_v4, %v1389_v24 }
 0x1c4   :  { %v3278_v28 = vpop.f32.mrb[88].mxu0  ;;  %v3280_v30 = vpop.f32.mrb[88].mxu1 }
 0x1c5   :  { %5708 = vst [vmem:[#allocation51_spill] sm:$0xff] %v3278_v28  ;;  %5709 = vst [vmem:[#allocation52_spill] sm:$0xff] %v3280_v30  ;;  %v1277_v56 = vadd.f32 %v1276_v2, %v3278_v28  ;;  %v1390_v36 = vmul.f32 %v3278_v28, %v3278_v28  ;;  %v990_v42 = vpop.f32.mrb[89].mxu0  ;;  %v1206_v22 = vpop.f32.mrb[89].mxu1 }
 0x1c6   :  { %v3285_v7 = vpop.f32.mrb[90].mxu0  ;;  %v3287_v12 = vpop.f32.mrb[90].mxu1 }
 0x1c7   :  { %5710 = vst [vmem:[#allocation53_spill] sm:$0xff] %v3285_v7  ;;  %5711 = vst [vmem:[#allocation54_spill] sm:$0xff] %v3287_v12  ;;  %v1494_v50 = vadd.f32 %v1493_v6, %v1390_v36  ;;  %v1278_v44 = vadd.f32 %v1277_v56, %v3285_v7  ;;  %v1391_v4 = vmul.f32 %v3285_v7, %v3285_v7  ;;  %v993_v24 = vpop.f32.mrb[91].mxu0  ;;  %v1209_v63 = vpop.f32.mrb[91].mxu1 }
 0x1c9   :  { %v1495_v27 = vadd.f32 %v1494_v50, %v1391_v4 }
 0x1cc   :  { %v3292_v14 = vpop.f32.mrb[92].mxu0  ;;  %v3294_v2 = vpop.f32.mrb[92].mxu1 }
 0x1cd   :  { %5712 = vst [vmem:[#allocation55_spill] sm:$0xff] %v3292_v14  ;;  %5713 = vst [vmem:[#allocation56_spill] sm:$0xff] %v3294_v2  ;;  %v1279_v42 = vadd.f32 %v1278_v44, %v3292_v14  ;;  %v1392_v22 = vmul.f32 %v3292_v14, %v3292_v14  ;;  %v998_v28 = vpop.f32.mrb[93].mxu0  ;;  %v1214_v8 = vpop.f32.mrb[93].mxu1 }
 0x1ce   :  { %v3299_v6 = vpop.f32.mrb[94].mxu0  ;;  %v3301_v56 = vpop.f32.mrb[94].mxu1 }
 0x1cf   :  { %5714 = vst [vmem:[#allocation57_spill] sm:$0xff] %v3299_v6  ;;  %5715 = vst [vmem:[#allocation58_spill] sm:$0xff] %v3301_v56  ;;  %v1496_v36 = vadd.f32 %v1495_v27, %v1392_v22  ;;  %v1280_v24 = vadd.f32 %v1279_v42, %v3299_v6  ;;  %v1393_v50 = vmul.f32 %v3299_v6, %v3299_v6  ;;  %v1001_v4 = vpop.f32.mrb[95].mxu0  ;;  %v1217_v63 = vpop.f32.mrb[95].mxu1 }
 0x1d1   :  { %v1497_v7 = vadd.f32 %v1496_v36, %v1393_v50 }
 0x1d4   :  { %v3306_v0 = vpop.f32.mrb[96].mxu0  ;;  %v3308_v44 = vpop.f32.mrb[96].mxu1 }
 0x1d5   :  { %5716 = vst [vmem:[#allocation59_spill] sm:$0xff] %v3306_v0  ;;  %5717 = vst [vmem:[#allocation60_spill] sm:$0xff] %v3308_v44  ;;  %v1281_v28 = vadd.f32 %v1280_v24, %v3306_v0  ;;  %v1394_v8 = vmul.f32 %v3306_v0, %v3306_v0  ;;  %v1006_v14 = vpop.f32.mrb[97].mxu0  ;;  %v1222_v60 = vpop.f32.mrb[97].mxu1 }
 0x1d6   :  { %v3313_v27 = vpop.f32.mrb[98].mxu0  ;;  %v3315_v42 = vpop.f32.mrb[98].mxu1 }
 0x1d7   :  { %5718 = vst [vmem:[#allocation61_spill] sm:$0xff] %v3313_v27  ;;  %5719 = vst [vmem:[#allocation62_spill] sm:$0xff] %v3315_v42  ;;  %v1498_v22 = vadd.f32 %v1497_v7, %v1394_v8  ;;  %v1282_v4 = vadd.f32 %v1281_v28, %v3313_v27  ;;  %v1395_v36 = vmul.f32 %v3313_v27, %v3313_v27  ;;  %v1009_v50 = vpop.f32.mrb[99].mxu0  ;;  %v1225_v63 = vpop.f32.mrb[99].mxu1 }
 0x1d9   :  { %v1499_v6 = vadd.f32 %v1498_v22, %v1395_v36 }
 0x1dc   :  { %v3320_v44 = vpop.f32.mrb[100].mxu0  ;;  %v3322_v24 = vpop.f32.mrb[100].mxu1 }
 0x1dd   :  { %5720 = vst [vmem:[#allocation63_spill] sm:$0xff] %v3320_v44  ;;  %5721 = vst [vmem:[#allocation64_spill] sm:$0xff] %v3322_v24  ;;  %v1283_v14 = vadd.f32 %v1282_v4, %v3320_v44  ;;  %v1396_v60 = vmul.f32 %v3320_v44, %v3320_v44  ;;  %v1014_v0 = vpop.f32.mrb[101].mxu0  ;;  %v1230_v42 = vpop.f32.mrb[101].mxu1 }
 0x1de   :  { %v3327_v7 = vpop.f32.mrb[102].mxu0  ;;  %v1231_v28 = vpop.f32.mrb[102].mxu1 }
 0x1df   :  { %v1500_v8 = vadd.f32 %v1499_v6, %v1396_v60  ;;  %v1284_v27 = vadd.f32 %v1283_v14, %v3327_v7  ;;  %v1397_v22 = vmul.f32 %v3327_v7, %v3327_v7  ;;  %v1017_v36 = vpop.f32.mrb[103].mxu0  ;;  %v1232_v50 = vpop.f32.mrb[103].mxu1 }
 0x1e1   :  { %v1501_v63 = vadd.f32 %v1500_v8, %v1397_v22  ;;  %v1400_v8 = vmul.f32 %v2972_v61, %v2972_v61 }
 0x1e4   :  { %v3332_v24 = vpop.f32.mrb[104].mxu0 }
 0x1e5   :  { %5722 = vst [vmem:[#allocation65_spill] sm:$0xff] %v3332_v24  ;;  %v1285_v4 = vadd.f32 %v1284_v27, %v3332_v24  ;;  %v1398_v0 = vmul.f32 %v3332_v24, %v3332_v24  ;;  %v1022_v42 = vpop.f32.mrb[105].mxu0  ;;  %v1401_v27 = vmul.f32 %v2976_v1, %v2976_v1 }
 0x1e6   :  { %v3337_v44 = vpop.f32.mrb[106].mxu0 }
 0x1e7   :  { %5723 = vst [vmem:[#allocation66_spill] sm:$0xff] %v3337_v44  ;;  %v1502_v28 = vadd.f32 %v1501_v63, %v1398_v0  ;;  %v1286_v6 = vadd.f32 %v1285_v4, %v3337_v44  ;;  %v1399_v14 = vmul.f32 %v3337_v44, %v3337_v44  ;;  %v1025_v60 = vpop.f32.mrb[107].mxu0  ;;  %v1402_v63 = vmul.f32 %v2986_v9, %v2986_v9 }
 0x1e8   :  { %v1403_v60 = vmul.f32 %v2993_v15, %v2993_v15 }
 0x1e9   :  { %v1287_v22 = vadd.f32 %v1286_v6, %v2972_v61  ;;  %v1503_v36 = vadd.f32 %v1502_v28, %v1399_v14  ;;  %v1404_v28 = vmul.f32 %v3000_v23, %v3000_v23 }
 0x1eb   :  { %v1288_v50 = vadd.f32 %v1287_v22, %v2976_v1  ;;  %v1504_v42 = vadd.f32 %v1503_v36, %v1400_v8  ;;  %v1405_v8 = vmul.f32 %v3007_v29, %v3007_v29 }
 0x1ed   :  { %v1289_v4 = vadd.f32 %v1288_v50, %v2986_v9  ;;  %v1505_v0 = vadd.f32 %v1504_v42, %v1401_v27  ;;  %v1406_v27 = vmul.f32 %v3014_v37, %v3014_v37 }
 0x1ef   :  { %v1290_v44 = vadd.f32 %v1289_v4, %v2993_v15  ;;  %v1506_v24 = vadd.f32 %v1505_v0, %v1402_v63  ;;  %v1407_v63 = vmul.f32 %v3021_v43, %v3021_v43 }
 0x1f1   :  { %v1291_v6 = vadd.f32 %v1290_v44, %v3000_v23  ;;  %v1507_v14 = vadd.f32 %v1506_v24, %v1403_v60  ;;  %v1408_v44 = vmul.f32 %v3028_v51, %v3028_v51 }
 0x1f3   :  { %v1292_v22 = vadd.f32 %v1291_v6, %v3007_v29  ;;  %v1508_v36 = vadd.f32 %v1507_v14, %v1404_v28  ;;  %v1409_v28 = vmul.f32 %v3035_v57, %v3035_v57 }
 0x1f5   :  { %v1293_v50 = vadd.f32 %v1292_v22, %v3014_v37  ;;  %v1509_v42 = vadd.f32 %v1508_v36, %v1405_v8  ;;  %v1410_v8 = vmul.f32 %v3042_v5, %v3042_v5 }
 0x1f7   :  { %v1294_v4 = vadd.f32 %v1293_v50, %v3021_v43  ;;  %v1510_v0 = vadd.f32 %v1509_v42, %v1406_v27  ;;  %v1411_v27 = vmul.f32 %v3049_v13, %v3049_v13 }
 0x1f9   :  { %v1295_v24 = vadd.f32 %v1294_v4, %v3028_v51  ;;  %v1511_v60 = vadd.f32 %v1510_v0, %v1407_v63  ;;  %v1412_v63 = vmul.f32 %v3056_v25, %v3056_v25 }
 0x1fb   :  { %v1296_v6 = vadd.f32 %v1295_v24, %v3035_v57  ;;  %v1512_v14 = vadd.f32 %v1511_v60, %v1408_v44  ;;  %v1413_v44 = vmul.f32 %v3063_v33, %v3063_v33 }
 0x1fd   :  { %v1297_v22 = vadd.f32 %v1296_v6, %v3042_v5  ;;  %v1513_v36 = vadd.f32 %v1512_v14, %v1409_v28  ;;  %v1414_v28 = vmul.f32 %v3070_v45, %v3070_v45 }
 0x1ff   :  { %v1298_v50 = vadd.f32 %v1297_v22, %v3049_v13  ;;  %v1514_v42 = vadd.f32 %v1513_v36, %v1410_v8  ;;  %v1415_v8 = vmul.f32 %v3077_v53, %v3077_v53 }
 0x201   :  { %v1299_v4 = vadd.f32 %v1298_v50, %v3056_v25  ;;  %v1515_v0 = vadd.f32 %v1514_v42, %v1411_v27  ;;  %v1416_v27 = vmul.f32 %v3084_v3, %v3084_v3 }
 0x203   :  { %v1516_v24 = vadd.f32 %v1515_v0, %v1412_v63  ;;  %v1300_v60 = vadd.f32 %v1299_v4, %v3063_v33  ;;  %v1417_v63 = vmul.f32 %v3091_v17, %v3091_v17 }
 0x205   :  { %v1301_v6 = vadd.f32 %v1300_v60, %v3070_v45  ;;  %v1517_v14 = vadd.f32 %v1516_v24, %v1413_v44  ;;  %v1418_v44 = vmul.f32 %v3098_v31, %v3098_v31 }
 0x207   :  { %v1302_v22 = vadd.f32 %v1301_v6, %v3077_v53  ;;  %v1518_v36 = vadd.f32 %v1517_v14, %v1414_v28  ;;  %v1419_v28 = vmul.f32 %v3105_v41, %v3105_v41 }
 0x209   :  { %v1303_v50 = vadd.f32 %v1302_v22, %v3084_v3  ;;  %v1519_v42 = vadd.f32 %v1518_v36, %v1415_v8  ;;  %v1420_v8 = vmul.f32 %v3112_v59, %v3112_v59 }
 0x20b   :  { %v1304_v4 = vadd.f32 %v1303_v50, %v3091_v17  ;;  %v1520_v0 = vadd.f32 %v1519_v42, %v1416_v27  ;;  %v1421_v27 = vmul.f32 %v3119_v11, %v3119_v11 }
 0x20d   :  { %v1305_v24 = vadd.f32 %v1304_v4, %v3098_v31  ;;  %v1521_v60 = vadd.f32 %v1520_v0, %v1417_v63  ;;  %v1422_v63 = vmul.f32 %v3126_v35, %v3126_v35 }
 0x20f   :  { %v1306_v6 = vadd.f32 %v1305_v24, %v3105_v41  ;;  %v1522_v14 = vadd.f32 %v1521_v60, %v1418_v44  ;;  %v1423_v44 = vmul.f32 %v3133_v49, %v3133_v49 }
 0x211   :  { %v1307_v22 = vadd.f32 %v1306_v6, %v3112_v59  ;;  %v1523_v36 = vadd.f32 %v1522_v14, %v1419_v28  ;;  %v1424_v28 = vmul.f32 %v3140_v19, %v3140_v19 }
 0x213   :  { %v1308_v50 = vadd.f32 %v1307_v22, %v3119_v11  ;;  %v1524_v42 = vadd.f32 %v1523_v36, %v1420_v8  ;;  %v1425_v8 = vmul.f32 %v3147_v38, %v3147_v38 }
 0x215   :  { %v1309_v4 = vadd.f32 %v1308_v50, %v3126_v35  ;;  %v1525_v0 = vadd.f32 %v1524_v42, %v1421_v27  ;;  %v1426_v50 = vmul.f32 %v3154_v55, %v3154_v55 }
 0x217   :  { %v1310_v24 = vadd.f32 %v1309_v4, %v3133_v49  ;;  %v1526_v60 = vadd.f32 %v1525_v0, %v1422_v63  ;;  %v1427_v0 = vmul.f32 %v3161_v20, %v3161_v20 }
 0x219   :  { %v1311_v6 = vadd.f32 %v1310_v24, %v3140_v19  ;;  %v1527_v14 = vadd.f32 %v1526_v60, %v1423_v44  ;;  %v1428_v60 = vmul.f32 %v3168_v47, %v3168_v47 }
 0x21b   :  { %v1312_v22 = vadd.f32 %v1311_v6, %v3147_v38  ;;  %v1528_v36 = vadd.f32 %v1527_v14, %v1424_v28  ;;  %v1429_v14 = vmul.f32 %v3175_v26, %v3175_v26 }
 0x21d   :  { %v1313_v27 = vadd.f32 %v1312_v22, %v3154_v55  ;;  %v1529_v42 = vadd.f32 %v1528_v36, %v1425_v8  ;;  %v1430_v36 = vmul.f32 %v3182_v62, %v3182_v62 }
 0x21f   :  { %v1530_v4 = vadd.f32 %v1529_v42, %v1426_v50  ;;  %v1314_v63 = vadd.f32 %v1313_v27, %v3161_v20  ;;  %v1431_v42 = vmul.f32 %v3189_v18, %v3189_v18 }
 0x221   :  { %v1531_v24 = vadd.f32 %v1530_v4, %v1427_v0  ;;  %v1315_v44 = vadd.f32 %v1314_v63, %v3168_v47  ;;  %v1432_v0 = vmul.f32 %v3196_v54, %v3196_v54 }
 0x223   :  { %v1532_v6 = vadd.f32 %v1531_v24, %v1428_v60  ;;  %v1316_v28 = vadd.f32 %v1315_v44, %v3175_v26  ;;  %v1433_v60 = vmul.f32 %v3203_v48, %v3203_v48 }
 0x225   :  { %v1533_v22 = vadd.f32 %v1532_v6, %v1429_v14  ;;  %v1317_v8 = vadd.f32 %v1316_v28, %v3182_v62  ;;  %v1434_v14 = vmul.f32 %v3210_v39, %v3210_v39 }
 0x227   :  { %v1534_v27 = vadd.f32 %v1533_v22, %v1430_v36  ;;  %v1318_v50 = vadd.f32 %v1317_v8, %v3189_v18  ;;  %v1435_v36 = vmul.f32 %v3217_v10, %v3217_v10 }
 0x229   :  { %v1535_v4 = vadd.f32 %v1534_v27, %v1431_v42  ;;  %v1319_v63 = vadd.f32 %v1318_v50, %v3196_v54  ;;  %v1436_v42 = vmul.f32 %v3224_v21, %v3224_v21 }
 0x22b   :  { %v1536_v24 = vadd.f32 %v1535_v4, %v1432_v0  ;;  %v1320_v44 = vadd.f32 %v1319_v63, %v3203_v48  ;;  %v1437_v0 = vmul.f32 %v3231_v40, %v3231_v40 }
 0x22d   :  { %v1537_v6 = vadd.f32 %v1536_v24, %v1433_v60  ;;  %v1321_v28 = vadd.f32 %v1320_v44, %v3210_v39  ;;  %v1438_v60 = vmul.f32 %v3238_v46, %v3238_v46 }
 0x22f   :  { %v1538_v22 = vadd.f32 %v1537_v6, %v1434_v14  ;;  %v1322_v8 = vadd.f32 %v1321_v28, %v3217_v10  ;;  %v1439_v14 = vmul.f32 %v3245_v16, %v3245_v16 }
 0x231   :  { %v1539_v27 = vadd.f32 %v1538_v22, %v1435_v36  ;;  %v1323_v50 = vadd.f32 %v1322_v8, %v3224_v21  ;;  %v1440_v36 = vmul.f32 %v3252_v34, %v3252_v34 }
 0x233   :  { %v1540_v4 = vadd.f32 %v1539_v27, %v1436_v42  ;;  %v1324_v63 = vadd.f32 %v1323_v50, %v3231_v40  ;;  %v1441_v42 = vmul.f32 %v3259_v52, %v3259_v52 }
 0x235   :  { %v1541_v24 = vadd.f32 %v1540_v4, %v1437_v0  ;;  %v1325_v44 = vadd.f32 %v1324_v63, %v3238_v46  ;;  %v1442_v0 = vmul.f32 %v3266_v58, %v3266_v58 }
 0x237   :  { %v1542_v6 = vadd.f32 %v1541_v24, %v1438_v60  ;;  %v1326_v28 = vadd.f32 %v1325_v44, %v3245_v16  ;;  %v1443_v60 = vmul.f32 %v3273_v32, %v3273_v32 }
 0x239   :  { %v1543_v22 = vadd.f32 %v1542_v6, %v1439_v14  ;;  %v1327_v8 = vadd.f32 %v1326_v28, %v3252_v34  ;;  %v1444_v14 = vmul.f32 %v3280_v30, %v3280_v30 }
 0x23b   :  { %v1544_v27 = vadd.f32 %v1543_v22, %v1440_v36  ;;  %v1328_v50 = vadd.f32 %v1327_v8, %v3259_v52  ;;  %v1445_v36 = vmul.f32 %v3287_v12, %v3287_v12 }
 0x23d   :  { %v1545_v4 = vadd.f32 %v1544_v27, %v1441_v42  ;;  %v1329_v63 = vadd.f32 %v1328_v50, %v3266_v58  ;;  %v1446_v42 = vmul.f32 %v3294_v2, %v3294_v2 }
 0x23f   :  { %v1546_v24 = vadd.f32 %v1545_v4, %v1442_v0  ;;  %v1330_v44 = vadd.f32 %v1329_v63, %v3273_v32  ;;  %v1447_v0 = vmul.f32 %v3301_v56, %v3301_v56 }
 0x241   :  { %v1547_v6 = vadd.f32 %v1546_v24, %v1443_v60  ;;  %v1331_v28 = vadd.f32 %v1330_v44, %v3280_v30  ;;  %v5724_v44 = vld [vmem:[#allocation60_spill] sm:$0xff] }
 0x243   :  { %v1548_v22 = vadd.f32 %v1547_v6, %v1444_v14  ;;  %v1332_v8 = vadd.f32 %v1331_v28, %v3287_v12  ;;  %v1448_v6 = vmul.f32 %v5724_v44, %v5724_v44  ;;  %v5725_v14 = vld [vmem:[#allocation62_spill] sm:$0xff] }
 0x245   :  { %v1549_v27 = vadd.f32 %v1548_v22, %v1445_v36  ;;  %v1333_v50 = vadd.f32 %v1332_v8, %v3294_v2  ;;  %v1449_v8 = vmul.f32 %v5725_v14, %v5725_v14  ;;  %v5726_v36 = vld [vmem:[#allocation64_spill] sm:$0xff] }
 0x247   :  { %v1550_v4 = vadd.f32 %v1549_v27, %v1446_v42  ;;  %v1334_v63 = vadd.f32 %v1333_v50, %v3301_v56  ;;  %v1450_v27 = vmul.f32 %v5726_v36, %v5726_v36 }
 0x249   :  { %v1551_v24 = vadd.f32 %v1550_v4, %v1447_v0  ;;  %v1335_v60 = vadd.f32 %v1334_v63, %v5724_v44 }
 0x24b   :  { %v1552_v28 = vadd.f32 %v1551_v24, %v1448_v6  ;;  %v1336_v22 = vadd.f32 %v1335_v60, %v5725_v14 }
 0x24d   :  { %v1553_v42 = vadd.f32 %v1552_v28, %v1449_v8  ;;  %v1337_v50 = vadd.f32 %v1336_v22, %v5726_v36  ;;  %v1573_v22 = vlaneseq }
 0x24f   :  { %v1338_v2 = vrot.slane %v1337_v50, 4  ;;  %v1554_v56 = vadd.f32 %v1553_v42, %v1450_v27  ;;  %v3495_v27 = vshrl.u32 %v1573_v22, 7  ;;  %v5728_v42 = vld [vmem:[#allocation3_spill] sm:$0xff] }
 0x251   :  { %v1339_v4 = vadd.f32 %v1338_v2, %v1337_v50  ;;  %v1555_v0 = vrot.slane %v1554_v56, 4  ;;  %v1565_v2 = vld [vmem:[%s5482_s2] sm:$0x1] }
 0x253   :  { %v1340_v63 = vrot.slane %v1339_v4, 2  ;;  %v1556_v12 = vadd.f32 %v1555_v0, %v1554_v56  ;;  %v5552_v56 = vsub.s32 0, %v3495_v27 }
 0x255   :  { %v1341_v30 = vadd.f32 %v1340_v63, %v1339_v4  ;;  %v1557_v44 = vrot.slane %v1556_v12, 2  ;;  %v5729_v4 = vld [vmem:[#allocation4_spill] sm:$0xff] }
 0x257   :  { %v1342_v24 = vrot.slane %v1341_v30, 1  ;;  %v1558_v6 = vadd.f32 %v1557_v44, %v1556_v12  ;;  %v5727_v44 = vld [vmem:[#allocation2_spill] sm:$0xff] }
 0x259   :  { %v1343_v60 = vadd.f32 %v1342_v24, %v1341_v30  ;;  %v1559_v32 = vrot.slane %v1558_v6, 1  ;;  %v5731_v24 = vld [vmem:[#allocation6_spill] sm:$0xff] }
 0x25b   :  { %v1345_v58 = vmul.f32 0.0011904762, %v1343_v60  ;;  %v1560_v14 = vadd.f32 %v1559_v32, %v1558_v6  ;;  %v3504_v32 = vld [vmem:[%s5483_s3] sm:$0x1]  ;;  %v5732_v60 = vld [vmem:[#allocation7_spill] sm:$0xff] }
 0x25d   :  { %v1561_v52 = vmul.f32 0.0011904762, %v1560_v14  ;;  %v1562_v34 = vmul.f32 %v1345_v58, %v1345_v58 }
 0x25f   :  { %v1563_v16 = vsub.f32 %v1561_v52, %v1562_v34  ;;  %v5743_v52 = vld [vmem:[#allocation14_spill] sm:$0xff] }
 0x261   :  { %v1564_v28 = vmax.f32 %v1563_v16, 0.0 }
 0x263   :  { %v1566_v8 = vadd.f32 1e-05, %v1564_v28 }
 0x265   :  { %2547 = vrsqrt.f32 %v1566_v8  ;;  %v5733_v8 = vld [vmem:[#allocation8_spill] sm:$0xff] }
 0x26f   :  { %v2548_v12 = vpop.eup %2547 }
 0x270   :  { %v1568_v30 = vmul.f32 %v2548_v12, %v1565_v2  ;;  %v5734_v2 = vld [vmem:[#allocation9_spill] sm:$0xff] }
 0x272   :  { %v3506_v34 = vmul.f32 %v1568_v30, %v1345_v58  ;;  %v3510_v16 = vrot.slane %v1568_v30, %v5552_v56  ;;  %v5730_v58 = vld [vmem:[#allocation5_spill] sm:$0xff]  ;;  %v5735_v30 = vld [vmem:[#allocation10_spill] sm:$0xff]  ;;  %v5745_v56 = vld [vmem:[#allocation15_spill] sm:$0xff] }
 0x274   :  { %v3516_v14 = vmul.f32 %v3510_v16, %v5727_v44  ;;  %v3520_v50 = vmul.f32 %v3510_v16, %v5728_v42  ;;  %v3524_v0 = vmul.f32 %v3510_v16, %v5729_v4  ;;  %v3528_v63 = vmul.f32 %v3510_v16, %v5730_v58  ;;  %v5737_v42 = vld [vmem:[#allocation11_spill] sm:$0xff]  ;;  %v5739_v58 = vld [vmem:[#allocation12_spill] sm:$0xff] }
 0x275   :  { %v3532_v6 = vmul.f32 %v3510_v16, %v5731_v24  ;;  %v3536_v28 = vmul.f32 %v3510_v16, %v5732_v60  ;;  %v3540_v22 = vmul.f32 %v3510_v16, %v5733_v8  ;;  %v3544_v12 = vmul.f32 %v3510_v16, %v5734_v2  ;;  %v5741_v60 = vld [vmem:[#allocation13_spill] sm:$0xff] }
 0x276   :  { %v3548_v44 = vmul.f32 %v3510_v16, %v5735_v30  ;;  %v3552_v4 = vmul.f32 %v3510_v16, %v5737_v42  ;;  %v3556_v24 = vmul.f32 %v3510_v16, %v5739_v58  ;;  %v3560_v8 = vmul.f32 %v3510_v16, %v5741_v60 }
 0x277   :  { %v3564_v2 = vmul.f32 %v3510_v16, %v5743_v52  ;;  %v3568_v30 = vmul.f32 %v3510_v16, %v5745_v56 }
 0x278   :  { %5736 = vst [vmem:[#allocation64_spill] sm:$0xff] %v3548_v44  ;;  %5738 = vst [vmem:[#allocation2_spill] sm:$0xff] %v3552_v4  ;;  %v5747_v44 = vld [vmem:[#allocation16_spill] sm:$0xff]  ;;  %v5749_v4 = vld [vmem:[#allocation17_spill] sm:$0xff] }
 0x279   :  { %5740 = vst [vmem:[#allocation3_spill] sm:$0xff] %v3556_v24  ;;  %5742 = vst [vmem:[#allocation4_spill] sm:$0xff] %v3560_v8  ;;  %v3572_v42 = vmul.f32 %v3510_v16, %v5747_v44  ;;  %v3576_v58 = vmul.f32 %v3510_v16, %v5749_v4  ;;  %v5751_v24 = vld [vmem:[#allocation18_spill] sm:$0xff]  ;;  %v5753_v8 = vld [vmem:[#allocation19_spill] sm:$0xff] }
 0x27a   :  { %5744 = vst [vmem:[#allocation5_spill] sm:$0xff] %v3564_v2  ;;  %5746 = vst [vmem:[#allocation6_spill] sm:$0xff] %v3568_v30  ;;  %v3580_v60 = vmul.f32 %v3510_v16, %v5751_v24  ;;  %v3584_v52 = vmul.f32 %v3510_v16, %v5753_v8  ;;  %v5755_v2 = vld [vmem:[#allocation20_spill] sm:$0xff]  ;;  %v5757_v30 = vld [vmem:[#allocation21_spill] sm:$0xff] }
 0x27b   :  { %5748 = vst [vmem:[#allocation7_spill] sm:$0xff] %v3572_v42  ;;  %5750 = vst [vmem:[#allocation8_spill] sm:$0xff] %v3576_v58  ;;  %v3588_v56 = vmul.f32 %v3510_v16, %v5755_v2  ;;  %v3592_v44 = vmul.f32 %v3510_v16, %v5757_v30  ;;  %v5759_v42 = vld [vmem:[#allocation22_spill] sm:$0xff]  ;;  %v5761_v58 = vld [vmem:[#allocation23_spill] sm:$0xff] }
 0x27c   :  { %5752 = vst [vmem:[#allocation9_spill] sm:$0xff] %v3580_v60  ;;  %5754 = vst [vmem:[#allocation10_spill] sm:$0xff] %v3584_v52  ;;  %v3596_v4 = vmul.f32 %v3510_v16, %v5759_v42  ;;  %v3600_v24 = vmul.f32 %v3510_v16, %v5761_v58  ;;  %v5763_v60 = vld [vmem:[#allocation24_spill] sm:$0xff]  ;;  %v5765_v52 = vld [vmem:[#allocation25_spill] sm:$0xff] }
 0x27d   :  { %5756 = vst [vmem:[#allocation11_spill] sm:$0xff] %v3588_v56  ;;  %5758 = vst [vmem:[#allocation12_spill] sm:$0xff] %v3592_v44  ;;  %v3604_v8 = vmul.f32 %v3510_v16, %v5763_v60  ;;  %v3608_v2 = vmul.f32 %v3510_v16, %v5765_v52  ;;  %v5767_v56 = vld [vmem:[#allocation26_spill] sm:$0xff]  ;;  %v5769_v44 = vld [vmem:[#allocation27_spill] sm:$0xff] }
 0x27e   :  { %5760 = vst [vmem:[#allocation13_spill] sm:$0xff] %v3596_v4  ;;  %5762 = vst [vmem:[#allocation14_spill] sm:$0xff] %v3600_v24  ;;  %v3612_v30 = vmul.f32 %v3510_v16, %v5767_v56  ;;  %v3616_v42 = vmul.f32 %v3510_v16, %v5769_v44  ;;  %v5771_v4 = vld [vmem:[#allocation28_spill] sm:$0xff]  ;;  %v5773_v24 = vld [vmem:[#allocation29_spill] sm:$0xff] }
 0x27f   :  { %5764 = vst [vmem:[#allocation15_spill] sm:$0xff] %v3604_v8  ;;  %5766 = vst [vmem:[#allocation16_spill] sm:$0xff] %v3608_v2  ;;  %v3620_v58 = vmul.f32 %v3510_v16, %v5771_v4  ;;  %v3624_v60 = vmul.f32 %v3510_v16, %v5773_v24  ;;  %v5775_v8 = vld [vmem:[#allocation30_spill] sm:$0xff]  ;;  %v5777_v2 = vld [vmem:[#allocation31_spill] sm:$0xff] }
 0x280   :  { %5768 = vst [vmem:[#allocation17_spill] sm:$0xff] %v3612_v30  ;;  %5770 = vst [vmem:[#allocation18_spill] sm:$0xff] %v3616_v42  ;;  %v3628_v52 = vmul.f32 %v3510_v16, %v5775_v8  ;;  %v3632_v56 = vmul.f32 %v3510_v16, %v5777_v2  ;;  %v5779_v30 = vld [vmem:[#allocation32_spill] sm:$0xff]  ;;  %v5781_v42 = vld [vmem:[#allocation33_spill] sm:$0xff] }
 0x281   :  { %5772 = vst [vmem:[#allocation19_spill] sm:$0xff] %v3620_v58  ;;  %5774 = vst [vmem:[#allocation20_spill] sm:$0xff] %v3624_v60  ;;  %v3636_v44 = vmul.f32 %v3510_v16, %v5779_v30  ;;  %v3640_v4 = vmul.f32 %v3510_v16, %v5781_v42  ;;  %v5783_v58 = vld [vmem:[#allocation34_spill] sm:$0xff]  ;;  %v5785_v60 = vld [vmem:[#allocation35_spill] sm:$0xff] }
 0x282   :  { %5776 = vst [vmem:[#allocation21_spill] sm:$0xff] %v3628_v52  ;;  %5778 = vst [vmem:[#allocation22_spill] sm:$0xff] %v3632_v56  ;;  %v3644_v24 = vmul.f32 %v3510_v16, %v5783_v58  ;;  %v3648_v8 = vmul.f32 %v3510_v16, %v5785_v60  ;;  %v5787_v52 = vld [vmem:[#allocation36_spill] sm:$0xff]  ;;  %v5789_v56 = vld [vmem:[#allocation37_spill] sm:$0xff] }
 0x283   :  { %5780 = vst [vmem:[#allocation23_spill] sm:$0xff] %v3636_v44  ;;  %5782 = vst [vmem:[#allocation24_spill] sm:$0xff] %v3640_v4  ;;  %v3652_v2 = vmul.f32 %v3510_v16, %v5787_v52  ;;  %v3656_v30 = vmul.f32 %v3510_v16, %v5789_v56  ;;  %v5791_v44 = vld [vmem:[#allocation38_spill] sm:$0xff]  ;;  %v5793_v4 = vld [vmem:[#allocation39_spill] sm:$0xff] }
 0x284   :  { %5784 = vst [vmem:[#allocation25_spill] sm:$0xff] %v3644_v24  ;;  %5786 = vst [vmem:[#allocation26_spill] sm:$0xff] %v3648_v8  ;;  %v3660_v42 = vmul.f32 %v3510_v16, %v5791_v44  ;;  %v3664_v58 = vmul.f32 %v3510_v16, %v5793_v4  ;;  %v5795_v24 = vld [vmem:[#allocation40_spill] sm:$0xff]  ;;  %v5797_v8 = vld [vmem:[#allocation41_spill] sm:$0xff] }
 0x285   :  { %5788 = vst [vmem:[#allocation27_spill] sm:$0xff] %v3652_v2  ;;  %5790 = vst [vmem:[#allocation28_spill] sm:$0xff] %v3656_v30  ;;  %v3668_v60 = vmul.f32 %v3510_v16, %v5795_v24  ;;  %v3672_v52 = vmul.f32 %v3510_v16, %v5797_v8  ;;  %v5799_v2 = vld [vmem:[#allocation43_spill] sm:$0xff]  ;;  %v5801_v30 = vld [vmem:[#allocation45_spill] sm:$0xff] }
 0x286   :  { %5792 = vst [vmem:[#allocation29_spill] sm:$0xff] %v3660_v42  ;;  %5794 = vst [vmem:[#allocation30_spill] sm:$0xff] %v3664_v58  ;;  %v3676_v56 = vmul.f32 %v3510_v16, %v5799_v2  ;;  %v3680_v44 = vmul.f32 %v3510_v16, %v5801_v30  ;;  %v5803_v42 = vld [vmem:[#allocation47_spill] sm:$0xff]  ;;  %v5805_v58 = vld [vmem:[#allocation49_spill] sm:$0xff] }
 0x287   :  { %5796 = vst [vmem:[#allocation31_spill] sm:$0xff] %v3668_v60  ;;  %5798 = vst [vmem:[#allocation32_spill] sm:$0xff] %v3672_v52  ;;  %v3684_v4 = vmul.f32 %v3510_v16, %v5803_v42  ;;  %v3688_v24 = vmul.f32 %v3510_v16, %v5805_v58  ;;  %v5807_v60 = vld [vmem:[#allocation51_spill] sm:$0xff]  ;;  %v5809_v52 = vld [vmem:[#allocation53_spill] sm:$0xff] }
 0x288   :  { %5800 = vst [vmem:[#allocation33_spill] sm:$0xff] %v3676_v56  ;;  %5802 = vst [vmem:[#allocation34_spill] sm:$0xff] %v3680_v44  ;;  %v3692_v8 = vmul.f32 %v3510_v16, %v5807_v60  ;;  %v3696_v2 = vmul.f32 %v3510_v16, %v5809_v52  ;;  %v5810_v56 = vld [vmem:[#allocation55_spill] sm:$0xff]  ;;  %v5812_v44 = vld [vmem:[#allocation57_spill] sm:$0xff] }
 0x289   :  { %5804 = vst [vmem:[#allocation35_spill] sm:$0xff] %v3684_v4  ;;  %5806 = vst [vmem:[#allocation36_spill] sm:$0xff] %v3688_v24  ;;  %v3700_v30 = vmul.f32 %v3510_v16, %v5810_v56  ;;  %v3704_v42 = vmul.f32 %v3510_v16, %v5812_v44  ;;  %v5814_v4 = vld [vmem:[#allocation59_spill] sm:$0xff]  ;;  %v5815_v24 = vld [vmem:[#allocation61_spill] sm:$0xff]  ;;  %v3720_v56 = vmul.f32 %v3510_v16, %v3327_v7 }
 0x28a   :  { %5808 = vst [vmem:[#allocation37_spill] sm:$0xff] %v3692_v8  ;;  %v3708_v58 = vmul.f32 %v3510_v16, %v5814_v4  ;;  %v3712_v60 = vmul.f32 %v3510_v16, %v5815_v24  ;;  %v5816_v8 = vld [vmem:[#allocation63_spill] sm:$0xff]  ;;  %v3732_v24 = vmul.f32 %v3510_v16, %v2972_v61  ;;  %v3740_v7 = vmul.f32 %v3510_v16, %v2986_v9 }
 0x28b   :  { %5811 = vst [vmem:[#allocation38_spill] sm:$0xff] %v3700_v30  ;;  %5813 = vst [vmem:[#allocation39_spill] sm:$0xff] %v3704_v42  ;;  %v3716_v52 = vmul.f32 %v3510_v16, %v5816_v8  ;;  %v5817_v30 = vld [vmem:[#allocation65_spill] sm:$0xff]  ;;  %v5818_v42 = vld [vmem:[#allocation66_spill] sm:$0xff]  ;;  %v3736_v8 = vmul.f32 %v3510_v16, %v2976_v1  ;;  %v3752_v61 = vmul.f32 %v3510_v16, %v3007_v29 }
 0x28c   :  { %v3724_v44 = vmul.f32 %v3510_v16, %v5817_v30  ;;  %v3728_v4 = vmul.f32 %v3510_v16, %v5818_v42  ;;  %v3744_v30 = vmul.f32 %v3510_v16, %v2993_v15  ;;  %v3748_v42 = vmul.f32 %v3510_v16, %v3000_v23 }
 0x28d   :  { %v3756_v1 = vmul.f32 %v3510_v16, %v3014_v37  ;;  %v3760_v9 = vmul.f32 %v3510_v16, %v3021_v43  ;;  %v3764_v15 = vmul.f32 %v3510_v16, %v3028_v51  ;;  %v3768_v23 = vmul.f32 %v3510_v16, %v3035_v57 }
 0x28e   :  { %v3772_v29 = vmul.f32 %v3510_v16, %v3042_v5  ;;  %v3776_v37 = vmul.f32 %v3510_v16, %v3049_v13  ;;  %v3780_v43 = vmul.f32 %v3510_v16, %v3056_v25  ;;  %v3784_v51 = vmul.f32 %v3510_v16, %v3063_v33 }
 0x28f   :  { %v3788_v57 = vmul.f32 %v3510_v16, %v3070_v45  ;;  %v3792_v5 = vmul.f32 %v3510_v16, %v3077_v53  ;;  %v3796_v13 = vmul.f32 %v3510_v16, %v3084_v3  ;;  %v3800_v25 = vmul.f32 %v3510_v16, %v3091_v17 }
 0x290   :  { %v3804_v33 = vmul.f32 %v3510_v16, %v3098_v31  ;;  %v3808_v45 = vmul.f32 %v3510_v16, %v3105_v41  ;;  %v3812_v53 = vmul.f32 %v3510_v16, %v3112_v59  ;;  %v3816_v3 = vmul.f32 %v3510_v16, %v3119_v11 }
 0x291   :  { %v3820_v17 = vmul.f32 %v3510_v16, %v3126_v35  ;;  %v3824_v31 = vmul.f32 %v3510_v16, %v3133_v49  ;;  %v3828_v41 = vmul.f32 %v3510_v16, %v3140_v19  ;;  %v3832_v59 = vmul.f32 %v3510_v16, %v3147_v38 }
 0x292   :  { %v3836_v11 = vmul.f32 %v3510_v16, %v3154_v55  ;;  %v3840_v35 = vmul.f32 %v3510_v16, %v3161_v20  ;;  %v3844_v49 = vmul.f32 %v3510_v16, %v3168_v47  ;;  %v3848_v19 = vmul.f32 %v3510_v16, %v3175_v26 }
 0x293   :  { %v3852_v38 = vmul.f32 %v3510_v16, %v3182_v62  ;;  %v3856_v55 = vmul.f32 %v3510_v16, %v3189_v18  ;;  %v3860_v20 = vmul.f32 %v3510_v16, %v3196_v54  ;;  %v3864_v47 = vmul.f32 %v3510_v16, %v3203_v48 }
 0x294   :  { %v3868_v26 = vmul.f32 %v3510_v16, %v3210_v39  ;;  %v3872_v62 = vmul.f32 %v3510_v16, %v3217_v10  ;;  %v3876_v18 = vmul.f32 %v3510_v16, %v3224_v21  ;;  %v3880_v54 = vmul.f32 %v3510_v16, %v3231_v40 }
 0x295   :  { %5819 = vst [vmem:[#allocation40_spill] sm:$0xff] %v3864_v47  ;;  %v3884_v48 = vmul.f32 %v3510_v16, %v3238_v46  ;;  %v5825_v47 = vld [vmem:[#allocation42_spill] sm:$0xff] }
 0x296   :  { %5820 = vst [vmem:[#allocation41_spill] sm:$0xff] %v3868_v26  ;;  %5821 = vst [vmem:[#allocation43_spill] sm:$0xff] %v3872_v62  ;;  %v3888_v39 = vmul.f32 %v3510_v16, %v5825_v47  ;;  %v5827_v26 = vld [vmem:[#allocation44_spill] sm:$0xff]  ;;  %v5829_v62 = vld [vmem:[#allocation46_spill] sm:$0xff] }
 0x297   :  { %5822 = vst [vmem:[#allocation45_spill] sm:$0xff] %v3876_v18  ;;  %5823 = vst [vmem:[#allocation47_spill] sm:$0xff] %v3880_v54  ;;  %v3892_v10 = vmul.f32 %v3510_v16, %v5827_v26  ;;  %v3896_v21 = vmul.f32 %v3510_v16, %v5829_v62  ;;  %v5831_v18 = vld [vmem:[#allocation48_spill] sm:$0xff]  ;;  %v5833_v54 = vld [vmem:[#allocation50_spill] sm:$0xff] }
 0x298   :  { %5824 = vst [vmem:[#allocation49_spill] sm:$0xff] %v3884_v48  ;;  %5826 = vst [vmem:[#allocation51_spill] sm:$0xff] %v3888_v39  ;;  %v3900_v40 = vmul.f32 %v3510_v16, %v5831_v18  ;;  %v3904_v46 = vmul.f32 %v3510_v16, %v5833_v54  ;;  %v5835_v48 = vld [vmem:[#allocation52_spill] sm:$0xff]  ;;  %v5836_v39 = vld [vmem:[#allocation54_spill] sm:$0xff] }
 0x299   :  { %5828 = vst [vmem:[#allocation53_spill] sm:$0xff] %v3892_v10  ;;  %5830 = vst [vmem:[#allocation55_spill] sm:$0xff] %v3896_v21  ;;  %v3908_v47 = vmul.f32 %v3510_v16, %v5835_v48  ;;  %v3912_v26 = vmul.f32 %v3510_v16, %v5836_v39  ;;  %v5838_v10 = vld [vmem:[#allocation56_spill] sm:$0xff]  ;;  %v5840_v21 = vld [vmem:[#allocation58_spill] sm:$0xff]  ;;  %v3932_v39 = vmul.f32 %v3510_v16, %v5726_v36 }
 0x29a   :  { %5832 = vst [vmem:[#allocation57_spill] sm:$0xff] %v3900_v40  ;;  %5834 = vst [vmem:[#allocation59_spill] sm:$0xff] %v3904_v46  ;;  %v3916_v62 = vmul.f32 %v3510_v16, %v5838_v10  ;;  %v3920_v18 = vmul.f32 %v3510_v16, %v5840_v21  ;;  %v5841_v40 = vld [vmem:[#allocation60_spill] sm:$0xff]  ;;  %v5842_v46 = vld [vmem:[#allocation62_spill] sm:$0xff]  ;;  %v5844_v10 = vsub.f32 %v3504_v32, %v3506_v34 }
 0x29b   :  { %5837 = vst [vmem:[#allocation61_spill] sm:$0xff] %v3912_v26  ;;  %v3924_v54 = vmul.f32 %v3510_v16, %v5841_v40  ;;  %v3928_v48 = vmul.f32 %v3510_v16, %v5842_v46  ;;  %v5843_v26 = vsub.s32 0, %v3495_v27 }
 0x29c   :  { %5839 = vst [vmem:[#allocation63_spill] sm:$0xff] %v3916_v62 }
 0x29d   :  { %v3939_v62 = vrot.slane %v5844_v10, %v5843_v26  ;;  %v5852_v26 = vld [vmem:[#allocation4_spill] sm:$0xff]  ;;  %v5854_v10 = vld [vmem:[#allocation5_spill] sm:$0xff] }
 0x29f   :  { %v3943_v21 = vadd.f32 %v3939_v62, %v3516_v14  ;;  %v3947_v40 = vadd.f32 %v3939_v62, %v3520_v50  ;;  %v3951_v46 = vadd.f32 %v3939_v62, %v3524_v0  ;;  %v3955_v36 = vadd.f32 %v3939_v62, %v3528_v63  ;;  %v5846_v14 = vld [vmem:[#allocation64_spill] sm:$0xff]  ;;  %v5848_v0 = vld [vmem:[#allocation2_spill] sm:$0xff] }
 0x2a0   :  { %v3959_v27 = vadd.f32 %v3939_v62, %v3532_v6  ;;  %v3963_v32 = vadd.f32 %v3939_v62, %v3536_v28  ;;  %v3967_v34 = vadd.f32 %v3939_v62, %v3540_v22  ;;  %v3971_v16 = vadd.f32 %v3939_v62, %v3544_v12  ;;  %v5850_v6 = vld [vmem:[#allocation3_spill] sm:$0xff] }
 0x2a1   :  { %v3975_v50 = vadd.f32 %v3939_v62, %v5846_v14  ;;  %v3979_v63 = vadd.f32 %v3939_v62, %v5848_v0  ;;  %v3983_v28 = vadd.f32 %v3939_v62, %v5850_v6  ;;  %v3987_v22 = vadd.f32 %v3939_v62, %v5852_v26 }
 0x2a2   :  { %5845 = vst [vmem:[#allocation65_spill] sm:$0xff] %v3971_v16  ;;  %v3991_v12 = vadd.f32 %v3939_v62, %v5854_v10  ;;  %v5856_v16 = vld [vmem:[#allocation6_spill] sm:$0xff]  ;;  %vm1794_vm0 = vcmp.ge.f32.partialorder %v3943_v21, 0.0  ;;  %vm1795_vm1 = vcmp.ge.f32.partialorder %v3947_v40, 0.0  ;;  %vm1796_vm2 = vcmp.ge.f32.partialorder %v3951_v46, 0.0 }
 0x2a3   :  { %5847 = vst [vmem:[#allocation66_spill] sm:$0xff] %v3975_v50  ;;  %5849 = vst [vmem:[#allocation42_spill] sm:$0xff] %v3979_v63  ;;  %v3995_v14 = vadd.f32 %v3939_v62, %v5856_v16  ;;  %v5858_v50 = vld [vmem:[#allocation7_spill] sm:$0xff]  ;;  %v5860_v63 = vld [vmem:[#allocation8_spill] sm:$0xff]  ;;  %vm1797_vm3 = vcmp.ge.f32.partialorder %v3955_v36, 0.0  ;;  %vm1798_vm4 = vcmp.ge.f32.partialorder %v3959_v27, 0.0 }
 0x2a4   :  { %5851 = vst [vmem:[#allocation44_spill] sm:$0xff] %v3983_v28  ;;  %5853 = vst [vmem:[#allocation46_spill] sm:$0xff] %v3987_v22  ;;  %v3999_v0 = vadd.f32 %v3939_v62, %v5858_v50  ;;  %v4003_v6 = vadd.f32 %v3939_v62, %v5860_v63  ;;  %v5862_v28 = vld [vmem:[#allocation9_spill] sm:$0xff]  ;;  %v5864_v22 = vld [vmem:[#allocation10_spill] sm:$0xff]  ;;  %vm1799_vm5 = vcmp.ge.f32.partialorder %v3963_v32, 0.0  ;;  %vm1800_vm6 = vcmp.ge.f32.partialorder %v3967_v34, 0.0 }
 0x2a5   :  { %5855 = vst [vmem:[#allocation48_spill] sm:$0xff] %v3991_v12  ;;  %5857 = vst [vmem:[#allocation50_spill] sm:$0xff] %v3995_v14  ;;  %v4007_v26 = vadd.f32 %v3939_v62, %v5862_v28  ;;  %v4011_v10 = vadd.f32 %v3939_v62, %v5864_v22  ;;  %v5866_v12 = vld [vmem:[#allocation11_spill] sm:$0xff]  ;;  %v5868_v14 = vld [vmem:[#allocation12_spill] sm:$0xff] }
 0x2a6   :  { %5859 = vst [vmem:[#allocation52_spill] sm:$0xff] %v3999_v0  ;;  %5861 = vst [vmem:[#allocation54_spill] sm:$0xff] %v4003_v6  ;;  %v4015_v16 = vadd.f32 %v3939_v62, %v5866_v12  ;;  %v4019_v50 = vadd.f32 %v3939_v62, %v5868_v14  ;;  %v5870_v0 = vld [vmem:[#allocation13_spill] sm:$0xff]  ;;  %v5872_v6 = vld [vmem:[#allocation14_spill] sm:$0xff] }
 0x2a7   :  { %5863 = vst [vmem:[#allocation56_spill] sm:$0xff] %v4007_v26  ;;  %5865 = vst [vmem:[#allocation58_spill] sm:$0xff] %v4011_v10  ;;  %v4023_v63 = vadd.f32 %v3939_v62, %v5870_v0  ;;  %v4027_v28 = vadd.f32 %v3939_v62, %v5872_v6  ;;  %v5874_v26 = vld [vmem:[#allocation15_spill] sm:$0xff]  ;;  %v5876_v10 = vld [vmem:[#allocation16_spill] sm:$0xff] }
 0x2a8   :  { %5867 = vst [vmem:[#allocation60_spill] sm:$0xff] %v4015_v16  ;;  %5869 = vst [vmem:[#allocation62_spill] sm:$0xff] %v4019_v50  ;;  %v4031_v22 = vadd.f32 %v3939_v62, %v5874_v26  ;;  %v4035_v12 = vadd.f32 %v3939_v62, %v5876_v10  ;;  %v5878_v16 = vld [vmem:[#allocation17_spill] sm:$0xff]  ;;  %v5880_v50 = vld [vmem:[#allocation18_spill] sm:$0xff] }
 0x2a9   :  { %5871 = vst [vmem:[#allocation64_spill] sm:$0xff] %v4023_v63  ;;  %5873 = vst [vmem:[#allocation2_spill] sm:$0xff] %v4027_v28  ;;  %v4039_v14 = vadd.f32 %v3939_v62, %v5878_v16  ;;  %v4043_v0 = vadd.f32 %v3939_v62, %v5880_v50  ;;  %v5882_v63 = vld [vmem:[#allocation19_spill] sm:$0xff]  ;;  %v5884_v28 = vld [vmem:[#allocation20_spill] sm:$0xff] }
 0x2aa   :  { %5875 = vst [vmem:[#allocation3_spill] sm:$0xff] %v4031_v22  ;;  %5877 = vst [vmem:[#allocation4_spill] sm:$0xff] %v4035_v12  ;;  %v4047_v6 = vadd.f32 %v3939_v62, %v5882_v63  ;;  %v4051_v26 = vadd.f32 %v3939_v62, %v5884_v28  ;;  %v5886_v22 = vld [vmem:[#allocation21_spill] sm:$0xff]  ;;  %v5888_v12 = vld [vmem:[#allocation22_spill] sm:$0xff] }
 0x2ab   :  { %5879 = vst [vmem:[#allocation5_spill] sm:$0xff] %v4039_v14  ;;  %5881 = vst [vmem:[#allocation6_spill] sm:$0xff] %v4043_v0  ;;  %v4055_v10 = vadd.f32 %v3939_v62, %v5886_v22  ;;  %v4059_v16 = vadd.f32 %v3939_v62, %v5888_v12  ;;  %v5890_v14 = vld [vmem:[#allocation23_spill] sm:$0xff]  ;;  %v5892_v0 = vld [vmem:[#allocation24_spill] sm:$0xff] }
 0x2ac   :  { %5883 = vst [vmem:[#allocation7_spill] sm:$0xff] %v4047_v6  ;;  %5885 = vst [vmem:[#allocation8_spill] sm:$0xff] %v4051_v26  ;;  %v4063_v50 = vadd.f32 %v3939_v62, %v5890_v14  ;;  %v4067_v63 = vadd.f32 %v3939_v62, %v5892_v0  ;;  %v5894_v6 = vld [vmem:[#allocation25_spill] sm:$0xff]  ;;  %v5896_v26 = vld [vmem:[#allocation26_spill] sm:$0xff] }
 0x2ad   :  { %5887 = vst [vmem:[#allocation9_spill] sm:$0xff] %v4055_v10  ;;  %5889 = vst [vmem:[#allocation10_spill] sm:$0xff] %v4059_v16  ;;  %v4071_v28 = vadd.f32 %v3939_v62, %v5894_v6  ;;  %v4075_v22 = vadd.f32 %v3939_v62, %v5896_v26  ;;  %v5898_v10 = vld [vmem:[#allocation27_spill] sm:$0xff]  ;;  %v5900_v16 = vld [vmem:[#allocation28_spill] sm:$0xff] }
 0x2ae   :  { %5891 = vst [vmem:[#allocation11_spill] sm:$0xff] %v4063_v50  ;;  %5893 = vst [vmem:[#allocation12_spill] sm:$0xff] %v4067_v63  ;;  %v4079_v12 = vadd.f32 %v3939_v62, %v5898_v10  ;;  %v4083_v14 = vadd.f32 %v3939_v62, %v5900_v16  ;;  %v5902_v50 = vld [vmem:[#allocation29_spill] sm:$0xff]  ;;  %v5904_v63 = vld [vmem:[#allocation30_spill] sm:$0xff] }
 0x2af   :  { %5895 = vst [vmem:[#allocation13_spill] sm:$0xff] %v4071_v28  ;;  %5897 = vst [vmem:[#allocation14_spill] sm:$0xff] %v4075_v22  ;;  %v4087_v0 = vadd.f32 %v3939_v62, %v5902_v50  ;;  %v4091_v6 = vadd.f32 %v3939_v62, %v5904_v63  ;;  %v5906_v28 = vld [vmem:[#allocation31_spill] sm:$0xff]  ;;  %v5908_v22 = vld [vmem:[#allocation32_spill] sm:$0xff] }
 0x2b0   :  { %5899 = vst [vmem:[#allocation15_spill] sm:$0xff] %v4079_v12  ;;  %5901 = vst [vmem:[#allocation16_spill] sm:$0xff] %v4083_v14  ;;  %v4095_v26 = vadd.f32 %v3939_v62, %v5906_v28  ;;  %v4099_v10 = vadd.f32 %v3939_v62, %v5908_v22  ;;  %v5909_v12 = vld [vmem:[#allocation33_spill] sm:$0xff]  ;;  %v5911_v14 = vld [vmem:[#allocation34_spill] sm:$0xff] }
 0x2b1   :  { %5903 = vst [vmem:[#allocation17_spill] sm:$0xff] %v4087_v0  ;;  %5905 = vst [vmem:[#allocation18_spill] sm:$0xff] %v4091_v6  ;;  %v4103_v16 = vadd.f32 %v3939_v62, %v5909_v12  ;;  %v4107_v50 = vadd.f32 %v3939_v62, %v5911_v14  ;;  %v5913_v0 = vld [vmem:[#allocation35_spill] sm:$0xff]  ;;  %v5915_v6 = vld [vmem:[#allocation36_spill] sm:$0xff]  ;;  %v4123_v12 = vadd.f32 %v3939_v62, %v3696_v2 }
 0x2b2   :  { %5907 = vst [vmem:[#allocation19_spill] sm:$0xff] %v4095_v26  ;;  %v4111_v63 = vadd.f32 %v3939_v62, %v5913_v0  ;;  %v4115_v28 = vadd.f32 %v3939_v62, %v5915_v6  ;;  %v5917_v26 = vld [vmem:[#allocation37_spill] sm:$0xff]  ;;  %v4135_v6 = vadd.f32 %v3939_v62, %v3708_v58  ;;  %v4143_v2 = vadd.f32 %v3939_v62, %v3716_v52 }
 0x2b3   :  { %5910 = vst [vmem:[#allocation20_spill] sm:$0xff] %v4103_v16  ;;  %5912 = vst [vmem:[#allocation21_spill] sm:$0xff] %v4107_v50  ;;  %v4119_v22 = vadd.f32 %v3939_v62, %v5917_v26  ;;  %v5918_v16 = vld [vmem:[#allocation38_spill] sm:$0xff]  ;;  %v5920_v50 = vld [vmem:[#allocation39_spill] sm:$0xff]  ;;  %v4139_v26 = vadd.f32 %v3939_v62, %v3712_v60  ;;  %v4155_v58 = vadd.f32 %v3939_v62, %v3728_v4 }
 0x2b4   :  { %5914 = vst [vmem:[#allocation22_spill] sm:$0xff] %v4111_v63  ;;  %5916 = vst [vmem:[#allocation23_spill] sm:$0xff] %v4115_v28  ;;  %v4127_v14 = vadd.f32 %v3939_v62, %v5918_v16  ;;  %v4131_v0 = vadd.f32 %v3939_v62, %v5920_v50  ;;  %v4147_v16 = vadd.f32 %v3939_v62, %v3720_v56 }
 0x2b5   :  { %5922 = vst [vmem:[#allocation26_spill] sm:$0xff] %v4143_v2  ;;  %v4151_v50 = vadd.f32 %v3939_v62, %v3724_v44  ;;  %v4159_v60 = vadd.f32 %v3939_v62, %v3732_v24  ;;  %v4163_v52 = vadd.f32 %v3939_v62, %v3736_v8  ;;  %v4167_v56 = vadd.f32 %v3939_v62, %v3740_v7 }
 0x2b6   :  { %5919 = vst [vmem:[#allocation24_spill] sm:$0xff] %v4127_v14  ;;  %5921 = vst [vmem:[#allocation25_spill] sm:$0xff] %v4131_v0  ;;  %v4171_v44 = vadd.f32 %v3939_v62, %v3744_v30  ;;  %v4175_v4 = vadd.f32 %v3939_v62, %v3748_v42  ;;  %v4179_v24 = vadd.f32 %v3939_v62, %v3752_v61 }
 0x2b7   :  { %5923 = vst [vmem:[#allocation27_spill] sm:$0xff] %v4147_v16  ;;  %5924 = vst [vmem:[#allocation28_spill] sm:$0xff] %v4159_v60  ;;  %v4183_v8 = vadd.f32 %v3939_v62, %v3756_v1  ;;  %v4187_v7 = vadd.f32 %v3939_v62, %v3760_v9  ;;  %v4191_v30 = vadd.f32 %v3939_v62, %v3764_v15 }
 0x2b8   :  { %5925 = vst [vmem:[#allocation29_spill] sm:$0xff] %v4163_v52  ;;  %5926 = vst [vmem:[#allocation30_spill] sm:$0xff] %v4175_v4  ;;  %v4195_v42 = vadd.f32 %v3939_v62, %v3768_v23  ;;  %v4199_v61 = vadd.f32 %v3939_v62, %v3772_v29  ;;  %v4203_v1 = vadd.f32 %v3939_v62, %v3776_v37 }
 0x2b9   :  { %5927 = vst [vmem:[#allocation31_spill] sm:$0xff] %v4179_v24  ;;  %5928 = vst [vmem:[#allocation32_spill] sm:$0xff] %v4191_v30  ;;  %v4207_v9 = vadd.f32 %v3939_v62, %v3780_v43  ;;  %v4211_v15 = vadd.f32 %v3939_v62, %v3784_v51  ;;  %v4215_v23 = vadd.f32 %v3939_v62, %v3788_v57 }
 0x2ba   :  { %5929 = vst [vmem:[#allocation33_spill] sm:$0xff] %v4195_v42  ;;  %5930 = vst [vmem:[#allocation34_spill] sm:$0xff] %v4199_v61  ;;  %v4219_v29 = vadd.f32 %v3939_v62, %v3792_v5  ;;  %v4223_v37 = vadd.f32 %v3939_v62, %v3796_v13  ;;  %v4227_v43 = vadd.f32 %v3939_v62, %v3800_v25 }
 0x2bb   :  { %5931 = vst [vmem:[#allocation35_spill] sm:$0xff] %v4203_v1  ;;  %5932 = vst [vmem:[#allocation36_spill] sm:$0xff] %v4207_v9  ;;  %v4231_v51 = vadd.f32 %v3939_v62, %v3804_v33  ;;  %v4235_v57 = vadd.f32 %v3939_v62, %v3808_v45  ;;  %v4239_v5 = vadd.f32 %v3939_v62, %v3812_v53  ;;  %v6002_v9 = vld [vmem:[#allocation3_spill] sm:$0xff] }
 0x2bc   :  { %5933 = vst [vmem:[#allocation37_spill] sm:$0xff] %v4211_v15  ;;  %5934 = vst [vmem:[#allocation38_spill] sm:$0xff] %v4215_v23  ;;  %v4243_v13 = vadd.f32 %v3939_v62, %v3816_v3  ;;  %v4247_v25 = vadd.f32 %v3939_v62, %v3820_v17  ;;  %v4251_v33 = vadd.f32 %v3939_v62, %v3824_v31  ;;  %v4448_v1 = vmul.f32 0.2, %v6002_v9 }
 0x2bd   :  { %5935 = vst [vmem:[#allocation39_spill] sm:$0xff] %v4219_v29  ;;  %5936 = vst [vmem:[#allocation67_spill] sm:$0xff] %v4223_v37  ;;  %v4255_v45 = vadd.f32 %v3939_v62, %v3828_v41  ;;  %v4259_v53 = vadd.f32 %v3939_v62, %v3832_v59  ;;  %v4263_v3 = vadd.f32 %v3939_v62, %v3836_v11  ;;  %v5996_v37 = vld [vmem:[#allocation62_spill] sm:$0xff] }
 0x2be   :  { %5937 = vst [vmem:[#allocation68_spill] sm:$0xff] %v4227_v43  ;;  %5938 = vst [vmem:[#allocation69_spill] sm:$0xff] %v4231_v51  ;;  %v4267_v17 = vadd.f32 %v3939_v62, %v3840_v35  ;;  %v4271_v31 = vadd.f32 %v3939_v62, %v3844_v49  ;;  %v4275_v41 = vadd.f32 %v3939_v62, %v3848_v19  ;;  %v4432_v29 = vmul.f32 0.2, %v5996_v37 }
 0x2bf   :  { %5939 = vst [vmem:[#allocation70_spill] sm:$0xff] %v4235_v57  ;;  %5940 = vst [vmem:[#allocation71_spill] sm:$0xff] %v4239_v5  ;;  %v4279_v59 = vadd.f32 %v3939_v62, %v3852_v38  ;;  %v4283_v11 = vadd.f32 %v3939_v62, %v3856_v55  ;;  %v4287_v35 = vadd.f32 %v3939_v62, %v3860_v20  ;;  %v5993_v5 = vld [vmem:[#allocation56_spill] sm:$0xff] }
 0x2c0   :  { %5941 = vst [vmem:[#allocation72_spill] sm:$0xff] %v4243_v13  ;;  %5942 = vst [vmem:[#allocation73_spill] sm:$0xff] %v4247_v25  ;;  %v4416_v57 = vmul.f32 0.2, %v5993_v5 }
 0x2c1   :  { %5943 = vst [vmem:[#allocation74_spill] sm:$0xff] %v4251_v33  ;;  %5944 = vst [vmem:[#allocation75_spill] sm:$0xff] %v4255_v45  ;;  %v5990_v45 = vld [vmem:[#allocation50_spill] sm:$0xff] }
 0x2c2   :  { %5945 = vst [vmem:[#allocation76_spill] sm:$0xff] %v4259_v53  ;;  %5946 = vst [vmem:[#allocation77_spill] sm:$0xff] %v4263_v3  ;;  %vm1807_vm13 = vcmp.ge.f32.partialorder %v5990_v45, 0.0  ;;  %v4400_v33 = vmul.f32 0.2, %v5990_v45 }
 0x2c3   :  { %5947 = vst [vmem:[#allocation78_spill] sm:$0xff] %v4267_v17  ;;  %5948 = vst [vmem:[#allocation79_spill] sm:$0xff] %v4271_v31  ;;  %v5953_v17 = vld [vmem:[#allocation40_spill] sm:$0xff]  ;;  %v5955_v31 = vld [vmem:[#allocation41_spill] sm:$0xff] }
 0x2c4   :  { %5949 = vst [vmem:[#allocation80_spill] sm:$0xff] %v4275_v41  ;;  %5950 = vst [vmem:[#allocation81_spill] sm:$0xff] %v4279_v59  ;;  %v4291_v49 = vadd.f32 %v3939_v62, %v5953_v17  ;;  %v4295_v19 = vadd.f32 %v3939_v62, %v5955_v31  ;;  %v5957_v41 = vld [vmem:[#allocation43_spill] sm:$0xff]  ;;  %v5959_v59 = vld [vmem:[#allocation45_spill] sm:$0xff] }
 0x2c5   :  { %5951 = vst [vmem:[#allocation82_spill] sm:$0xff] %v4283_v11  ;;  %5952 = vst [vmem:[#allocation83_spill] sm:$0xff] %v4287_v35  ;;  %v4299_v38 = vadd.f32 %v3939_v62, %v5957_v41  ;;  %v4303_v55 = vadd.f32 %v3939_v62, %v5959_v59  ;;  %v5961_v11 = vld [vmem:[#allocation47_spill] sm:$0xff]  ;;  %v5963_v35 = vld [vmem:[#allocation49_spill] sm:$0xff] }
 0x2c6   :  { %5954 = vst [vmem:[#allocation40_spill] sm:$0xff] %v4291_v49  ;;  %5956 = vst [vmem:[#allocation41_spill] sm:$0xff] %v4295_v19  ;;  %v4307_v20 = vadd.f32 %v3939_v62, %v5961_v11  ;;  %v4311_v17 = vadd.f32 %v3939_v62, %v5963_v35  ;;  %v5965_v49 = vld [vmem:[#allocation51_spill] sm:$0xff]  ;;  %v5967_v19 = vld [vmem:[#allocation53_spill] sm:$0xff] }
 0x2c7   :  { %5958 = vst [vmem:[#allocation43_spill] sm:$0xff] %v4299_v38  ;;  %5960 = vst [vmem:[#allocation45_spill] sm:$0xff] %v4303_v55  ;;  %v4315_v31 = vadd.f32 %v3939_v62, %v5965_v49  ;;  %v4319_v41 = vadd.f32 %v3939_v62, %v5967_v19  ;;  %v5969_v38 = vld [vmem:[#allocation55_spill] sm:$0xff]  ;;  %v5971_v55 = vld [vmem:[#allocation57_spill] sm:$0xff]  ;;  %v4335_v49 = vadd.f32 %v3939_v62, %v3908_v47 }
 0x2c8   :  { %5962 = vst [vmem:[#allocation47_spill] sm:$0xff] %v4307_v20  ;;  %5964 = vst [vmem:[#allocation49_spill] sm:$0xff] %v4311_v17  ;;  %v4323_v59 = vadd.f32 %v3939_v62, %v5969_v38  ;;  %v4327_v11 = vadd.f32 %v3939_v62, %v5971_v55  ;;  %v5973_v20 = vld [vmem:[#allocation59_spill] sm:$0xff]  ;;  %v4347_v55 = vadd.f32 %v3939_v62, %v3920_v18  ;;  %v5984_v18 = vld [vmem:[#allocation65_spill] sm:$0xff] }
 0x2c9   :  { %5966 = vst [vmem:[#allocation51_spill] sm:$0xff] %v4315_v31  ;;  %5968 = vst [vmem:[#allocation53_spill] sm:$0xff] %v4319_v41  ;;  %v4331_v35 = vadd.f32 %v3939_v62, %v5973_v20  ;;  %v5976_v31 = vld [vmem:[#allocation61_spill] sm:$0xff]  ;;  %v5978_v41 = vld [vmem:[#allocation63_spill] sm:$0xff]  ;;  %v4351_v20 = vadd.f32 %v3939_v62, %v3924_v54  ;;  %v4355_v47 = vadd.f32 %v3939_v62, %v3928_v48  ;;  %vm1801_vm7 = vcmp.ge.f32.partialorder %v5984_v18, 0.0 }
 0x2ca   :  { %5970 = vst [vmem:[#allocation55_spill] sm:$0xff] %v4323_v59  ;;  %5972 = vst [vmem:[#allocation57_spill] sm:$0xff] %v4327_v11  ;;  %v4339_v19 = vadd.f32 %v3939_v62, %v5976_v31  ;;  %v4343_v38 = vadd.f32 %v3939_v62, %v5978_v41  ;;  %v4359_v31 = vadd.f32 %v3939_v62, %v3932_v39  ;;  %v5985_v54 = vld [vmem:[#allocation66_spill] sm:$0xff]  ;;  %v1899_v48 = vmul.f32 0.2, %v3943_v21  ;;  %v5987_v41 = vld [vmem:[#allocation44_spill] sm:$0xff] }
 0x2cb   :  { %5974 = vst [vmem:[#allocation59_spill] sm:$0xff] %v4331_v35  ;;  %5975 = vst [vmem:[#allocation84_spill] sm:$0xff] %v4335_v49  ;;  %vm1802_vm8 = vcmp.ge.f32.partialorder %v5985_v54, 0.0  ;;  %v5986_v62 = vld [vmem:[#allocation42_spill] sm:$0xff]  ;;  %v1900_v39 = vmul.f32 0.2, %v3947_v40 }
 0x2cc   :  { %5977 = vst [vmem:[#allocation61_spill] sm:$0xff] %v4339_v19  ;;  %5979 = vst [vmem:[#allocation63_spill] sm:$0xff] %v4343_v38  ;;  %vm1803_vm9 = vcmp.ge.f32.partialorder %v5986_v62, 0.0  ;;  %vm1804_vm10 = vcmp.ge.f32.partialorder %v5987_v41, 0.0  ;;  %v1904_v38 = vmul.f32 0.2, %v3963_v32  ;;  %v2004_v35 = vsel %vm1794_vm0, %v3943_v21, %v1899_v48 }
 0x2cd   :  { %5980 = vst [vmem:[#allocation85_spill] sm:$0xff] %v4347_v55  ;;  %5981 = vst [vmem:[#allocation86_spill] sm:$0xff] %v4351_v20  ;;  %v1903_v20 = vmul.f32 0.2, %v3959_v27  ;;  %v5988_v55 = vld [vmem:[#allocation46_spill] sm:$0xff]  ;;  %v5989_v11 = vld [vmem:[#allocation48_spill] sm:$0xff]  ;;  %v2005_v53 = vsel %vm1795_vm1, %v3947_v40, %v1900_v39 }
 0x2ce   :  { %5982 = vst [vmem:[#allocation87_spill] sm:$0xff] %v4355_v47  ;;  %5983 = vst [vmem:[#allocation88_spill] sm:$0xff] %v4359_v31  ;;  %v1901_v31 = vmul.f32 0.2, %v3951_v46  ;;  %v1902_v47 = vmul.f32 0.2, %v3955_v36 }
 0x2cf   :  { %vm1805_vm11 = vcmp.ge.f32.partialorder %v5988_v55, 0.0  ;;  %v1905_v19 = vmul.f32 0.2, %v3967_v34  ;;  %v1906_v49 = vmul.f32 0.2, %v5984_v18  ;;  %vm1806_vm12 = vcmp.ge.f32.partialorder %v5989_v11, 0.0  ;;  %2109 = vst [vmem:[%s5484_s4] sm:$0xff] %v2004_v35 }
 0x2d0   :  { %v1907_v59 = vmul.f32 0.2, %v5985_v54  ;;  %v1908_v17 = vmul.f32 0.2, %v5986_v62  ;;  %v1909_v3 = vmul.f32 0.2, %v5987_v41  ;;  %v2006_v25 = vsel %vm1796_vm2, %v3951_v46, %v1901_v31 }
 0x2d1   :  { %v1910_v21 = vmul.f32 0.2, %v5988_v55  ;;  %v4397_v48 = vmul.f32 0.2, %v5989_v11  ;;  %2110 = vst [vmem:[%s5484_s4 + $0x8] sm:$0xff] %v2005_v53  ;;  %v5991_v40 = vld [vmem:[#allocation52_spill] sm:$0xff]  ;;  %v2007_v51 = vsel %vm1797_vm3, %v3955_v36, %v1902_v47  ;;  %v2008_v23 = vsel %vm1798_vm4, %v3959_v27, %v1903_v20 }
 0x2d2   :  { %vm1808_vm14 = vcmp.ge.f32.partialorder %v5991_v40, 0.0  ;;  %v4410_v35 = vmul.f32 0.2, %v5991_v40  ;;  %v5992_v39 = vld [vmem:[#allocation54_spill] sm:$0xff]  ;;  %2111 = vst [vmem:[%s5484_s4 + $0x10] sm:$0xff] %v2006_v25  ;;  %v5995_v31 = vld [vmem:[#allocation60_spill] sm:$0xff] }
 0x2d3   :  { %v4413_v13 = vmul.f32 0.2, %v5992_v39  ;;  %vm1809_vm15 = vcmp.ge.f32.partialorder %v5992_v39, 0.0  ;;  %v5994_v46 = vld [vmem:[#allocation58_spill] sm:$0xff]  ;;  %v4429_v43 = vmul.f32 0.2, %v5995_v31 }
 0x2d4   :  { %v4426_v53 = vmul.f32 0.2, %v5994_v46  ;;  %5997 = vst [vmem:[#allocation65_spill] sm:$0xff] %v4432_v29  ;;  %2112 = vst [vmem:[%s5484_s4 + $0x18] sm:$0xff] %v2007_v51  ;;  %vm1810_vm0 = vcmp.ge.f32.partialorder %v5993_v5, 0.0  ;;  %v5998_v36 = vld [vmem:[#allocation64_spill] sm:$0xff]  ;;  %v2009_v29 = vsel %vm1799_vm5, %v3963_v32, %v1904_v38 }
 0x2d5   :  { %v4442_v25 = vmul.f32 0.2, %v5998_v36  ;;  %v6000_v47 = vld [vmem:[#allocation2_spill] sm:$0xff]  ;;  %6003 = vst [vmem:[#allocation44_spill] sm:$0xff] %v4448_v1  ;;  %2113 = vst [vmem:[%s5484_s4 + $0x20] sm:$0xff] %v2008_v23  ;;  %vm1811_vm1 = vcmp.ge.f32.partialorder %v5994_v46, 0.0  ;;  %v2010_v1 = vsel %vm1800_vm6, %v3967_v34, %v1905_v19 }
 0x2d6   :  { %v4445_v15 = vmul.f32 0.2, %v6000_v47  ;;  %v6004_v27 = vld [vmem:[#allocation4_spill] sm:$0xff]  ;;  %v6006_v20 = vld [vmem:[#allocation5_spill] sm:$0xff]  ;;  %2114 = vst [vmem:[%s5484_s4 + $0x28] sm:$0xff] %v2009_v29  ;;  %vm1812_vm2 = vcmp.ge.f32.partialorder %v5995_v31, 0.0 }
 0x2d7   :  { %5999 = vst [vmem:[#allocation66_spill] sm:$0xff] %v4442_v25  ;;  %v4458_v51 = vmul.f32 0.2, %v6004_v27  ;;  %v4461_v25 = vmul.f32 0.2, %v6006_v20  ;;  %v6010_v32 = vld [vmem:[#allocation7_spill] sm:$0xff] }
 0x2d8   :  { %6001 = vst [vmem:[#allocation42_spill] sm:$0xff] %v4445_v15  ;;  %v6008_v15 = vld [vmem:[#allocation6_spill] sm:$0xff]  ;;  %v4474_v23 = vmul.f32 0.2, %v6010_v32  ;;  %v6012_v38 = vld [vmem:[#allocation8_spill] sm:$0xff]  ;;  %2115 = vst [vmem:[%s5484_s4 + $0x30] sm:$0xff] %v2010_v1 }
 0x2d9   :  { %6005 = vst [vmem:[#allocation46_spill] sm:$0xff] %v4458_v51  ;;  %6007 = vst [vmem:[#allocation48_spill] sm:$0xff] %v4461_v25  ;;  %v4464_v61 = vmul.f32 0.2, %v6008_v15  ;;  %v4477_v51 = vmul.f32 0.2, %v6012_v38 }
 0x2da   :  { %6011 = vst [vmem:[#allocation52_spill] sm:$0xff] %v4474_v23  ;;  %v6014_v25 = vld [vmem:[#allocation9_spill] sm:$0xff]  ;;  %vm1813_vm3 = vcmp.ge.f32.partialorder %v5996_v37, 0.0  ;;  %v6016_v34 = vld [vmem:[#allocation10_spill] sm:$0xff]  ;;  %v6018_v19 = vld [vmem:[#allocation11_spill] sm:$0xff]  ;;  %vm1814_vm4 = vcmp.ge.f32.partialorder %v5998_v36, 0.0 }
 0x2db   :  { %6009 = vst [vmem:[#allocation50_spill] sm:$0xff] %v4464_v61  ;;  %6013 = vst [vmem:[#allocation54_spill] sm:$0xff] %v4477_v51  ;;  %v4480_v42 = vmul.f32 0.2, %v6014_v25  ;;  %v2011_v61 = vsel %vm1801_vm7, %v5984_v18, %v1906_v49  ;;  %v4490_v29 = vmul.f32 0.2, %v6016_v34 }
 0x2dc   :  { %v4493_v23 = vmul.f32 0.2, %v6018_v19  ;;  %v6020_v51 = vld [vmem:[#allocation12_spill] sm:$0xff]  ;;  %2116 = vst [vmem:[%s5484_s4 + $0x38] sm:$0xff] %v2011_v61  ;;  %v6022_v1 = vld [vmem:[#allocation13_spill] sm:$0xff]  ;;  %v6024_v18 = vld [vmem:[#allocation14_spill] sm:$0xff] }
 0x2dd   :  { %6015 = vst [vmem:[#allocation56_spill] sm:$0xff] %v4480_v42  ;;  %6017 = vst [vmem:[#allocation58_spill] sm:$0xff] %v4490_v29  ;;  %v4496_v30 = vmul.f32 0.2, %v6020_v51  ;;  %v2012_v42 = vsel %vm1802_vm8, %v5985_v54, %v1907_v59  ;;  %v4506_v49 = vmul.f32 0.2, %v6022_v1 }
 0x2de   :  { %6019 = vst [vmem:[#allocation60_spill] sm:$0xff] %v4493_v23  ;;  %v4509_v29 = vmul.f32 0.2, %v6024_v18  ;;  %v6026_v23 = vld [vmem:[#allocation15_spill] sm:$0xff]  ;;  %2117 = vst [vmem:[%s5484_s4 + $0x40] sm:$0xff] %v2012_v42  ;;  %vm1815_vm5 = vcmp.ge.f32.partialorder %v6000_v47, 0.0 }
 0x2df   :  { %6021 = vst [vmem:[#allocation64_spill] sm:$0xff] %v4496_v30  ;;  %6023 = vst [vmem:[#allocation2_spill] sm:$0xff] %v4506_v49  ;;  %v4512_v37 = vmul.f32 0.2, %v6026_v23  ;;  %v2013_v30 = vsel %vm1803_vm9, %v5986_v62, %v1908_v17  ;;  %v6028_v61 = vld [vmem:[#allocation16_spill] sm:$0xff]  ;;  %v6030_v54 = vld [vmem:[#allocation17_spill] sm:$0xff] }
 0x2e0   :  { %6025 = vst [vmem:[#allocation3_spill] sm:$0xff] %v4509_v29  ;;  %v4522_v59 = vmul.f32 0.2, %v6028_v61  ;;  %v4525_v49 = vmul.f32 0.2, %v6030_v54  ;;  %v6032_v29 = vld [vmem:[#allocation18_spill] sm:$0xff] }
 0x2e1   :  { %6027 = vst [vmem:[#allocation4_spill] sm:$0xff] %v4512_v37  ;;  %v4528_v18 = vmul.f32 0.2, %v6032_v29  ;;  %v2014_v37 = vsel %vm1804_vm10, %v5987_v41, %v1909_v3  ;;  %2118 = vst [vmem:[%s5484_s4 + $0x48] sm:$0xff] %v2013_v30  ;;  %vm1816_vm6 = vcmp.ge.f32.partialorder %v6002_v9, 0.0  ;;  %v6034_v42 = vld [vmem:[#allocation19_spill] sm:$0xff] }
 0x2e2   :  { %6029 = vst [vmem:[#allocation5_spill] sm:$0xff] %v4522_v59  ;;  %6031 = vst [vmem:[#allocation6_spill] sm:$0xff] %v4525_v49  ;;  %v4538_v17 = vmul.f32 0.2, %v6034_v42  ;;  %v4541_v62 = vmul.f32 0.2, %v4099_v10 }
 0x2e3   :  { %6033 = vst [vmem:[#allocation7_spill] sm:$0xff] %v4528_v18  ;;  %v6036_v49 = vld [vmem:[#allocation20_spill] sm:$0xff]  ;;  %v2015_v18 = vsel %vm1805_vm11, %v5988_v55, %v1910_v21  ;;  %2119 = vst [vmem:[%s5484_s4 + $0x50] sm:$0xff] %v2014_v37  ;;  %vm1817_vm7 = vcmp.ge.f32.partialorder %v6004_v27, 0.0  ;;  %v6037_v30 = vld [vmem:[#allocation21_spill] sm:$0xff]  ;;  %v2016_v55 = vsel %vm1806_vm12, %v5989_v11, %v4397_v48  ;;  %vm1818_vm8 = vcmp.ge.f32.partialorder %v6006_v20, 0.0 }
 0x2e4   :  { %6035 = vst [vmem:[#allocation8_spill] sm:$0xff] %v4541_v62  ;;  %v4544_v59 = vmul.f32 0.2, %v6036_v49  ;;  %v4554_v3 = vmul.f32 0.2, %v6037_v30  ;;  %2120 = vst [vmem:[%s5484_s4 + $0x58] sm:$0xff] %v2015_v18  ;;  %v2017_v11 = vsel %vm1807_vm13, %v5990_v45, %v4400_v33  ;;  %v2018_v33 = vsel %vm1808_vm14, %v5991_v40, %v4410_v35 }
 0x2e5   :  { %v4557_v41 = vmul.f32 0.2, %v4111_v63  ;;  %v4560_v62 = vmul.f32 0.2, %v4115_v28  ;;  %v4571_v37 = vmul.f32 0.2, %v4119_v22  ;;  %v2019_v40 = vsel %vm1809_vm15, %v5992_v39, %v4413_v13 }
 0x2e6   :  { %6038 = vst [vmem:[#allocation9_spill] sm:$0xff] %v4554_v3  ;;  %v4574_v21 = vmul.f32 0.2, %v4123_v12  ;;  %2121 = vst [vmem:[%s5484_s4 + $0x60] sm:$0xff] %v2016_v55  ;;  %vm1819_vm9 = vcmp.ge.f32.partialorder %v6008_v15, 0.0  ;;  %vm1820_vm10 = vcmp.ge.f32.partialorder %v6010_v32, 0.0  ;;  %v2020_v13 = vsel %vm1810_vm0, %v5993_v5, %v4416_v57 }
 0x2e7   :  { %6039 = vst [vmem:[#allocation10_spill] sm:$0xff] %v4557_v41  ;;  %6040 = vst [vmem:[#allocation11_spill] sm:$0xff] %v4560_v62  ;;  %v4577_v41 = vmul.f32 0.2, %v4127_v14  ;;  %v4588_v48 = vmul.f32 0.2, %v4131_v0  ;;  %v2021_v57 = vsel %vm1811_vm1, %v5994_v46, %v4426_v53  ;;  %v2022_v46 = vsel %vm1812_vm2, %v5995_v31, %v4429_v43 }
 0x2e8   :  { %6041 = vst [vmem:[#allocation12_spill] sm:$0xff] %v4571_v37  ;;  %6042 = vst [vmem:[#allocation13_spill] sm:$0xff] %v4574_v21  ;;  %v4591_v18 = vmul.f32 0.2, %v4135_v6  ;;  %v4594_v21 = vmul.f32 0.2, %v4139_v26 }
 0x2e9   :  { %6043 = vst [vmem:[#allocation15_spill] sm:$0xff] %v4577_v41  ;;  %6044 = vst [vmem:[#allocation16_spill] sm:$0xff] %v4588_v48  ;;  %v4605_v45 = vmul.f32 0.2, %v4143_v2  ;;  %v4608_v55 = vmul.f32 0.2, %v4147_v16 }
 0x2ea   :  { %6045 = vst [vmem:[#allocation17_spill] sm:$0xff] %v4591_v18  ;;  %6046 = vst [vmem:[#allocation18_spill] sm:$0xff] %v4594_v21  ;;  %v4611_v18 = vmul.f32 0.2, %v4151_v50  ;;  %vm1821_vm11 = vcmp.ge.f32.partialorder %v6012_v38, 0.0  ;;  %vm1822_vm12 = vcmp.ge.f32.partialorder %v6014_v25, 0.0 }
 0x2eb   :  { %2122 = vst [vmem:[%s5484_s4 + $0x68] sm:$0xff] %v2017_v11  ;;  %6047 = vst [vmem:[#allocation19_spill] sm:$0xff] %v4605_v45  ;;  %v4622_v35 = vmul.f32 0.2, %v4155_v58  ;;  %v4625_v11 = vmul.f32 0.2, %v4159_v60 }
 0x2ec   :  { %6048 = vst [vmem:[#allocation20_spill] sm:$0xff] %v4608_v55  ;;  %6049 = vst [vmem:[#allocation21_spill] sm:$0xff] %v4611_v18  ;;  %v4628_v55 = vmul.f32 0.2, %v4163_v52  ;;  %v4639_v39 = vmul.f32 0.2, %v4167_v56 }
 0x2ed   :  { %2123 = vst [vmem:[%s5484_s4 + $0x70] sm:$0xff] %v2018_v33  ;;  %6050 = vst [vmem:[#allocation89_spill] sm:$0xff] %v4622_v35  ;;  %v4642_v33 = vmul.f32 0.2, %v4171_v44  ;;  %vm1823_vm13 = vcmp.ge.f32.partialorder %v6016_v34, 0.0  ;;  %vm1824_vm14 = vcmp.ge.f32.partialorder %v6018_v19, 0.0 }
 0x2ee   :  { %6051 = vst [vmem:[#allocation90_spill] sm:$0xff] %v4625_v11  ;;  %6052 = vst [vmem:[#allocation91_spill] sm:$0xff] %v4628_v55  ;;  %v4645_v11 = vmul.f32 0.2, %v4175_v4  ;;  %v4656_v5 = vmul.f32 0.2, %v4179_v24 }
 0x2ef   :  { %2124 = vst [vmem:[%s5484_s4 + $0x78] sm:$0xff] %v2019_v40  ;;  %6053 = vst [vmem:[#allocation92_spill] sm:$0xff] %v4639_v39  ;;  %v4659_v40 = vmul.f32 0.2, %v4183_v8  ;;  %v6059_v53 = vld [vmem:[#allocation32_spill] sm:$0xff]  ;;  %v6066_v55 = vld [vmem:[#allocation62_spill] sm:$0xff] }
 0x2f0   :  { %6054 = vst [vmem:[#allocation93_spill] sm:$0xff] %v4642_v33  ;;  %6055 = vst [vmem:[#allocation94_spill] sm:$0xff] %v4645_v11  ;;  %v4662_v33 = vmul.f32 0.2, %v4187_v7  ;;  %vm1825_vm15 = vcmp.ge.f32.partialorder %v6020_v51, 0.0  ;;  %v6067_v31 = vld [vmem:[#allocation35_spill] sm:$0xff] }
 0x2f1   :  { %2125 = vst [vmem:[%s5484_s4 + $0x80] sm:$0xff] %v2020_v13  ;;  %6056 = vst [vmem:[#allocation95_spill] sm:$0xff] %v4656_v5  ;;  %v4673_v13 = vmul.f32 0.2, %v6059_v53  ;;  %v6061_v5 = vld [vmem:[#allocation33_spill] sm:$0xff]  ;;  %vm1826_vm0 = vcmp.ge.f32.partialorder %v6022_v1, 0.0 }
 0x2f2   :  { %6057 = vst [vmem:[#allocation96_spill] sm:$0xff] %v4659_v40  ;;  %6058 = vst [vmem:[#allocation97_spill] sm:$0xff] %v4662_v33  ;;  %v4676_v11 = vmul.f32 0.2, %v6061_v5  ;;  %v6063_v40 = vld [vmem:[#allocation34_spill] sm:$0xff]  ;;  %v6065_v33 = vld [vmem:[#allocation65_spill] sm:$0xff] }
 0x2f3   :  { %2126 = vst [vmem:[%s5484_s4 + $0x88] sm:$0xff] %v2021_v57  ;;  %6060 = vst [vmem:[#allocation98_spill] sm:$0xff] %v4673_v13  ;;  %v4679_v39 = vmul.f32 0.2, %v6063_v40  ;;  %v2023_v43 = vsel %vm1813_vm3, %v6066_v55, %v6065_v33  ;;  %v4690_v57 = vmul.f32 0.2, %v6067_v31 }
 0x2f4   :  { %6062 = vst [vmem:[#allocation99_spill] sm:$0xff] %v4676_v11  ;;  %2127 = vst [vmem:[%s5484_s4 + $0x90] sm:$0xff] %v2022_v46  ;;  %v6069_v13 = vld [vmem:[#allocation36_spill] sm:$0xff]  ;;  %v6071_v11 = vld [vmem:[#allocation37_spill] sm:$0xff] }
 0x2f5   :  { %6064 = vst [vmem:[#allocation34_spill] sm:$0xff] %v4679_v39  ;;  %6068 = vst [vmem:[#allocation65_spill] sm:$0xff] %v4690_v57  ;;  %v4693_v35 = vmul.f32 0.2, %v6069_v13  ;;  %v4696_v18 = vmul.f32 0.2, %v6071_v11 }
 0x2f6   :  { %v6073_v39 = vld [vmem:[#allocation66_spill] sm:$0xff]  ;;  %2128 = vst [vmem:[%s5484_s4 + $0x98] sm:$0xff] %v2023_v43  ;;  %v6076_v57 = vld [vmem:[#allocation39_spill] sm:$0xff]  ;;  %v6082_v43 = vld [vmem:[#allocation68_spill] sm:$0xff] }
 0x2f7   :  { %6070 = vst [vmem:[#allocation62_spill] sm:$0xff] %v4693_v35  ;;  %6072 = vst [vmem:[#allocation35_spill] sm:$0xff] %v4696_v18  ;;  %v2024_v55 = vsel %vm1814_vm4, %v5998_v36, %v6073_v39  ;;  %v6074_v33 = vld [vmem:[#allocation38_spill] sm:$0xff]  ;;  %v4710_v45 = vmul.f32 0.2, %v6076_v57  ;;  %v6078_v35 = vld [vmem:[#allocation67_spill] sm:$0xff] }
 0x2f8   :  { %v4707_v46 = vmul.f32 0.2, %v6074_v33  ;;  %v4713_v21 = vmul.f32 0.2, %v6078_v35  ;;  %v6080_v18 = vld [vmem:[#allocation42_spill] sm:$0xff]  ;;  %2129 = vst [vmem:[%s5484_s4 + $0xa0] sm:$0xff] %v2024_v55 }
 0x2f9   :  { %6077 = vst [vmem:[#allocation38_spill] sm:$0xff] %v4710_v45  ;;  %v2025_v36 = vsel %vm1815_vm5, %v6000_v47, %v6080_v18  ;;  %v6081_v39 = vld [vmem:[#allocation14_spill] sm:$0xff]  ;;  %v4726_v45 = vmul.f32 0.2, %v6082_v43  ;;  %v6088_v47 = vld [vmem:[#allocation44_spill] sm:$0xff]  ;;  %vm1830_vm4 = vcmp.ge.f32.partialorder %v6030_v54, 0.0 }
 0x2fa   :  { %6075 = vst [vmem:[#allocation66_spill] sm:$0xff] %v4707_v46  ;;  %6079 = vst [vmem:[#allocation39_spill] sm:$0xff] %v4713_v21  ;;  %vm1827_vm1 = vcmp.ge.f32.partialorder %v6081_v39, 0.0  ;;  %v6084_v46 = vld [vmem:[#allocation69_spill] sm:$0xff]  ;;  %v6086_v48 = vld [vmem:[#allocation70_spill] sm:$0xff]  ;;  %v2026_v18 = vsel %vm1816_vm6, %v6002_v9, %v6088_v47  ;;  %vm1834_vm6 = vcmp.ge.f32.partialorder %v6036_v49, 0.0 }
 0x2fb   :  { %6083 = vst [vmem:[#allocation42_spill] sm:$0xff] %v4726_v45  ;;  %v4729_v21 = vmul.f32 0.2, %v6084_v46  ;;  %v4732_v41 = vmul.f32 0.2, %v6086_v48  ;;  %2130 = vst [vmem:[%s5484_s4 + $0xa8] sm:$0xff] %v2025_v36 }
 0x2fc   :  { %v6089_v55 = vld [vmem:[#allocation71_spill] sm:$0xff]  ;;  %v6093_v37 = vld [vmem:[#allocation73_spill] sm:$0xff]  ;;  %v6095_v47 = vld [vmem:[#allocation46_spill] sm:$0xff]  ;;  %2131 = vst [vmem:[%s5484_s4 + $0xb0] sm:$0xff] %v2026_v18  ;;  %vm6164_vm5 = vcmp.ge.f32.partialorder %v6028_v61, 0.0 }
 0x2fd   :  { %6085 = vst [vmem:[#allocation14_spill] sm:$0xff] %v4729_v21  ;;  %6087 = vst [vmem:[#allocation69_spill] sm:$0xff] %v4732_v41  ;;  %v4746_v21 = vmul.f32 0.2, %v6089_v55  ;;  %v6091_v41 = vld [vmem:[#allocation72_spill] sm:$0xff]  ;;  %v2027_v36 = vsel %vm1817_vm7, %v6004_v27, %v6095_v47  ;;  %vm1838_vm7 = vcmp.ge.f32.partialorder %v4119_v22, 0.0 }
 0x2fe   :  { %v4749_v45 = vmul.f32 0.2, %v6091_v41  ;;  %v4752_v9 = vmul.f32 0.2, %v6093_v37  ;;  %v6100_v3 = vld [vmem:[#allocation76_spill] sm:$0xff]  ;;  %2132 = vst [vmem:[%s5484_s4 + $0xb8] sm:$0xff] %v2027_v36 }
 0x2ff   :  { %6090 = vst [vmem:[#allocation70_spill] sm:$0xff] %v4746_v21  ;;  %v4772_v27 = vmul.f32 0.2, %v6100_v3  ;;  %v6102_v47 = vld [vmem:[#allocation48_spill] sm:$0xff]  ;;  %v6107_v63 = vld [vmem:[#allocation79_spill] sm:$0xff]  ;;  %v6114_v14 = vld [vmem:[#allocation82_spill] sm:$0xff] }
 0x300   :  { %6092 = vst [vmem:[#allocation44_spill] sm:$0xff] %v4749_v45  ;;  %6094 = vst [vmem:[#allocation71_spill] sm:$0xff] %v4752_v9  ;;  %v6096_v45 = vld [vmem:[#allocation74_spill] sm:$0xff]  ;;  %v6098_v9 = vld [vmem:[#allocation75_spill] sm:$0xff]  ;;  %v2028_v18 = vsel %vm1818_vm8, %v6006_v20, %v6102_v47  ;;  %v4792_v20 = vmul.f32 0.2, %v6107_v63 }
 0x301   :  { %v4766_v21 = vmul.f32 0.2, %v6096_v45  ;;  %v4769_v62 = vmul.f32 0.2, %v6098_v9  ;;  %6101 = vst [vmem:[#allocation74_spill] sm:$0xff] %v4772_v27  ;;  %v6105_v27 = vld [vmem:[#allocation78_spill] sm:$0xff] }
 0x302   :  { %v4789_v28 = vmul.f32 0.2, %v6105_v27  ;;  %v6109_v47 = vld [vmem:[#allocation50_spill] sm:$0xff]  ;;  %2133 = vst [vmem:[%s5484_s4 + $0xc0] sm:$0xff] %v2028_v18  ;;  %vm1842_vm8 = vcmp.ge.f32.partialorder %v4135_v6, 0.0  ;;  %v6121_v2 = vld [vmem:[#allocation41_spill] sm:$0xff] }
 0x303   :  { %6097 = vst [vmem:[#allocation72_spill] sm:$0xff] %v4766_v21  ;;  %6099 = vst [vmem:[#allocation46_spill] sm:$0xff] %v4769_v62  ;;  %v6103_v62 = vld [vmem:[#allocation77_spill] sm:$0xff]  ;;  %v2029_v36 = vsel %vm1819_vm9, %v6008_v15, %v6109_v47  ;;  %v4812_v15 = vmul.f32 0.2, %v6114_v14  ;;  %v6116_v47 = vld [vmem:[#allocation52_spill] sm:$0xff] }
 0x304   :  { %v4786_v21 = vmul.f32 0.2, %v6103_v62  ;;  %6106 = vst [vmem:[#allocation48_spill] sm:$0xff] %v4789_v28  ;;  %6108 = vst [vmem:[#allocation77_spill] sm:$0xff] %v4792_v20  ;;  %v6110_v28 = vld [vmem:[#allocation80_spill] sm:$0xff]  ;;  %v6112_v20 = vld [vmem:[#allocation81_spill] sm:$0xff]  ;;  %v2030_v18 = vsel %vm1820_vm10, %v6010_v32, %v6116_v47 }
 0x305   :  { %v4809_v0 = vmul.f32 0.2, %v6112_v20  ;;  %6115 = vst [vmem:[#allocation50_spill] sm:$0xff] %v4812_v15  ;;  %2134 = vst [vmem:[%s5484_s4 + $0xc8] sm:$0xff] %v2029_v36  ;;  %vm1846_vm9 = vcmp.ge.f32.partialorder %v4151_v50, 0.0  ;;  %v6119_v15 = vld [vmem:[#allocation40_spill] sm:$0xff] }
 0x306   :  { %6104 = vst [vmem:[#allocation76_spill] sm:$0xff] %v4786_v21  ;;  %v4806_v21 = vmul.f32 0.2, %v6110_v28  ;;  %v4829_v16 = vmul.f32 0.2, %v6119_v15  ;;  %v6123_v47 = vld [vmem:[#allocation54_spill] sm:$0xff] }
 0x307   :  { %6113 = vst [vmem:[#allocation79_spill] sm:$0xff] %v4809_v0  ;;  %v6117_v0 = vld [vmem:[#allocation83_spill] sm:$0xff]  ;;  %v4832_v32 = vmul.f32 0.2, %v6121_v2  ;;  %v2031_v36 = vsel %vm1821_vm11, %v6012_v38, %v6123_v47  ;;  %2135 = vst [vmem:[%s5484_s4 + $0xd0] sm:$0xff] %v2030_v18  ;;  %vm1850_vm10 = vcmp.ge.f32.partialorder %v4167_v56, 0.0 }
 0x308   :  { %6111 = vst [vmem:[#allocation78_spill] sm:$0xff] %v4806_v21  ;;  %v4826_v21 = vmul.f32 0.2, %v6117_v0  ;;  %6120 = vst [vmem:[#allocation81_spill] sm:$0xff] %v4829_v16  ;;  %v6124_v16 = vld [vmem:[#allocation43_spill] sm:$0xff]  ;;  %v6130_v47 = vld [vmem:[#allocation56_spill] sm:$0xff] }
 0x309   :  { %6122 = vst [vmem:[#allocation82_spill] sm:$0xff] %v4832_v32  ;;  %v6126_v32 = vld [vmem:[#allocation45_spill] sm:$0xff]  ;;  %v6128_v60 = vld [vmem:[#allocation47_spill] sm:$0xff]  ;;  %v2032_v18 = vsel %vm1822_vm12, %v6014_v25, %v6130_v47  ;;  %2136 = vst [vmem:[%s5484_s4 + $0xd8] sm:$0xff] %v2031_v36  ;;  %vm1854_vm11 = vcmp.ge.f32.partialorder %v4183_v8, 0.0  ;;  %vm1858_vm12 = vcmp.ge.f32.partialorder %v6063_v40, 0.0 }
 0x30a   :  { %6118 = vst [vmem:[#allocation80_spill] sm:$0xff] %v4826_v21  ;;  %v4846_v21 = vmul.f32 0.2, %v6124_v16  ;;  %v4849_v52 = vmul.f32 0.2, %v6126_v32  ;;  %v6135_v4 = vld [vmem:[#allocation53_spill] sm:$0xff] }
 0x30b   :  { %v4852_v38 = vmul.f32 0.2, %v6128_v60  ;;  %v4872_v25 = vmul.f32 0.2, %v6135_v4  ;;  %v6137_v47 = vld [vmem:[#allocation58_spill] sm:$0xff]  ;;  %2137 = vst [vmem:[%s5484_s4 + $0xe0] sm:$0xff] %v2032_v18 }
 0x30c   :  { %6125 = vst [vmem:[#allocation52_spill] sm:$0xff] %v4846_v21  ;;  %6127 = vst [vmem:[#allocation83_spill] sm:$0xff] %v4849_v52  ;;  %v6131_v52 = vld [vmem:[#allocation49_spill] sm:$0xff]  ;;  %v2033_v36 = vsel %vm1823_vm13, %v6016_v34, %v6137_v47  ;;  %v6142_v53 = vld [vmem:[#allocation59_spill] sm:$0xff]  ;;  %vm1862_vm13 = vcmp.ge.f32.partialorder %v6074_v33, 0.0  ;;  %vm1874_vm2 = vcmp.ge.f32.partialorder %v6103_v62, 0.0 }
 0x30d   :  { %6129 = vst [vmem:[#allocation40_spill] sm:$0xff] %v4852_v38  ;;  %v4866_v21 = vmul.f32 0.2, %v6131_v52  ;;  %v6133_v38 = vld [vmem:[#allocation51_spill] sm:$0xff]  ;;  %6136 = vst [vmem:[#allocation43_spill] sm:$0xff] %v4872_v25  ;;  %v6140_v25 = vld [vmem:[#allocation57_spill] sm:$0xff] }
 0x30e   :  { %v4869_v24 = vmul.f32 0.2, %v6133_v38  ;;  %v4889_v5 = vmul.f32 0.2, %v6140_v25  ;;  %v4892_v34 = vmul.f32 0.2, %v6142_v53 }
 0x30f   :  { %6132 = vst [vmem:[#allocation41_spill] sm:$0xff] %v4866_v21  ;;  %v6144_v47 = vld [vmem:[#allocation60_spill] sm:$0xff]  ;;  %2138 = vst [vmem:[%s5484_s4 + $0xe8] sm:$0xff] %v2033_v36  ;;  %v6149_v13 = vld [vmem:[#allocation63_spill] sm:$0xff]  ;;  %vm1875_vm3 = vcmp.ge.f32.partialorder %v6105_v27, 0.0 }
 0x310   :  { %6134 = vst [vmem:[#allocation54_spill] sm:$0xff] %v4869_v24  ;;  %v6138_v24 = vld [vmem:[#allocation55_spill] sm:$0xff]  ;;  %6141 = vst [vmem:[#allocation47_spill] sm:$0xff] %v4889_v5  ;;  %v2034_v18 = vsel %vm1824_vm14, %v6018_v19, %v6144_v47  ;;  %v6145_v5 = vld [vmem:[#allocation84_spill] sm:$0xff]  ;;  %v4912_v19 = vmul.f32 0.2, %v6149_v13 }
 0x311   :  { %v4886_v21 = vmul.f32 0.2, %v6138_v24  ;;  %6143 = vst [vmem:[#allocation56_spill] sm:$0xff] %v4892_v34  ;;  %v6147_v34 = vld [vmem:[#allocation61_spill] sm:$0xff]  ;;  %v6151_v47 = vld [vmem:[#allocation64_spill] sm:$0xff]  ;;  %2139 = vst [vmem:[%s5484_s4 + $0xf0] sm:$0xff] %v2034_v18 }
 0x312   :  { %v4909_v11 = vmul.f32 0.2, %v6147_v34  ;;  %6150 = vst [vmem:[#allocation53_spill] sm:$0xff] %v4912_v19  ;;  %v2035_v36 = vsel %vm1825_vm15, %v6020_v51, %v6151_v47  ;;  %vm1866_vm14 = vcmp.ge.f32.partialorder %v6084_v46, 0.0  ;;  %v6154_v19 = vld [vmem:[#allocation86_spill] sm:$0xff]  ;;  %v6156_v35 = vld [vmem:[#allocation87_spill] sm:$0xff] }
 0x313   :  { %6139 = vst [vmem:[#allocation45_spill] sm:$0xff] %v4886_v21  ;;  %v4906_v21 = vmul.f32 0.2, %v6145_v5  ;;  %v4929_v43 = vmul.f32 0.2, %v6154_v19  ;;  %v6158_v47 = vld [vmem:[#allocation2_spill] sm:$0xff] }
 0x314   :  { %6148 = vst [vmem:[#allocation51_spill] sm:$0xff] %v4909_v11  ;;  %v6152_v11 = vld [vmem:[#allocation85_spill] sm:$0xff]  ;;  %v4932_v51 = vmul.f32 0.2, %v6156_v35  ;;  %v2036_v18 = vsel %vm1826_vm0, %v6022_v1, %v6158_v47  ;;  %2140 = vst [vmem:[%s5484_s4 + $0xf8] sm:$0xff] %v2035_v36  ;;  %v6161_v47 = vld [vmem:[#allocation4_spill] sm:$0xff] }
 0x315   :  { %6146 = vst [vmem:[#allocation49_spill] sm:$0xff] %v4906_v21  ;;  %v4926_v21 = vmul.f32 0.2, %v6152_v11  ;;  %6155 = vst [vmem:[#allocation55_spill] sm:$0xff] %v4929_v43  ;;  %v6159_v43 = vld [vmem:[#allocation88_spill] sm:$0xff]  ;;  %vm6162_vm0 = vcmp.ge.f32.partialorder %v6026_v23, 0.0 }
 0x316   :  { %6157 = vst [vmem:[#allocation57_spill] sm:$0xff] %v4932_v51  ;;  %v6160_v51 = vld [vmem:[#allocation3_spill] sm:$0xff]  ;;  %v2038_v36 = vsel %vm6162_vm0, %v6026_v23, %v6161_v47  ;;  %v6163_v37 = vld [vmem:[#allocation5_spill] sm:$0xff]  ;;  %2141 = vst [vmem:[%s5484_s4 + $0x100] sm:$0xff] %v2036_v18  ;;  %vm6168_vm0 = vcmp.ge.f32.partialorder %v6034_v42, 0.0  ;;  %vm6172_vm15 = vcmp.ge.f32.partialorder %v6037_v30, 0.0 }
 0x317   :  { %6153 = vst [vmem:[#allocation58_spill] sm:$0xff] %v4926_v21  ;;  %v4946_v21 = vmul.f32 0.2, %v6159_v43  ;;  %v2037_v1 = vsel %vm1827_vm1, %v6081_v39, %v6160_v51  ;;  %v2039_v9 = vsel %vm6164_vm5, %v6028_v61, %v6163_v37  ;;  %v6165_v39 = vld [vmem:[#allocation6_spill] sm:$0xff]  ;;  %v6166_v51 = vld [vmem:[#allocation7_spill] sm:$0xff]  ;;  %vm6167_vm5 = vcmp.ge.f32.partialorder %v6032_v29, 0.0 }
 0x318   :  { %v2040_v23 = vsel %vm1830_vm4, %v6030_v54, %v6165_v39  ;;  %v2041_v61 = vsel %vm6167_vm5, %v6032_v29, %v6166_v51  ;;  %v2042_v37 = vsel %vm6168_vm0, %v6034_v42, %v4538_v17  ;;  %v6169_v18 = vld [vmem:[#allocation8_spill] sm:$0xff]  ;;  %vm6170_vm1 = vcmp.ge.f32.partialorder %v4099_v10, 0.0  ;;  %2142 = vst [vmem:[%s5484_s4 + $0x108] sm:$0xff] %v2037_v1  ;;  %2143 = vst [vmem:[%s5484_s4 + $0x110] sm:$0xff] %v2038_v36  ;;  %v6171_v29 = vld [vmem:[#allocation9_spill] sm:$0xff] }
 0x319   :  { %v2043_v47 = vsel %vm6170_vm1, %v4099_v10, %v6169_v18  ;;  %2144 = vst [vmem:[%s5484_s4 + $0x118] sm:$0xff] %v2039_v9  ;;  %vm1879_vm5 = vcmp.ge.f32.partialorder %v6114_v14, 0.0  ;;  %v2044_v10 = vsel %vm1834_vm6, %v6036_v49, %v4544_v59  ;;  %v2045_v54 = vsel %vm6172_vm15, %v6037_v30, %v6171_v29  ;;  %v6173_v42 = vld [vmem:[#allocation10_spill] sm:$0xff]  ;;  %v6176_v1 = vld [vmem:[#allocation11_spill] sm:$0xff]  ;;  %2145 = vst [vmem:[%s5484_s4 + $0x120] sm:$0xff] %v2040_v23 }
 0x31a   :  { %v6174_v17 = vld [vmem:[#allocation22_spill] sm:$0xff]  ;;  %v6177_v36 = vld [vmem:[#allocation23_spill] sm:$0xff]  ;;  %2146 = vst [vmem:[%s5484_s4 + $0x128] sm:$0xff] %v2041_v61  ;;  %2147 = vst [vmem:[%s5484_s4 + $0x130] sm:$0xff] %v2042_v37  ;;  %vm1883_vm15 = vcmp.ge.f32.partialorder %v6124_v16, 0.0  ;;  %vm6181_vm1 = vcmp.ge.f32.partialorder %v4123_v12, 0.0 }
 0x31b   :  { %vm6175_vm4 = vcmp.ge.f32.partialorder %v6174_v17, 0.0  ;;  %vm6178_vm0 = vcmp.ge.f32.partialorder %v6177_v36, 0.0  ;;  %2148 = vst [vmem:[%s5484_s4 + $0x138] sm:$0xff] %v2043_v47  ;;  %v6179_v49 = vld [vmem:[#allocation12_spill] sm:$0xff]  ;;  %v6180_v30 = vld [vmem:[#allocation13_spill] sm:$0xff]  ;;  %v6182_v51 = vld [vmem:[#allocation15_spill] sm:$0xff] }
 0x31c   :  { %v2046_v9 = vsel %vm6175_vm4, %v6174_v17, %v6173_v42  ;;  %v2047_v39 = vsel %vm6178_vm0, %v6177_v36, %v6176_v1  ;;  %v2048_v59 = vsel %vm1838_vm7, %v4119_v22, %v6179_v49  ;;  %v2049_v23 = vsel %vm6181_vm1, %v4123_v12, %v6180_v30  ;;  %v6183_v61 = vld [vmem:[#allocation24_spill] sm:$0xff]  ;;  %v6186_v47 = vld [vmem:[#allocation25_spill] sm:$0xff]  ;;  %2149 = vst [vmem:[%s5484_s4 + $0x140] sm:$0xff] %v2044_v10  ;;  %v6189_v10 = vld [vmem:[#allocation18_spill] sm:$0xff] }
 0x31d   :  { %vm6184_vm6 = vcmp.ge.f32.partialorder %v6183_v61, 0.0  ;;  %v6185_v18 = vld [vmem:[#allocation16_spill] sm:$0xff]  ;;  %vm6187_vm4 = vcmp.ge.f32.partialorder %v6186_v47, 0.0  ;;  %2150 = vst [vmem:[%s5484_s4 + $0x148] sm:$0xff] %v2045_v54  ;;  %2151 = vst [vmem:[%s5484_s4 + $0x150] sm:$0xff] %v2046_v9  ;;  %vm1887_vm1 = vcmp.ge.f32.partialorder %v6133_v38, 0.0 }
 0x31e   :  { %v2050_v37 = vsel %vm6184_vm6, %v6183_v61, %v6182_v51  ;;  %v2051_v29 = vsel %vm6187_vm4, %v6186_v47, %v6185_v18  ;;  %2152 = vst [vmem:[%s5484_s4 + $0x158] sm:$0xff] %v2047_v39  ;;  %v6188_v22 = vld [vmem:[#allocation17_spill] sm:$0xff]  ;;  %vm6190_vm0 = vcmp.ge.f32.partialorder %v4139_v26, 0.0  ;;  %v6191_v42 = vld [vmem:[#allocation19_spill] sm:$0xff]  ;;  %v6192_v17 = vld [vmem:[#allocation26_spill] sm:$0xff]  ;;  %vm6199_vm4 = vcmp.ge.f32.partialorder %v4155_v58, 0.0 }
 0x31f   :  { %v2052_v12 = vsel %vm1842_vm8, %v4135_v6, %v6188_v22  ;;  %v2053_v54 = vsel %vm6190_vm0, %v4139_v26, %v6189_v10  ;;  %vm6193_vm7 = vcmp.ge.f32.partialorder %v6192_v17, 0.0  ;;  %v6194_v1 = vld [vmem:[#allocation20_spill] sm:$0xff]  ;;  %v6195_v36 = vld [vmem:[#allocation27_spill] sm:$0xff]  ;;  %2153 = vst [vmem:[%s5484_s4 + $0x160] sm:$0xff] %v2048_v59  ;;  %2154 = vst [vmem:[%s5484_s4 + $0x168] sm:$0xff] %v2049_v23  ;;  %vm1891_vm0 = vcmp.ge.f32.partialorder %v6142_v53, 0.0 }
 0x320   :  { %v2054_v9 = vsel %vm6193_vm7, %v6192_v17, %v6191_v42  ;;  %vm6196_vm6 = vcmp.ge.f32.partialorder %v6195_v36, 0.0  ;;  %2155 = vst [vmem:[%s5484_s4 + $0x170] sm:$0xff] %v2050_v37  ;;  %2156 = vst [vmem:[%s5484_s4 + $0x178] sm:$0xff] %v2051_v29  ;;  %v6197_v6 = vld [vmem:[#allocation21_spill] sm:$0xff]  ;;  %v6200_v30 = vld [vmem:[#allocation90_spill] sm:$0xff] }
 0x321   :  { %v2055_v39 = vsel %vm6196_vm6, %v6195_v36, %v6194_v1  ;;  %v2056_v26 = vsel %vm1846_vm9, %v4151_v50, %v6197_v6  ;;  %v6198_v49 = vld [vmem:[#allocation89_spill] sm:$0xff]  ;;  %v6201_v23 = vld [vmem:[#allocation28_spill] sm:$0xff]  ;;  %v6203_v61 = vld [vmem:[#allocation91_spill] sm:$0xff]  ;;  %2157 = vst [vmem:[%s5484_s4 + $0x180] sm:$0xff] %v2052_v12  ;;  %vm6208_vm6 = vcmp.ge.f32.partialorder %v4171_v44, 0.0 }
 0x322   :  { %v2057_v59 = vsel %vm6199_vm4, %v4155_v58, %v6198_v49  ;;  %vm6202_vm8 = vcmp.ge.f32.partialorder %v6201_v23, 0.0  ;;  %v6204_v37 = vld [vmem:[#allocation29_spill] sm:$0xff]  ;;  %2158 = vst [vmem:[%s5484_s4 + $0x188] sm:$0xff] %v2053_v54  ;;  %2159 = vst [vmem:[%s5484_s4 + $0x190] sm:$0xff] %v2054_v9  ;;  %vm1895_vm4 = vcmp.ge.f32.partialorder %v6152_v11, 0.0  ;;  %v6206_v50 = vld [vmem:[#allocation92_spill] sm:$0xff] }
 0x323   :  { %v2058_v51 = vsel %vm6202_vm8, %v6201_v23, %v6200_v30  ;;  %vm6205_vm7 = vcmp.ge.f32.partialorder %v6204_v37, 0.0  ;;  %2160 = vst [vmem:[%s5484_s4 + $0x198] sm:$0xff] %v2055_v39  ;;  %v2060_v58 = vsel %vm1850_vm10, %v4167_v56, %v6206_v50  ;;  %v6207_v47 = vld [vmem:[#allocation93_spill] sm:$0xff]  ;;  %v6209_v22 = vld [vmem:[#allocation94_spill] sm:$0xff]  ;;  %v6212_v54 = vld [vmem:[#allocation95_spill] sm:$0xff]  ;;  %vm1898_vm10 = vcmp.ge.f32.partialorder %v6159_v43, 0.0 }
 0x324   :  { %v2059_v18 = vsel %vm6205_vm7, %v6204_v37, %v6203_v61  ;;  %vm1897_vm7 = vcmp.ge.f32.partialorder %v6156_v35, 0.0  ;;  %v2061_v29 = vsel %vm6208_vm6, %v4171_v44, %v6207_v47  ;;  %v6210_v12 = vld [vmem:[#allocation30_spill] sm:$0xff]  ;;  %v6213_v42 = vld [vmem:[#allocation31_spill] sm:$0xff]  ;;  %2161 = vst [vmem:[%s5484_s4 + $0x1a0] sm:$0xff] %v2056_v26  ;;  %2162 = vst [vmem:[%s5484_s4 + $0x1a8] sm:$0xff] %v2057_v59  ;;  %vm6217_vm6 = vcmp.ge.f32.partialorder %v4187_v7, 0.0 }
 0x325   :  { %vm6211_vm9 = vcmp.ge.f32.partialorder %v6210_v12, 0.0  ;;  %vm6214_vm8 = vcmp.ge.f32.partialorder %v6213_v42, 0.0  ;;  %2163 = vst [vmem:[%s5484_s4 + $0x1b0] sm:$0xff] %v2058_v51  ;;  %2164 = vst [vmem:[%s5484_s4 + $0x1b8] sm:$0xff] %v2059_v18  ;;  %v6215_v56 = vld [vmem:[#allocation96_spill] sm:$0xff]  ;;  %v6216_v9 = vld [vmem:[#allocation97_spill] sm:$0xff] }
 0x326   :  { %v2062_v10 = vsel %vm6211_vm9, %v6210_v12, %v6209_v22  ;;  %v2063_v17 = vsel %vm6214_vm8, %v6213_v42, %v6212_v54  ;;  %v2064_v44 = vsel %vm1854_vm11, %v4183_v8, %v6215_v56  ;;  %v2065_v1 = vsel %vm6217_vm6, %v4187_v7, %v6216_v9  ;;  %v6218_v36 = vld [vmem:[#allocation98_spill] sm:$0xff]  ;;  %v6219_v39 = vld [vmem:[#allocation32_spill] sm:$0xff]  ;;  %v6221_v26 = vld [vmem:[#allocation99_spill] sm:$0xff]  ;;  %2165 = vst [vmem:[%s5484_s4 + $0x1c0] sm:$0xff] %v2060_v58 }
 0x327   :  { %vm6220_vm9 = vcmp.ge.f32.partialorder %v6219_v39, 0.0  ;;  %v6222_v49 = vld [vmem:[#allocation33_spill] sm:$0xff]  ;;  %2166 = vst [vmem:[%s5484_s4 + $0x1c8] sm:$0xff] %v2061_v29  ;;  %2167 = vst [vmem:[%s5484_s4 + $0x1d0] sm:$0xff] %v2062_v10  ;;  %v6224_v8 = vld [vmem:[#allocation34_spill] sm:$0xff]  ;;  %vm6226_vm11 = vcmp.ge.f32.partialorder %v6067_v31, 0.0 }
 0x328   :  { %v2066_v6 = vsel %vm6220_vm9, %v6219_v39, %v6218_v36  ;;  %vm6223_vm8 = vcmp.ge.f32.partialorder %v6222_v49, 0.0  ;;  %2168 = vst [vmem:[%s5484_s4 + $0x1d8] sm:$0xff] %v2063_v17  ;;  %v2068_v7 = vsel %vm1858_vm12, %v6063_v40, %v6224_v8  ;;  %v6225_v30 = vld [vmem:[#allocation65_spill] sm:$0xff]  ;;  %v6227_v51 = vld [vmem:[#allocation62_spill] sm:$0xff]  ;;  %v6228_v61 = vld [vmem:[#allocation36_spill] sm:$0xff]  ;;  %vm6235_vm12 = vcmp.ge.f32.partialorder %v6076_v57, 0.0 }
 0x329   :  { %v2067_v59 = vsel %vm6223_vm8, %v6222_v49, %v6221_v26  ;;  %v2069_v23 = vsel %vm6226_vm11, %v6067_v31, %v6225_v30  ;;  %vm6229_vm6 = vcmp.ge.f32.partialorder %v6228_v61, 0.0  ;;  %v6230_v18 = vld [vmem:[#allocation35_spill] sm:$0xff]  ;;  %v6231_v50 = vld [vmem:[#allocation37_spill] sm:$0xff]  ;;  %2169 = vst [vmem:[%s5484_s4 + $0x1e0] sm:$0xff] %v2064_v44  ;;  %2170 = vst [vmem:[%s5484_s4 + $0x1e8] sm:$0xff] %v2065_v1 }
 0x32a   :  { %v2070_v37 = vsel %vm6229_vm6, %v6228_v61, %v6227_v51  ;;  %vm6232_vm9 = vcmp.ge.f32.partialorder %v6231_v50, 0.0  ;;  %2171 = vst [vmem:[%s5484_s4 + $0x1f0] sm:$0xff] %v2066_v6  ;;  %2172 = vst [vmem:[%s5484_s4 + $0x1f8] sm:$0xff] %v2067_v59  ;;  %v6233_v40 = vld [vmem:[#allocation66_spill] sm:$0xff]  ;;  %v6236_v22 = vld [vmem:[#allocation39_spill] sm:$0xff]  ;;  %vm6246_vm6 = vcmp.ge.f32.partialorder %v6089_v55, 0.0 }
 0x32b   :  { %v2071_v58 = vsel %vm6232_vm9, %v6231_v50, %v6230_v18  ;;  %v2072_v31 = vsel %vm1862_vm13, %v6074_v33, %v6233_v40  ;;  %v6234_v47 = vld [vmem:[#allocation38_spill] sm:$0xff]  ;;  %v6237_v12 = vld [vmem:[#allocation67_spill] sm:$0xff]  ;;  %v6240_v42 = vld [vmem:[#allocation68_spill] sm:$0xff]  ;;  %2173 = vst [vmem:[%s5484_s4 + $0x200] sm:$0xff] %v2068_v7  ;;  %vm6244_vm13 = vcmp.ge.f32.partialorder %v6086_v48, 0.0  ;;  %vm6248_vm9 = vcmp.ge.f32.partialorder %v6091_v41, 0.0 }
 0x32c   :  { %v2073_v29 = vsel %vm6235_vm12, %v6076_v57, %v6234_v47  ;;  %vm6238_vm8 = vcmp.ge.f32.partialorder %v6237_v12, 0.0  ;;  %v6239_v54 = vld [vmem:[#allocation42_spill] sm:$0xff]  ;;  %vm6241_vm11 = vcmp.ge.f32.partialorder %v6240_v42, 0.0  ;;  %2174 = vst [vmem:[%s5484_s4 + $0x208] sm:$0xff] %v2069_v23  ;;  %2175 = vst [vmem:[%s5484_s4 + $0x210] sm:$0xff] %v2070_v37  ;;  %v6243_v56 = vld [vmem:[#allocation69_spill] sm:$0xff] }
 0x32d   :  { %v2074_v10 = vsel %vm6238_vm8, %v6237_v12, %v6236_v22  ;;  %v2075_v17 = vsel %vm6241_vm11, %v6240_v42, %v6239_v54  ;;  %2176 = vst [vmem:[%s5484_s4 + $0x218] sm:$0xff] %v2071_v58  ;;  %v6242_v57 = vld [vmem:[#allocation14_spill] sm:$0xff]  ;;  %v2077_v44 = vsel %vm6244_vm13, %v6086_v48, %v6243_v56  ;;  %v6247_v36 = vld [vmem:[#allocation44_spill] sm:$0xff]  ;;  %2177 = vst [vmem:[%s5484_s4 + $0x220] sm:$0xff] %v2072_v31  ;;  %vm6253_vm12 = vcmp.ge.f32.partialorder %v6096_v45, 0.0 }
 0x32e   :  { %v2076_v33 = vsel %vm1866_vm14, %v6084_v46, %v6242_v57  ;;  %v6245_v9 = vld [vmem:[#allocation70_spill] sm:$0xff]  ;;  %v2079_v39 = vsel %vm6248_vm9, %v6091_v41, %v6247_v36  ;;  %2178 = vst [vmem:[%s5484_s4 + $0x228] sm:$0xff] %v2073_v29  ;;  %2179 = vst [vmem:[%s5484_s4 + $0x230] sm:$0xff] %v2074_v10  ;;  %v6249_v48 = vld [vmem:[#allocation71_spill] sm:$0xff]  ;;  %vm6258_vm11 = vcmp.ge.f32.partialorder %v6100_v3, 0.0  ;;  %vm6262_vm13 = vcmp.ge.f32.partialorder %v6107_v63, 0.0 }
 0x32f   :  { %v2078_v1 = vsel %vm6246_vm6, %v6089_v55, %v6245_v9  ;;  %2180 = vst [vmem:[%s5484_s4 + $0x238] sm:$0xff] %v2075_v17  ;;  %v6250_v46 = vld [vmem:[#allocation73_spill] sm:$0xff]  ;;  %v6252_v55 = vld [vmem:[#allocation72_spill] sm:$0xff]  ;;  %v6254_v26 = vld [vmem:[#allocation46_spill] sm:$0xff]  ;;  %vm6264_vm6 = vcmp.ge.f32.partialorder %v6110_v28, 0.0  ;;  %vm6271_vm9 = vcmp.ge.f32.partialorder %v6119_v15, 0.0 }
 0x330   :  { %vm6251_vm14 = vcmp.ge.f32.partialorder %v6250_v46, 0.0  ;;  %v2081_v6 = vsel %vm6253_vm12, %v6096_v45, %v6252_v55  ;;  %v6255_v49 = vld [vmem:[#allocation75_spill] sm:$0xff]  ;;  %v6257_v8 = vld [vmem:[#allocation74_spill] sm:$0xff]  ;;  %2181 = vst [vmem:[%s5484_s4 + $0x240] sm:$0xff] %v2076_v33  ;;  %2182 = vst [vmem:[%s5484_s4 + $0x248] sm:$0xff] %v2077_v44  ;;  %vm6278_vm12 = vcmp.ge.f32.partialorder %v6128_v60, 0.0 }
 0x331   :  { %v2080_v41 = vsel %vm6251_vm14, %v6250_v46, %v6249_v48  ;;  %vm6256_vm8 = vcmp.ge.f32.partialorder %v6255_v49, 0.0  ;;  %v2083_v7 = vsel %vm6258_vm11, %v6100_v3, %v6257_v8  ;;  %2183 = vst [vmem:[%s5484_s4 + $0x250] sm:$0xff] %v2078_v1  ;;  %2184 = vst [vmem:[%s5484_s4 + $0x258] sm:$0xff] %v2079_v39  ;;  %v6259_v45 = vld [vmem:[#allocation76_spill] sm:$0xff]  ;;  %v6261_v51 = vld [vmem:[#allocation77_spill] sm:$0xff]  ;;  %vm6276_vm14 = vcmp.ge.f32.partialorder %v6126_v32, 0.0 }
 0x332   :  { %v2082_v59 = vsel %vm6256_vm8, %v6255_v49, %v6254_v26  ;;  %v2084_v3 = vsel %vm1874_vm2, %v6103_v62, %v6259_v45  ;;  %v6260_v30 = vld [vmem:[#allocation48_spill] sm:$0xff]  ;;  %v2086_v61 = vsel %vm6262_vm13, %v6107_v63, %v6261_v51  ;;  %v6263_v37 = vld [vmem:[#allocation78_spill] sm:$0xff]  ;;  %2185 = vst [vmem:[%s5484_s4 + $0x260] sm:$0xff] %v2080_v41  ;;  %2186 = vst [vmem:[%s5484_s4 + $0x268] sm:$0xff] %v2081_v6  ;;  %vm6266_vm2 = vcmp.ge.f32.partialorder %v6112_v20, 0.0 }
 0x333   :  { %v2085_v23 = vsel %vm1875_vm3, %v6105_v27, %v6260_v30  ;;  %v2087_v18 = vsel %vm6264_vm6, %v6110_v28, %v6263_v37  ;;  %2187 = vst [vmem:[%s5484_s4 + $0x270] sm:$0xff] %v2082_v59  ;;  %2188 = vst [vmem:[%s5484_s4 + $0x278] sm:$0xff] %v2083_v7  ;;  %v6265_v63 = vld [vmem:[#allocation79_spill] sm:$0xff]  ;;  %v6267_v62 = vld [vmem:[#allocation50_spill] sm:$0xff]  ;;  %vm6269_vm3 = vcmp.ge.f32.partialorder %v6117_v0, 0.0  ;;  %vm6283_vm8 = vcmp.ge.f32.partialorder %v6135_v4, 0.0 }
 0x334   :  { %v2088_v28 = vsel %vm6266_vm2, %v6112_v20, %v6265_v63  ;;  %v2089_v27 = vsel %vm1879_vm5, %v6114_v14, %v6267_v62  ;;  %v6268_v50 = vld [vmem:[#allocation80_spill] sm:$0xff]  ;;  %v6270_v40 = vld [vmem:[#allocation81_spill] sm:$0xff]  ;;  %2189 = vst [vmem:[%s5484_s4 + $0x280] sm:$0xff] %v2084_v3  ;;  %2190 = vst [vmem:[%s5484_s4 + $0x288] sm:$0xff] %v2085_v23  ;;  %vm6273_vm5 = vcmp.ge.f32.partialorder %v6121_v2, 0.0  ;;  %vm6285_vm11 = vcmp.ge.f32.partialorder %v6138_v24, 0.0 }
 0x335   :  { %v2090_v58 = vsel %vm6269_vm3, %v6117_v0, %v6268_v50  ;;  %v2091_v31 = vsel %vm6271_vm9, %v6119_v15, %v6270_v40  ;;  %2191 = vst [vmem:[%s5484_s4 + $0x290] sm:$0xff] %v2086_v61  ;;  %2192 = vst [vmem:[%s5484_s4 + $0x298] sm:$0xff] %v2087_v18  ;;  %v6272_v14 = vld [vmem:[#allocation82_spill] sm:$0xff]  ;;  %v6274_v20 = vld [vmem:[#allocation52_spill] sm:$0xff]  ;;  %vm6290_vm13 = vcmp.ge.f32.partialorder %v6145_v5, 0.0  ;;  %vm6292_vm6 = vcmp.ge.f32.partialorder %v6147_v34, 0.0 }
 0x336   :  { %v2092_v0 = vsel %vm6273_vm5, %v6121_v2, %v6272_v14  ;;  %v2093_v15 = vsel %vm1883_vm15, %v6124_v16, %v6274_v20  ;;  %v6275_v47 = vld [vmem:[#allocation83_spill] sm:$0xff]  ;;  %v6277_v22 = vld [vmem:[#allocation40_spill] sm:$0xff]  ;;  %2193 = vst [vmem:[%s5484_s4 + $0x2a0] sm:$0xff] %v2088_v28  ;;  %2194 = vst [vmem:[%s5484_s4 + $0x2a8] sm:$0xff] %v2089_v27  ;;  %vm6280_vm15 = vcmp.ge.f32.partialorder %v6131_v52, 0.0  ;;  %vm6297_vm2 = vcmp.ge.f32.partialorder %v6154_v19, 0.0 }
 0x337   :  { %v2094_v29 = vsel %vm6276_vm14, %v6126_v32, %v6275_v47  ;;  %v2095_v12 = vsel %vm6278_vm12, %v6128_v60, %v6277_v22  ;;  %2195 = vst [vmem:[%s5484_s4 + $0x2b0] sm:$0xff] %v2090_v58  ;;  %2196 = vst [vmem:[%s5484_s4 + $0x2b8] sm:$0xff] %v2091_v31  ;;  %v6279_v2 = vld [vmem:[#allocation41_spill] sm:$0xff]  ;;  %v6281_v60 = vld [vmem:[#allocation54_spill] sm:$0xff] }
 0x338   :  { %v2096_v16 = vsel %vm6280_vm15, %v6131_v52, %v6279_v2  ;;  %v2097_v32 = vsel %vm1887_vm1, %v6133_v38, %v6281_v60  ;;  %v6282_v10 = vld [vmem:[#allocation43_spill] sm:$0xff]  ;;  %v6284_v42 = vld [vmem:[#allocation45_spill] sm:$0xff]  ;;  %2197 = vst [vmem:[%s5484_s4 + $0x2c0] sm:$0xff] %v2092_v0  ;;  %2198 = vst [vmem:[%s5484_s4 + $0x2c8] sm:$0xff] %v2093_v15  ;;  %vm6287_vm1 = vcmp.ge.f32.partialorder %v6140_v25, 0.0 }
 0x339   :  { %v2098_v54 = vsel %vm6283_vm8, %v6135_v4, %v6282_v10  ;;  %v2099_v17 = vsel %vm6285_vm11, %v6138_v24, %v6284_v42  ;;  %2199 = vst [vmem:[%s5484_s4 + $0x2d0] sm:$0xff] %v2094_v29  ;;  %2200 = vst [vmem:[%s5484_s4 + $0x2d8] sm:$0xff] %v2095_v12  ;;  %v6286_v52 = vld [vmem:[#allocation47_spill] sm:$0xff]  ;;  %v6288_v24 = vld [vmem:[#allocation56_spill] sm:$0xff] }
 0x33a   :  { %v2100_v4 = vsel %vm6287_vm1, %v6140_v25, %v6286_v52  ;;  %v2101_v38 = vsel %vm1891_vm0, %v6142_v53, %v6288_v24  ;;  %v6289_v57 = vld [vmem:[#allocation49_spill] sm:$0xff]  ;;  %v6291_v56 = vld [vmem:[#allocation51_spill] sm:$0xff]  ;;  %2201 = vst [vmem:[%s5484_s4 + $0x2e0] sm:$0xff] %v2096_v16  ;;  %2202 = vst [vmem:[%s5484_s4 + $0x2e8] sm:$0xff] %v2097_v32  ;;  %vm6294_vm0 = vcmp.ge.f32.partialorder %v6149_v13, 0.0 }
 0x33b   :  { %v2102_v33 = vsel %vm6290_vm13, %v6145_v5, %v6289_v57  ;;  %v2103_v44 = vsel %vm6292_vm6, %v6147_v34, %v6291_v56  ;;  %2203 = vst [vmem:[%s5484_s4 + $0x2f0] sm:$0xff] %v2098_v54  ;;  %2204 = vst [vmem:[%s5484_s4 + $0x2f8] sm:$0xff] %v2099_v17  ;;  %v6293_v5 = vld [vmem:[#allocation53_spill] sm:$0xff]  ;;  %v6295_v25 = vld [vmem:[#allocation58_spill] sm:$0xff] }
 0x33c   :  { %v2104_v53 = vsel %vm6294_vm0, %v6149_v13, %v6293_v5  ;;  %v2105_v34 = vsel %vm1895_vm4, %v6152_v11, %v6295_v25  ;;  %v6296_v9 = vld [vmem:[#allocation55_spill] sm:$0xff]  ;;  %v6298_v36 = vld [vmem:[#allocation57_spill] sm:$0xff]  ;;  %2205 = vst [vmem:[%s5484_s4 + $0x300] sm:$0xff] %v2100_v4  ;;  %2206 = vst [vmem:[%s5484_s4 + $0x308] sm:$0xff] %v2101_v38 }
 0x33d   :  { %v2106_v1 = vsel %vm6297_vm2, %v6154_v19, %v6296_v9  ;;  %v2107_v39 = vsel %vm1897_vm7, %v6156_v35, %v6298_v36  ;;  %2207 = vst [vmem:[%s5484_s4 + $0x310] sm:$0xff] %v2102_v33  ;;  %2208 = vst [vmem:[%s5484_s4 + $0x318] sm:$0xff] %v2103_v44  ;;  %v2108_v35 = vsel %vm1898_vm10, %v6159_v43, %v4946_v21 }
 0x33e   :  { %2209 = vst [vmem:[%s5484_s4 + $0x320] sm:$0xff] %v2104_v53  ;;  %2210 = vst [vmem:[%s5484_s4 + $0x328] sm:$0xff] %v2105_v34 }
 0x33f   :  { %2211 = vst [vmem:[%s5484_s4 + $0x330] sm:$0xff] %v2106_v1  ;;  %2212 = vst [vmem:[%s5484_s4 + $0x338] sm:$0xff] %v2107_v39 }
 0x340   :  { %2213 = vst [vmem:[%s5484_s4 + $0x340] sm:$0xff] %v2108_v35 }

// kernel: discriminator_forward.6
= control target key start
LH: loop header
LB: loop body
LE: loop exit
PB: predicated region body
PF: predicated region fallthrough
CT: control target
= control target key end

     0   :  { %s1901_s1 = inlined_call_operand.vmem [shape: bf16[512,128], index: 1, kind: input, shape index: {}]   ;;  %s1902_s0 = inlined_call_operand.vmem [shape: bf16[168,512], index: 0, kind: input, shape index: {}]   ;;  %s1903_s2 = inlined_call_operand.vmem [shape: f32[1,128], index: 2, kind: input, shape index: {}]   ;;  %s1904_s3 = inlined_call_operand.vmem [shape: f32[1,128], index: 3, kind: input, shape index: {}]   ;;  %s1905_s4 = inlined_call_operand.vmem [shape: f32[168,128], index: 4, kind: output, shape index: {}]  }
   0x1   :  { %v1238_v0 = vld [vmem:[%s1901_s1 + $0x40] sm:$0xff]   ;;  %v1242_v4 = vld [vmem:[%s1901_s1 + $0x48] sm:$0xff]   ;;  %v1246_v8 = vld [vmem:[%s1901_s1 + $0x50] sm:$0xff]  }
   0x2   :  { %v1239_v1 = vld [vmem:[%s1901_s1 + $0xc0] sm:$0xff]   ;;  %1074 = vmatprep.subr.bf16.mxu0 %v1238_v0  ;;  %v1243_v5 = vld [vmem:[%s1901_s1 + $0xc8] sm:$0xff]   ;;  %v1247_v9 = vld [vmem:[%s1901_s1 + $0xd0] sm:$0xff]  }
   0x3   :  { %v1240_v2 = vld [vmem:[%s1901_s1] sm:$0xff]   ;;  %1156 = vmatprep.subr.bf16.mxu1 %v1239_v1  ;;  %v1244_v6 = vld [vmem:[%s1901_s1 + $0x8] sm:$0xff]   ;;  %v1248_v10 = vld [vmem:[%s1901_s1 + $0x10] sm:$0xff]  }
   0x4   :  { %v1241_v3 = vld [vmem:[%s1901_s1 + $0x80] sm:$0xff]   ;;  %1075 = vmatpush3.bf16.msra.mxu0 %v1240_v2  ;;  %v1245_v7 = vld [vmem:[%s1901_s1 + $0x88] sm:$0xff]   ;;  %v1249_v11 = vld [vmem:[%s1901_s1 + $0x90] sm:$0xff]  }
   0x5   :  { %1157 = vmatpush3.bf16.msra.mxu1 %v1241_v3  ;;  %1076 = vmatprep.subr.bf16.mxu0 %v1242_v4  ;;  %v1250_v12 = vld [vmem:[%s1901_s1 + $0x58] sm:$0xff]   ;;  %v1254_v16 = vld [vmem:[%s1901_s1 + $0x60] sm:$0xff]   ;;  %v1258_v20 = vld [vmem:[%s1901_s1 + $0x68] sm:$0xff]  }
   0x6   :  { %1158 = vmatprep.subr.bf16.mxu1 %v1243_v5  ;;  %v1251_v13 = vld [vmem:[%s1901_s1 + $0xd8] sm:$0xff]   ;;  %v1255_v17 = vld [vmem:[%s1901_s1 + $0xe0] sm:$0xff]   ;;  %v1259_v21 = vld [vmem:[%s1901_s1 + $0xe8] sm:$0xff]  }
   0x7   :  { %v1252_v14 = vld [vmem:[%s1901_s1 + $0x18] sm:$0xff]   ;;  %v1256_v18 = vld [vmem:[%s1901_s1 + $0x20] sm:$0xff]   ;;  %v1260_v22 = vld [vmem:[%s1901_s1 + $0x28] sm:$0xff]  }
   0x8   :  { %1077 = vmatpush3.bf16.msra.mxu0 %v1244_v6  ;;  %v1253_v15 = vld [vmem:[%s1901_s1 + $0x98] sm:$0xff]   ;;  %v1257_v19 = vld [vmem:[%s1901_s1 + $0xa0] sm:$0xff]   ;;  %v1261_v23 = vld [vmem:[%s1901_s1 + $0xa8] sm:$0xff]  }
   0x9   :  { %1159 = vmatpush3.bf16.msra.mxu1 %v1245_v7  ;;  %1078 = vmatprep.subr.bf16.mxu0 %v1246_v8  ;;  %v1262_v24 = vld [vmem:[%s1901_s1 + $0x70] sm:$0xff]   ;;  %v1266_v28 = vld [vmem:[%s1901_s1 + $0x78] sm:$0xff]   ;;  %v58_v6 = vld [vmem:[%s1902_s0 + $0x140] sm:$0xff] }
   0xa   :  { %1160 = vmatprep.subr.bf16.mxu1 %v1247_v9  ;;  %v1263_v25 = vld [vmem:[%s1901_s1 + $0xf0] sm:$0xff]   ;;  %v1267_v29 = vld [vmem:[%s1901_s1 + $0xf8] sm:$0xff]   ;;  %v59_v7 = vld [vmem:[%s1902_s0 + $0x148] sm:$0xff] }
   0xb   :  { %v1264_v26 = vld [vmem:[%s1901_s1 + $0x30] sm:$0xff]   ;;  %v1268_v30 = vld [vmem:[%s1901_s1 + $0x38] sm:$0xff]  }
   0xc   :  { %1079 = vmatpush3.bf16.msra.mxu0 %v1248_v10  ;;  %v1265_v27 = vld [vmem:[%s1901_s1 + $0xb0] sm:$0xff]   ;;  %v1269_v31 = vld [vmem:[%s1901_s1 + $0xb8] sm:$0xff]   ;;  %v1039_v10 = vcombine.high %v58_v6, %v58_v6 }
   0xd   :  { %1161 = vmatpush3.bf16.msra.mxu1 %v1249_v11  ;;  %1080 = vmatprep.subr.bf16.mxu0 %v1250_v12  ;;  %v1270_v32 = vld [vmem:[%s1902_s0] ss:$16 sps:$4 sm:$0xff]   ;;  %v1272_v33 = vld [vmem:[%s1902_s0 + $0x4] ss:$16 sps:$4 sm:$0xff]   ;;  %v1273_v34 = vld [vmem:[%s1902_s0 + $0x8] ss:$16 sps:$4 sm:$0xff]   ;;  %v1041_v11 = vcombine.high %v59_v7, %v59_v7  ;;  %v1038_v12 = vcombine.low %v58_v6, %v58_v6 }
   0xe   :  { %1162 = vmatprep.subr.bf16.mxu1 %v1251_v13  ;;  %v1275_v35 = vld [vmem:[%s1902_s0 + $0xc] ss:$16 sps:$4 sm:$0xff]   ;;  %562 = vmatprep.mubr.bf16.mxu0 %v1272_v33  ;;  %v1276_v36 = vld [vmem:[%s1902_s0 + $0x24] ss:$16 sps:$4 sm:$0xff]   ;;  %v1280_v38 = vld [vmem:[%s1902_s0 + $0x20] ss:$16 sps:$4 sm:$0xff]   ;;  %v1040_v13 = vcombine.low %v59_v7, %v59_v7 }
   0xf   :  { %682 = vmatprep.mubr.bf16.mxu1 %v1275_v35  ;;  %v1278_v37 = vld [vmem:[%s1902_s0 + $0x2c] ss:$16 sps:$4 sm:$0xff]   ;;  %v1281_v39 = vld [vmem:[%s1902_s0 + $0x28] ss:$16 sps:$4 sm:$0xff]   ;;  %v1282_v40 = vld [vmem:[%s1902_s0 + $0x44] ss:$16 sps:$4 sm:$0xff]  }
  0x10   :  { %1081 = vmatpush3.bf16.msra.mxu0 %v1252_v14  ;;  %v1284_v41 = vld [vmem:[%s1902_s0 + $0x4c] ss:$16 sps:$4 sm:$0xff]   ;;  %v1286_v42 = vld [vmem:[%s1902_s0 + $0x40] ss:$16 sps:$4 sm:$0xff]   ;;  %v1287_v43 = vld [vmem:[%s1902_s0 + $0x48] ss:$16 sps:$4 sm:$0xff]  }
  0x11   :  { %1163 = vmatpush3.bf16.msra.mxu1 %v1253_v15  ;;  %1082 = vmatprep.subr.bf16.mxu0 %v1254_v16  ;;  %v1288_v44 = vld [vmem:[%s1902_s0 + $0x64] ss:$16 sps:$4 sm:$0xff]   ;;  %v1290_v45 = vld [vmem:[%s1902_s0 + $0x6c] ss:$16 sps:$4 sm:$0xff]   ;;  %v1292_v46 = vld [vmem:[%s1902_s0 + $0x60] ss:$16 sps:$4 sm:$0xff]  }
  0x12   :  { %1164 = vmatprep.subr.bf16.mxu1 %v1255_v17  ;;  %v1293_v47 = vld [vmem:[%s1902_s0 + $0x68] ss:$16 sps:$4 sm:$0xff]   ;;  %v1294_v48 = vld [vmem:[%s1902_s0 + $0x84] ss:$16 sps:$4 sm:$0xff]   ;;  %v1296_v49 = vld [vmem:[%s1902_s0 + $0x8c] ss:$16 sps:$4 sm:$0xff]  }
  0x13   :  { %v1298_v50 = vld [vmem:[%s1902_s0 + $0x80] ss:$16 sps:$4 sm:$0xff]   ;;  %v1299_v51 = vld [vmem:[%s1902_s0 + $0x88] ss:$16 sps:$4 sm:$0xff]   ;;  %v1300_v52 = vld [vmem:[%s1902_s0 + $0xa4] ss:$16 sps:$4 sm:$0xff]  }
  0x14   :  { %1083 = vmatpush3.bf16.msra.mxu0 %v1256_v18  ;;  %v1302_v53 = vld [vmem:[%s1902_s0 + $0xac] ss:$16 sps:$4 sm:$0xff]   ;;  %v1304_v54 = vld [vmem:[%s1902_s0 + $0xa0] ss:$16 sps:$4 sm:$0xff]   ;;  %v1305_v55 = vld [vmem:[%s1902_s0 + $0xa8] ss:$16 sps:$4 sm:$0xff]  }
  0x15   :  { %1165 = vmatpush3.bf16.msra.mxu1 %v1257_v19  ;;  %1084 = vmatprep.subr.bf16.mxu0 %v1258_v20  ;;  %v1306_v56 = vld [vmem:[%s1902_s0 + $0xc4] ss:$16 sps:$4 sm:$0xff]   ;;  %v1308_v57 = vld [vmem:[%s1902_s0 + $0xcc] ss:$16 sps:$4 sm:$0xff]   ;;  %v1310_v58 = vld [vmem:[%s1902_s0 + $0xc0] ss:$16 sps:$4 sm:$0xff]  }
  0x16   :  { %1166 = vmatprep.subr.bf16.mxu1 %v1259_v21  ;;  %v1311_v59 = vld [vmem:[%s1902_s0 + $0xc8] ss:$16 sps:$4 sm:$0xff]   ;;  %v1312_v60 = vld [vmem:[%s1902_s0 + $0xe4] ss:$16 sps:$4 sm:$0xff]   ;;  %v1314_v61 = vld [vmem:[%s1902_s0 + $0xec] ss:$16 sps:$4 sm:$0xff]  }
  0x17   :  { %v1316_v62 = vld [vmem:[%s1902_s0 + $0xe0] ss:$16 sps:$4 sm:$0xff]   ;;  %v1317_v63 = vld [vmem:[%s1902_s0 + $0xe8] ss:$16 sps:$4 sm:$0xff]   ;;  %v1318_v0 = vld [vmem:[%s1902_s0 + $0x104] ss:$16 sps:$4 sm:$0xff]  }
  0x18   :  { %1085 = vmatpush3.bf16.msra.mxu0 %v1260_v22  ;;  %v1320_v1 = vld [vmem:[%s1902_s0 + $0x10c] ss:$16 sps:$4 sm:$0xff]   ;;  %v1322_v2 = vld [vmem:[%s1902_s0 + $0x100] ss:$16 sps:$4 sm:$0xff]   ;;  %v1323_v3 = vld [vmem:[%s1902_s0 + $0x108] ss:$16 sps:$4 sm:$0xff]  }
  0x19   :  { %1167 = vmatpush3.bf16.msra.mxu1 %v1261_v23  ;;  %1086 = vmatprep.subr.bf16.mxu0 %v1262_v24  ;;  %v1324_v4 = vld [vmem:[%s1902_s0 + $0x124] ss:$16 sps:$4 sm:$0xff]   ;;  %v1326_v5 = vld [vmem:[%s1902_s0 + $0x12c] ss:$16 sps:$4 sm:$0xff]   ;;  %v1328_v8 = vld [vmem:[%s1902_s0 + $0x120] ss:$16 sps:$4 sm:$0xff]  }
  0x1a   :  { %1168 = vmatprep.subr.bf16.mxu1 %v1263_v25  ;;  %v1329_v9 = vld [vmem:[%s1902_s0 + $0x128] ss:$16 sps:$4 sm:$0xff]  }
  0x1c   :  { %1087 = vmatpush3.bf16.msra.mxu0 %v1264_v26 }
  0x1d   :  { %1169 = vmatpush3.bf16.msra.mxu1 %v1265_v27  ;;  %1088 = vmatprep.subr.bf16.mxu0 %v1266_v28 }
  0x1e   :  { %1170 = vmatprep.subr.bf16.mxu1 %v1267_v29 }
  0x20   :  { %1089 = vmatpush3.bf16.msra.mxu0 %v1268_v30 }
  0x21   :  { %1171 = vmatpush3.bf16.msra.mxu1 %v1269_v31 }
  0x23   :  { %563 = vmatmul.mubr.bf16.vlgmr.msra.gmra.mrb[0].mxu0 %v1270_v32 }
  0x24   :  { %683 = vmatmul.mubr.bf16.vlgmr.msra.gmra.mrb[0].mxu1 %v1273_v34  ;;  %570 = vmatprep.mubr.bf16.mxu0 %v1276_v36 }
  0x25   :  { %690 = vmatprep.mubr.bf16.mxu1 %v1278_v37 }
  0x2b   :  { %571 = vmatmul.mubr.bf16.gmra.mrb[4].mxu0 %v1280_v38 }
  0x2c   :  { %691 = vmatmul.mubr.bf16.gmra.mrb[4].mxu1 %v1281_v39  ;;  %578 = vmatprep.mubr.bf16.mxu0 %v1282_v40 }
  0x2d   :  { %698 = vmatprep.mubr.bf16.mxu1 %v1284_v41 }
  0x33   :  { %579 = vmatmul.mubr.bf16.gmra.mrb[8].mxu0 %v1286_v42 }
  0x34   :  { %699 = vmatmul.mubr.bf16.gmra.mrb[8].mxu1 %v1287_v43  ;;  %586 = vmatprep.mubr.bf16.mxu0 %v1288_v44 }
  0x35   :  { %706 = vmatprep.mubr.bf16.mxu1 %v1290_v45 }
  0x3b   :  { %587 = vmatmul.mubr.bf16.gmra.mrb[12].mxu0 %v1292_v46 }
  0x3c   :  { %707 = vmatmul.mubr.bf16.gmra.mrb[12].mxu1 %v1293_v47  ;;  %594 = vmatprep.mubr.bf16.mxu0 %v1294_v48 }
  0x3d   :  { %714 = vmatprep.mubr.bf16.mxu1 %v1296_v49 }
  0x43   :  { %595 = vmatmul.mubr.bf16.gmra.mrb[16].mxu0 %v1298_v50 }
  0x44   :  { %715 = vmatmul.mubr.bf16.gmra.mrb[16].mxu1 %v1299_v51  ;;  %602 = vmatprep.mubr.bf16.mxu0 %v1300_v52 }
  0x45   :  { %722 = vmatprep.mubr.bf16.mxu1 %v1302_v53 }
  0x4b   :  { %603 = vmatmul.mubr.bf16.gmra.mrb[20].mxu0 %v1304_v54 }
  0x4c   :  { %723 = vmatmul.mubr.bf16.gmra.mrb[20].mxu1 %v1305_v55  ;;  %610 = vmatprep.mubr.bf16.mxu0 %v1306_v56 }
  0x4d   :  { %730 = vmatprep.mubr.bf16.mxu1 %v1308_v57 }
  0x53   :  { %611 = vmatmul.mubr.bf16.gmra.mrb[24].mxu0 %v1310_v58 }
  0x54   :  { %731 = vmatmul.mubr.bf16.gmra.mrb[24].mxu1 %v1311_v59  ;;  %618 = vmatprep.mubr.bf16.mxu0 %v1312_v60 }
  0x55   :  { %738 = vmatprep.mubr.bf16.mxu1 %v1314_v61 }
  0x5b   :  { %619 = vmatmul.mubr.bf16.gmra.mrb[28].mxu0 %v1316_v62 }
  0x5c   :  { %739 = vmatmul.mubr.bf16.gmra.mrb[28].mxu1 %v1317_v63  ;;  %626 = vmatprep.mubr.bf16.mxu0 %v1318_v0 }
  0x5d   :  { %746 = vmatprep.mubr.bf16.mxu1 %v1320_v1 }
  0x63   :  { %627 = vmatmul.mubr.bf16.gmra.mrb[32].mxu0 %v1322_v2 }
  0x64   :  { %747 = vmatmul.mubr.bf16.gmra.mrb[32].mxu1 %v1323_v3  ;;  %634 = vmatprep.mubr.bf16.mxu0 %v1324_v4 }
  0x65   :  { %754 = vmatprep.mubr.bf16.mxu1 %v1326_v5 }
  0x6b   :  { %635 = vmatmul.mubr.bf16.gmra.mrb[36].mxu0 %v1328_v8 }
  0x6c   :  { %755 = vmatmul.mubr.bf16.gmra.mrb[36].mxu1 %v1329_v9  ;;  %642 = vmatprep.mubr.bf16.mxu0 %v1039_v10 }
  0x6d   :  { %762 = vmatprep.mubr.bf16.mxu1 %v1041_v11 }
  0x73   :  { %643 = vmatmul.mubr.bf16.gmra.mrb[40].mxu0 %v1038_v12 }
  0x74   :  { %763 = vmatmul.mubr.bf16.gmra.mrb[40].mxu1 %v1040_v13 }
  0xf6   :  { %v1090_v14 = vpop.f32.mrb[0].mxu0 }
  0xf7   :  { %v1172_v15 = vpop.f32.mrb[0].mxu1  ;;  %v1091_v16 = vpop.f32.mrb[1].mxu0 }
  0xf8   :  { %v1092_v17 = vadd.f32 %v1091_v16, %v1090_v14  ;;  %v1173_v18 = vpop.f32.mrb[1].mxu1  ;;  %v1093_v19 = vpop.f32.mrb[2].mxu0 }
  0xf9   :  { %v1174_v20 = vadd.f32 %v1173_v18, %v1172_v15  ;;  %v1175_v21 = vpop.f32.mrb[2].mxu1  ;;  %v1094_v22 = vpop.f32.mrb[3].mxu0 }
  0xfa   :  { %v1095_v23 = vadd.f32 %v1094_v22, %v1093_v19  ;;  %v1176_v24 = vpop.f32.mrb[3].mxu1 }
  0xfb   :  { %v1583_v25 = vadd.f32 %v1174_v20, %v1092_v17  ;;  %v1177_v26 = vadd.f32 %v1176_v24, %v1175_v21 }
  0xfd   :  { %v1585_v27 = vadd.f32 %v1177_v26, %v1095_v23  ;;  %v798_v56 = vmul.f32 %v1583_v25, %v1583_v25 }
  0xfe   :  { %v1096_v28 = vpop.f32.mrb[4].mxu0 }
  0xff   :  { %v1178_v29 = vpop.f32.mrb[4].mxu1  ;;  %v1097_v30 = vpop.f32.mrb[5].mxu0  ;;  %v799_v53 = vmul.f32 %v1585_v27, %v1585_v27  ;;  %v770_v57 = vadd.f32 %v1585_v27, %v1583_v25 }
 0x100   :  { %v1098_v31 = vadd.f32 %v1097_v30, %v1096_v28  ;;  %v1179_v32 = vpop.f32.mrb[5].mxu1  ;;  %v1099_v33 = vpop.f32.mrb[6].mxu0 }
 0x101   :  { %v1180_v34 = vadd.f32 %v1179_v32, %v1178_v29  ;;  %v1181_v35 = vpop.f32.mrb[6].mxu1  ;;  %v1100_v36 = vpop.f32.mrb[7].mxu0  ;;  %v819_v61 = vadd.f32 %v799_v53, %v798_v56 }
 0x102   :  { %v1101_v37 = vadd.f32 %v1100_v36, %v1099_v33  ;;  %v1182_v38 = vpop.f32.mrb[7].mxu1 }
 0x103   :  { %v1587_v39 = vadd.f32 %v1180_v34, %v1098_v31  ;;  %v1183_v40 = vadd.f32 %v1182_v38, %v1181_v35 }
 0x105   :  { %v1589_v41 = vadd.f32 %v1183_v40, %v1101_v37  ;;  %v800_v58 = vmul.f32 %v1587_v39, %v1587_v39  ;;  %v771_v62 = vadd.f32 %v770_v57, %v1587_v39 }
 0x106   :  { %v1102_v42 = vpop.f32.mrb[8].mxu0 }
 0x107   :  { %v1184_v43 = vpop.f32.mrb[8].mxu1  ;;  %v1103_v44 = vpop.f32.mrb[9].mxu0  ;;  %v820_v4 = vadd.f32 %v819_v61, %v800_v58  ;;  %v801_v5 = vmul.f32 %v1589_v41, %v1589_v41  ;;  %v772_v11 = vadd.f32 %v771_v62, %v1589_v41 }
 0x108   :  { %v1104_v45 = vadd.f32 %v1103_v44, %v1102_v42  ;;  %v1185_v46 = vpop.f32.mrb[9].mxu1  ;;  %v1105_v47 = vpop.f32.mrb[10].mxu0 }
 0x109   :  { %v1186_v48 = vadd.f32 %v1185_v46, %v1184_v43  ;;  %v1187_v49 = vpop.f32.mrb[10].mxu1  ;;  %v1106_v50 = vpop.f32.mrb[11].mxu0  ;;  %v821_v15 = vadd.f32 %v820_v4, %v801_v5 }
 0x10a   :  { %v1107_v51 = vadd.f32 %v1106_v50, %v1105_v47  ;;  %v1188_v52 = vpop.f32.mrb[11].mxu1 }
 0x10b   :  { %v1593_v54 = vadd.f32 %v1186_v48, %v1104_v45  ;;  %v1189_v55 = vadd.f32 %v1188_v52, %v1187_v49 }
 0x10d   :  { %v1601_v59 = vadd.f32 %v1189_v55, %v1107_v51  ;;  %v802_v12 = vmul.f32 %v1593_v54, %v1593_v54  ;;  %v773_v16 = vadd.f32 %v772_v11, %v1593_v54 }
 0x10e   :  { %v1108_v60 = vpop.f32.mrb[12].mxu0 }
 0x10f   :  { %v1190_v63 = vpop.f32.mrb[12].mxu1  ;;  %v1109_v0 = vpop.f32.mrb[13].mxu0  ;;  %v822_v19 = vadd.f32 %v821_v15, %v802_v12  ;;  %v803_v20 = vmul.f32 %v1601_v59, %v1601_v59  ;;  %v774_v28 = vadd.f32 %v773_v16, %v1601_v59 }
 0x110   :  { %v1110_v1 = vadd.f32 %v1109_v0, %v1108_v60  ;;  %v1191_v2 = vpop.f32.mrb[13].mxu1  ;;  %v1111_v3 = vpop.f32.mrb[14].mxu0 }
 0x111   :  { %v1192_v6 = vadd.f32 %v1191_v2, %v1190_v63  ;;  %v1193_v7 = vpop.f32.mrb[14].mxu1  ;;  %v1112_v8 = vpop.f32.mrb[15].mxu0  ;;  %v823_v35 = vadd.f32 %v822_v19, %v803_v20 }
 0x112   :  { %v1113_v9 = vadd.f32 %v1112_v8, %v1111_v3  ;;  %v1194_v10 = vpop.f32.mrb[15].mxu1 }
 0x113   :  { %v1609_v13 = vadd.f32 %v1192_v6, %v1110_v1  ;;  %v1195_v14 = vadd.f32 %v1194_v10, %v1193_v7 }
 0x115   :  { %v1612_v17 = vadd.f32 %v1195_v14, %v1113_v9  ;;  %v804_v29 = vmul.f32 %v1609_v13, %v1609_v13  ;;  %v775_v36 = vadd.f32 %v774_v28, %v1609_v13 }
 0x116   :  { %v1114_v18 = vpop.f32.mrb[16].mxu0 }
 0x117   :  { %v1196_v21 = vpop.f32.mrb[16].mxu1  ;;  %v1115_v22 = vpop.f32.mrb[17].mxu0  ;;  %v824_v40 = vadd.f32 %v823_v35, %v804_v29  ;;  %v805_v42 = vmul.f32 %v1612_v17, %v1612_v17  ;;  %v776_v45 = vadd.f32 %v775_v36, %v1612_v17 }
 0x118   :  { %v1116_v23 = vadd.f32 %v1115_v22, %v1114_v18  ;;  %v1197_v24 = vpop.f32.mrb[17].mxu1  ;;  %v1117_v26 = vpop.f32.mrb[18].mxu0 }
 0x119   :  { %v1198_v30 = vadd.f32 %v1197_v24, %v1196_v21  ;;  %v1199_v31 = vpop.f32.mrb[18].mxu1  ;;  %v1118_v32 = vpop.f32.mrb[19].mxu0  ;;  %v825_v52 = vadd.f32 %v824_v40, %v805_v42 }
 0x11a   :  { %v1119_v33 = vadd.f32 %v1118_v32, %v1117_v26  ;;  %v1200_v34 = vpop.f32.mrb[19].mxu1 }
 0x11b   :  { %v1620_v37 = vadd.f32 %v1198_v30, %v1116_v23  ;;  %v1201_v38 = vadd.f32 %v1200_v34, %v1199_v31 }
 0x11d   :  { %v1624_v43 = vadd.f32 %v1201_v38, %v1119_v33  ;;  %v806_v46 = vmul.f32 %v1620_v37, %v1620_v37  ;;  %v777_v53 = vadd.f32 %v776_v45, %v1620_v37 }
 0x11e   :  { %v1120_v44 = vpop.f32.mrb[20].mxu0 }
 0x11f   :  { %v1202_v47 = vpop.f32.mrb[20].mxu1  ;;  %v1121_v48 = vpop.f32.mrb[21].mxu0  ;;  %v826_v61 = vadd.f32 %v825_v52, %v806_v46  ;;  %v807_v62 = vmul.f32 %v1624_v43, %v1624_v43  ;;  %v778_v1 = vadd.f32 %v777_v53, %v1624_v43 }
 0x120   :  { %v1122_v49 = vadd.f32 %v1121_v48, %v1120_v44  ;;  %v1203_v50 = vpop.f32.mrb[21].mxu1  ;;  %v1123_v51 = vpop.f32.mrb[22].mxu0 }
 0x121   :  { %v1204_v55 = vadd.f32 %v1203_v50, %v1202_v47  ;;  %v1205_v56 = vpop.f32.mrb[22].mxu1  ;;  %v1124_v57 = vpop.f32.mrb[23].mxu0  ;;  %v827_v5 = vadd.f32 %v826_v61, %v807_v62 }
 0x122   :  { %v1125_v58 = vadd.f32 %v1124_v57, %v1123_v51  ;;  %v1206_v60 = vpop.f32.mrb[23].mxu1 }
 0x123   :  { %v1632_v63 = vadd.f32 %v1204_v55, %v1122_v49  ;;  %v1207_v0 = vadd.f32 %v1206_v60, %v1205_v56 }
 0x125   :  { %v808_v2 = vmul.f32 %v1632_v63, %v1632_v63  ;;  %v1637_v3 = vadd.f32 %v1207_v0, %v1125_v58  ;;  %v779_v6 = vadd.f32 %v778_v1, %v1632_v63 }
 0x126   :  { %v1126_v4 = vpop.f32.mrb[24].mxu0 }
 0x127   :  { %v1208_v7 = vpop.f32.mrb[24].mxu1  ;;  %v1127_v8 = vpop.f32.mrb[25].mxu0  ;;  %v828_v12 = vadd.f32 %v827_v5, %v808_v2  ;;  %v809_v14 = vmul.f32 %v1637_v3, %v1637_v3  ;;  %v780_v21 = vadd.f32 %v779_v6, %v1637_v3 }
 0x128   :  { %v1128_v9 = vadd.f32 %v1127_v8, %v1126_v4  ;;  %v1209_v10 = vpop.f32.mrb[25].mxu1  ;;  %v1129_v11 = vpop.f32.mrb[26].mxu0 }
 0x129   :  { %v1210_v15 = vadd.f32 %v1209_v10, %v1208_v7  ;;  %v1211_v16 = vpop.f32.mrb[26].mxu1  ;;  %v1130_v18 = vpop.f32.mrb[27].mxu0  ;;  %v829_v24 = vadd.f32 %v828_v12, %v809_v14 }
 0x12a   :  { %v1131_v19 = vadd.f32 %v1130_v18, %v1129_v11  ;;  %v1212_v20 = vpop.f32.mrb[27].mxu1 }
 0x12b   :  { %v1643_v22 = vadd.f32 %v1210_v15, %v1128_v9  ;;  %v1213_v23 = vadd.f32 %v1212_v20, %v1211_v16 }
 0x12d   :  { %v781_v26 = vadd.f32 %v780_v21, %v1643_v22  ;;  %v810_v28 = vmul.f32 %v1643_v22, %v1643_v22  ;;  %v1648_v29 = vadd.f32 %v1213_v23, %v1131_v19 }
 0x12e   :  { %v1132_v30 = vpop.f32.mrb[28].mxu0 }
 0x12f   :  { %v830_v31 = vadd.f32 %v829_v24, %v810_v28  ;;  %v782_v32 = vadd.f32 %v781_v26, %v1648_v29  ;;  %v811_v33 = vmul.f32 %v1648_v29, %v1648_v29  ;;  %v1214_v34 = vpop.f32.mrb[28].mxu1  ;;  %v1133_v35 = vpop.f32.mrb[29].mxu0 }
 0x130   :  { %v1134_v36 = vadd.f32 %v1133_v35, %v1132_v30  ;;  %v1215_v38 = vpop.f32.mrb[29].mxu1  ;;  %v1135_v40 = vpop.f32.mrb[30].mxu0 }
 0x131   :  { %v831_v42 = vadd.f32 %v830_v31, %v811_v33  ;;  %v1216_v44 = vadd.f32 %v1215_v38, %v1214_v34  ;;  %v1217_v45 = vpop.f32.mrb[30].mxu1  ;;  %v1136_v46 = vpop.f32.mrb[31].mxu0 }
 0x132   :  { %v1137_v47 = vadd.f32 %v1136_v46, %v1135_v40  ;;  %v1218_v48 = vpop.f32.mrb[31].mxu1 }
 0x133   :  { %v1653_v49 = vadd.f32 %v1216_v44, %v1134_v36  ;;  %v1219_v50 = vadd.f32 %v1218_v48, %v1217_v45 }
 0x135   :  { %v783_v51 = vadd.f32 %v782_v32, %v1653_v49  ;;  %v812_v52 = vmul.f32 %v1653_v49, %v1653_v49  ;;  %v1658_v53 = vadd.f32 %v1219_v50, %v1137_v47 }
 0x136   :  { %v1138_v55 = vpop.f32.mrb[32].mxu0 }
 0x137   :  { %v832_v56 = vadd.f32 %v831_v42, %v812_v52  ;;  %v784_v57 = vadd.f32 %v783_v51, %v1658_v53  ;;  %v813_v58 = vmul.f32 %v1658_v53, %v1658_v53  ;;  %v1220_v60 = vpop.f32.mrb[32].mxu1  ;;  %v1139_v61 = vpop.f32.mrb[33].mxu0 }
 0x138   :  { %v1140_v62 = vadd.f32 %v1139_v61, %v1138_v55  ;;  %v1221_v0 = vpop.f32.mrb[33].mxu1  ;;  %v1141_v1 = vpop.f32.mrb[34].mxu0 }
 0x139   :  { %v833_v2 = vadd.f32 %v832_v56, %v813_v58  ;;  %v1222_v4 = vadd.f32 %v1221_v0, %v1220_v60  ;;  %v1223_v5 = vpop.f32.mrb[34].mxu1  ;;  %v1142_v6 = vpop.f32.mrb[35].mxu0 }
 0x13a   :  { %v1143_v7 = vadd.f32 %v1142_v6, %v1141_v1  ;;  %v1224_v8 = vpop.f32.mrb[35].mxu1 }
 0x13b   :  { %v1663_v9 = vadd.f32 %v1222_v4, %v1140_v62  ;;  %v1225_v10 = vadd.f32 %v1224_v8, %v1223_v5 }
 0x13d   :  { %v785_v11 = vadd.f32 %v784_v57, %v1663_v9  ;;  %v814_v12 = vmul.f32 %v1663_v9, %v1663_v9  ;;  %v1668_v14 = vadd.f32 %v1225_v10, %v1143_v7 }
 0x13e   :  { %v1144_v15 = vpop.f32.mrb[36].mxu0 }
 0x13f   :  { %v834_v16 = vadd.f32 %v833_v2, %v814_v12  ;;  %v786_v18 = vadd.f32 %v785_v11, %v1668_v14  ;;  %v815_v19 = vmul.f32 %v1668_v14, %v1668_v14  ;;  %v1226_v20 = vpop.f32.mrb[36].mxu1  ;;  %v1145_v21 = vpop.f32.mrb[37].mxu0 }
 0x140   :  { %v1146_v23 = vadd.f32 %v1145_v21, %v1144_v15  ;;  %v1227_v24 = vpop.f32.mrb[37].mxu1  ;;  %v1147_v26 = vpop.f32.mrb[38].mxu0 }
 0x141   :  { %v835_v28 = vadd.f32 %v834_v16, %v815_v19  ;;  %v1228_v30 = vadd.f32 %v1227_v24, %v1226_v20  ;;  %v1229_v31 = vpop.f32.mrb[38].mxu1  ;;  %v1148_v32 = vpop.f32.mrb[39].mxu0 }
 0x142   :  { %v1149_v33 = vadd.f32 %v1148_v32, %v1147_v26  ;;  %v1230_v34 = vpop.f32.mrb[39].mxu1  ;;  %v849_v32 = vld [vmem:[%s1903_s2] sm:$0x1] }
 0x143   :  { %v1673_v35 = vadd.f32 %v1228_v30, %v1146_v23  ;;  %v1231_v36 = vadd.f32 %v1230_v34, %v1229_v31  ;;  %v857_v30 = vlaneseq }
 0x145   :  { %v787_v38 = vadd.f32 %v786_v18, %v1673_v35  ;;  %v816_v40 = vmul.f32 %v1673_v35, %v1673_v35  ;;  %v1678_v42 = vadd.f32 %v1231_v36, %v1149_v33  ;;  %v858_v31 = vshrl.u32 %v857_v30, 7 }
 0x146   :  { %v1150_v44 = vpop.f32.mrb[40].mxu0 }
 0x147   :  { %v836_v45 = vadd.f32 %v835_v28, %v816_v40  ;;  %v788_v46 = vadd.f32 %v787_v38, %v1678_v42  ;;  %v817_v47 = vmul.f32 %v1678_v42, %v1678_v42  ;;  %v1232_v48 = vpop.f32.mrb[40].mxu1  ;;  %v1151_v50 = vpop.f32.mrb[41].mxu0  ;;  %v859_v33 = vsub.s32 0, %v858_v31  ;;  %v853_v38 = vld [vmem:[%s1904_s3] sm:$0x1] }
 0x148   :  { %v1152_v51 = vadd.f32 %v1151_v50, %v1150_v44  ;;  %v1233_v52 = vpop.f32.mrb[41].mxu1  ;;  %v1153_v55 = vpop.f32.mrb[42].mxu0 }
 0x149   :  { %v837_v56 = vadd.f32 %v836_v45, %v817_v47  ;;  %v1234_v57 = vadd.f32 %v1233_v52, %v1232_v48  ;;  %v1235_v58 = vpop.f32.mrb[42].mxu1  ;;  %v1154_v60 = vpop.f32.mrb[43].mxu0 }
 0x14a   :  { %v1236_v61 = vpop.f32.mrb[43].mxu1 }
 0x14b   :  { %v765_v62 = vadd.f32 %v1234_v57, %v1152_v51 }
 0x14d   :  { %v789_v0 = vadd.f32 %v788_v46, %v765_v62  ;;  %v818_v1 = vmul.f32 %v765_v62, %v765_v62 }
 0x14f   :  { %v790_v2 = vrot.slane %v789_v0, 4  ;;  %v838_v4 = vadd.f32 %v837_v56, %v818_v1 }
 0x151   :  { %v791_v5 = vadd.f32 %v790_v2, %v789_v0  ;;  %v839_v6 = vrot.slane %v838_v4, 4 }
 0x153   :  { %v792_v7 = vrot.slane %v791_v5, 2  ;;  %v840_v8 = vadd.f32 %v839_v6, %v838_v4 }
 0x155   :  { %v793_v10 = vadd.f32 %v792_v7, %v791_v5  ;;  %v841_v11 = vrot.slane %v840_v8, 2 }
 0x157   :  { %v794_v12 = vrot.slane %v793_v10, 1  ;;  %v842_v15 = vadd.f32 %v841_v11, %v840_v8 }
 0x159   :  { %v795_v16 = vadd.f32 %v794_v12, %v793_v10  ;;  %v843_v18 = vrot.slane %v842_v15, 1 }
 0x15b   :  { %v797_v19 = vmul.f32 0.005952381, %v795_v16  ;;  %v844_v20 = vadd.f32 %v843_v18, %v842_v15 }
 0x15d   :  { %v845_v21 = vmul.f32 0.005952381, %v844_v20  ;;  %v846_v23 = vmul.f32 %v797_v19, %v797_v19 }
 0x15f   :  { %v847_v24 = vsub.f32 %v845_v21, %v846_v23 }
 0x161   :  { %v848_v26 = vmax.f32 %v847_v24, 0.0 }
 0x163   :  { %v850_v28 = vadd.f32 1e-05, %v848_v26 }
 0x165   :  { %1334 = vrsqrt.f32 %v850_v28 }
 0x16f   :  { %v1335_v34 = vpop.eup %1334 }
 0x170   :  { %v852_v36 = vmul.f32 %v1335_v34, %v849_v32 }
 0x172   :  { %v854_v40 = vmul.f32 %v852_v36, %v797_v19  ;;  %v860_v44 = vrot.slane %v852_v36, %v859_v33 }
 0x174   :  { %v855_v45 = vsub.f32 %v853_v38, %v854_v40  ;;  %v862_v46 = vmul.f32 %v860_v44, %v1583_v25  ;;  %v863_v47 = vmul.f32 %v860_v44, %v1585_v27  ;;  %v864_v48 = vmul.f32 %v860_v44, %v1587_v39 }
 0x175   :  { %v865_v50 = vmul.f32 %v860_v44, %v1589_v41  ;;  %v866_v51 = vmul.f32 %v860_v44, %v1593_v54  ;;  %v867_v52 = vmul.f32 %v860_v44, %v1601_v59  ;;  %v868_v55 = vmul.f32 %v860_v44, %v1609_v13 }
 0x176   :  { %v874_v56 = vmul.f32 %v860_v44, %v1643_v22  ;;  %v875_v57 = vmul.f32 %v860_v44, %v1648_v29  ;;  %v876_v58 = vmul.f32 %v860_v44, %v1653_v49  ;;  %v877_v25 = vmul.f32 %v860_v44, %v1658_v53 }
 0x177   :  { %v878_v27 = vmul.f32 %v860_v44, %v1663_v9  ;;  %v879_v39 = vmul.f32 %v860_v44, %v1668_v14  ;;  %v880_v41 = vmul.f32 %v860_v44, %v1673_v35  ;;  %v869_v54 = vmul.f32 %v860_v44, %v1612_v17 }
 0x178   :  { %v881_v59 = vmul.f32 %v860_v44, %v1678_v42  ;;  %v882_v60 = vmul.f32 %v860_v44, %v765_v62  ;;  %v887_v13 = vrot.slane %v855_v45, %v859_v33  ;;  %v870_v22 = vmul.f32 %v860_v44, %v1620_v37 }
 0x179   :  { %v871_v29 = vmul.f32 %v860_v44, %v1624_v43  ;;  %v872_v49 = vmul.f32 %v860_v44, %v1632_v63  ;;  %v873_v53 = vmul.f32 %v860_v44, %v1637_v3 }
 0x17a   :  { %v889_v61 = vadd.f32 %v887_v13, %v862_v46  ;;  %v890_v9 = vadd.f32 %v887_v13, %v863_v47  ;;  %v891_v0 = vadd.f32 %v887_v13, %v864_v48  ;;  %v1709_v14 = vadd.f32 %v887_v13, %v865_v50 }
 0x17b   :  { %v1711_v35 = vadd.f32 %v887_v13, %v866_v51  ;;  %v1713_v17 = vadd.f32 %v887_v13, %v867_v52  ;;  %v1715_v42 = vadd.f32 %v887_v13, %v868_v55  ;;  %v1717_v62 = vadd.f32 %v887_v13, %v869_v54 }
 0x17c   :  { %v1719_v37 = vadd.f32 %v887_v13, %v870_v22  ;;  %v1721_v43 = vadd.f32 %v887_v13, %v871_v29  ;;  %v1723_v63 = vadd.f32 %v887_v13, %v872_v49  ;;  %v1725_v3 = vadd.f32 %v887_v13, %v873_v53 }
 0x17d   :  { %v1727_v1 = vadd.f32 %v887_v13, %v874_v56  ;;  %v1729_v2 = vadd.f32 %v887_v13, %v875_v57  ;;  %v1731_v4 = vadd.f32 %v887_v13, %v876_v58  ;;  %v1733_v5 = vadd.f32 %v887_v13, %v877_v25 }
 0x17e   :  { %v1735_v6 = vadd.f32 %v887_v13, %v878_v27  ;;  %v1737_v7 = vadd.f32 %v887_v13, %v879_v39  ;;  %v1739_v8 = vadd.f32 %v887_v13, %v880_v41  ;;  %v1741_v10 = vadd.f32 %v887_v13, %v881_v59 }
 0x17f   :  { %v1743_v11 = vadd.f32 %v887_v13, %v882_v60  ;;  %vm910_vm0 = vcmp.ge.f32.partialorder %v889_v61, 0.0  ;;  %vm911_vm1 = vcmp.ge.f32.partialorder %v890_v9, 0.0  ;;  %vm912_vm2 = vcmp.ge.f32.partialorder %v891_v0, 0.0 }
 0x180   :  { %vm913_vm3 = vcmp.ge.f32.partialorder %v1709_v14, 0.0  ;;  %vm914_vm4 = vcmp.ge.f32.partialorder %v1711_v35, 0.0  ;;  %vm915_vm5 = vcmp.ge.f32.partialorder %v1713_v17, 0.0  ;;  %vm921_vm11 = vcmp.ge.f32.partialorder %v1725_v3, 0.0 }
 0x181   :  { %vm922_vm12 = vcmp.ge.f32.partialorder %v1727_v1, 0.0  ;;  %vm923_vm13 = vcmp.ge.f32.partialorder %v1729_v2, 0.0  ;;  %vm924_vm14 = vcmp.ge.f32.partialorder %v1731_v4, 0.0  ;;  %vm925_vm15 = vcmp.ge.f32.partialorder %v1733_v5, 0.0 }
 0x182   :  { %vm926_vm6 = vcmp.ge.f32.partialorder %v1735_v6, 0.0  ;;  %vm927_vm7 = vcmp.ge.f32.partialorder %v1737_v7, 0.0  ;;  %vm928_vm8 = vcmp.ge.f32.partialorder %v1739_v8, 0.0  ;;  %vm929_vm9 = vcmp.ge.f32.partialorder %v1741_v10, 0.0 }
 0x183   :  { %vm930_vm10 = vcmp.ge.f32.partialorder %v1743_v11, 0.0  ;;  %v931_v12 = vmul.f32 0.2, %v889_v61  ;;  %v932_v15 = vmul.f32 0.2, %v890_v9 }
 0x184   :  { %v933_v16 = vmul.f32 0.2, %v891_v0  ;;  %v934_v18 = vmul.f32 0.2, %v1709_v14  ;;  %v935_v19 = vmul.f32 0.2, %v1711_v35 }
 0x185   :  { %v936_v20 = vmul.f32 0.2, %v1713_v17  ;;  %v937_v21 = vmul.f32 0.2, %v1715_v42  ;;  %v938_v23 = vmul.f32 0.2, %v1717_v62  ;;  %v952_v24 = vsel %vm910_vm0, %v889_v61, %v931_v12 }
 0x186   :  { %v939_v26 = vmul.f32 0.2, %v1719_v37  ;;  %v940_v28 = vmul.f32 0.2, %v1721_v43  ;;  %v941_v30 = vmul.f32 0.2, %v1723_v63  ;;  %v953_v31 = vsel %vm911_vm1, %v890_v9, %v932_v15  ;;  %973 = vst [vmem:[%s1905_s4] sm:$0xff] %v952_v24 }
 0x187   :  { %v942_v32 = vmul.f32 0.2, %v1725_v3  ;;  %v943_v33 = vmul.f32 0.2, %v1727_v1  ;;  %v944_v34 = vmul.f32 0.2, %v1729_v2  ;;  %v954_v36 = vsel %vm912_vm2, %v891_v0, %v933_v16 }
 0x188   :  { %974 = vst [vmem:[%s1905_s4 + $0x8] sm:$0xff] %v953_v31  ;;  %v945_v38 = vmul.f32 0.2, %v1731_v4  ;;  %v946_v40 = vmul.f32 0.2, %v1733_v5  ;;  %v955_v45 = vsel %vm913_vm3, %v1709_v14, %v934_v18  ;;  %975 = vst [vmem:[%s1905_s4 + $0x10] sm:$0xff] %v954_v36  ;;  %v956_v50 = vsel %vm914_vm4, %v1711_v35, %v935_v19 }
 0x189   :  { %v947_v44 = vmul.f32 0.2, %v1735_v6  ;;  %v948_v46 = vmul.f32 0.2, %v1737_v7  ;;  %v949_v47 = vmul.f32 0.2, %v1739_v8  ;;  %v957_v52 = vsel %vm915_vm5, %v1713_v17, %v936_v20 }
 0x18a   :  { %v950_v48 = vmul.f32 0.2, %v1741_v10  ;;  %976 = vst [vmem:[%s1905_s4 + $0x18] sm:$0xff] %v955_v45  ;;  %v951_v51 = vmul.f32 0.2, %v1743_v11  ;;  %vm1906_vm0 = vcmp.ge.f32.partialorder %v1715_v42, 0.0  ;;  %v963_v27 = vsel %vm921_vm11, %v1725_v3, %v942_v32 }
 0x18b   :  { %v958_v55 = vsel %vm1906_vm0, %v1715_v42, %v937_v21  ;;  %vm1907_vm1 = vcmp.ge.f32.partialorder %v1717_v62, 0.0  ;;  %977 = vst [vmem:[%s1905_s4 + $0x20] sm:$0xff] %v956_v50  ;;  %vm1908_vm2 = vcmp.ge.f32.partialorder %v1719_v37, 0.0  ;;  %vm1909_vm3 = vcmp.ge.f32.partialorder %v1721_v43, 0.0  ;;  %978 = vst [vmem:[%s1905_s4 + $0x28] sm:$0xff] %v957_v52 }
 0x18c   :  { %v959_v56 = vsel %vm1907_vm1, %v1717_v62, %v938_v23  ;;  %v960_v57 = vsel %vm1908_vm2, %v1719_v37, %v939_v26  ;;  %v961_v58 = vsel %vm1909_vm3, %v1721_v43, %v940_v28  ;;  %vm1910_vm4 = vcmp.ge.f32.partialorder %v1723_v63, 0.0  ;;  %979 = vst [vmem:[%s1905_s4 + $0x30] sm:$0xff] %v958_v55  ;;  %984 = vst [vmem:[%s1905_s4 + $0x58] sm:$0xff] %v963_v27 }
 0x18d   :  { %v962_v25 = vsel %vm1910_vm4, %v1723_v63, %v941_v30  ;;  %980 = vst [vmem:[%s1905_s4 + $0x38] sm:$0xff] %v959_v56  ;;  %v964_v39 = vsel %vm922_vm12, %v1727_v1, %v943_v33  ;;  %v965_v41 = vsel %vm923_vm13, %v1729_v2, %v944_v34  ;;  %v966_v54 = vsel %vm924_vm14, %v1731_v4, %v945_v38 }
 0x18e   :  { %v967_v59 = vsel %vm925_vm15, %v1733_v5, %v946_v40  ;;  %981 = vst [vmem:[%s1905_s4 + $0x40] sm:$0xff] %v960_v57  ;;  %982 = vst [vmem:[%s1905_s4 + $0x48] sm:$0xff] %v961_v58  ;;  %v968_v60 = vsel %vm926_vm6, %v1735_v6, %v947_v44  ;;  %v969_v13 = vsel %vm927_vm7, %v1737_v7, %v948_v46 }
 0x18f   :  { %983 = vst [vmem:[%s1905_s4 + $0x50] sm:$0xff] %v962_v25  ;;  %v970_v22 = vsel %vm928_vm8, %v1739_v8, %v949_v47  ;;  %v971_v29 = vsel %vm929_vm9, %v1741_v10, %v950_v48  ;;  %985 = vst [vmem:[%s1905_s4 + $0x60] sm:$0xff] %v964_v39  ;;  %v972_v49 = vsel %vm930_vm10, %v1743_v11, %v951_v51 }
 0x190   :  { %986 = vst [vmem:[%s1905_s4 + $0x68] sm:$0xff] %v965_v41  ;;  %987 = vst [vmem:[%s1905_s4 + $0x70] sm:$0xff] %v966_v54 }
 0x191   :  { %988 = vst [vmem:[%s1905_s4 + $0x78] sm:$0xff] %v967_v59  ;;  %989 = vst [vmem:[%s1905_s4 + $0x80] sm:$0xff] %v968_v60 }
 0x192   :  { %990 = vst [vmem:[%s1905_s4 + $0x88] sm:$0xff] %v969_v13  ;;  %991 = vst [vmem:[%s1905_s4 + $0x90] sm:$0xff] %v970_v22 }
 0x193   :  { %992 = vst [vmem:[%s1905_s4 + $0x98] sm:$0xff] %v971_v29  ;;  %993 = vst [vmem:[%s1905_s4 + $0xa0] sm:$0xff] %v972_v49 }

// kernel: discriminator_forward.7
= control target key start
LH: loop header
LB: loop body
LE: loop exit
PB: predicated region body
PF: predicated region fallthrough
CT: control target
= control target key end

     0   :  { %s1402_s1 = inlined_call_operand.vmem [shape: bf16[1024,128], index: 1, kind: input, shape index: {}]   ;;  %s1403_s0 = inlined_call_operand.vmem [shape: bf16[24,1024], index: 0, kind: input, shape index: {}]   ;;  %s1404_s2 = inlined_call_operand.vmem [shape: f32[1,128], index: 2, kind: input, shape index: {}]   ;;  %s1405_s3 = inlined_call_operand.vmem [shape: f32[1,128], index: 3, kind: input, shape index: {}]   ;;  %s1406_s4 = inlined_call_operand.vmem [shape: f32[24,128], index: 4, kind: output, shape index: {}]  }
   0x1   :  { %v1060_v0 = vld [vmem:[%s1402_s1 + $0x40] sm:$0xff]   ;;  %v1064_v4 = vld [vmem:[%s1402_s1 + $0x48] sm:$0xff]   ;;  %v1068_v8 = vld [vmem:[%s1402_s1 + $0x50] sm:$0xff]  }
   0x2   :  { %v1061_v1 = vld [vmem:[%s1402_s1 + $0xc0] sm:$0xff]   ;;  %948 = vmatprep.subr.bf16.mxu0 %v1060_v0  ;;  %v1065_v5 = vld [vmem:[%s1402_s1 + $0xc8] sm:$0xff]   ;;  %v1069_v9 = vld [vmem:[%s1402_s1 + $0xd0] sm:$0xff]  }
   0x3   :  { %v1062_v2 = vld [vmem:[%s1402_s1] sm:$0xff]   ;;  %976 = vmatprep.subr.bf16.mxu1 %v1061_v1  ;;  %v1066_v6 = vld [vmem:[%s1402_s1 + $0x8] sm:$0xff]   ;;  %v1070_v10 = vld [vmem:[%s1402_s1 + $0x10] sm:$0xff]  }
   0x4   :  { %v1063_v3 = vld [vmem:[%s1402_s1 + $0x80] sm:$0xff]   ;;  %949 = vmatpush3.bf16.msra.mxu0 %v1062_v2  ;;  %v1067_v7 = vld [vmem:[%s1402_s1 + $0x88] sm:$0xff]   ;;  %v1071_v11 = vld [vmem:[%s1402_s1 + $0x90] sm:$0xff]  }
   0x5   :  { %977 = vmatpush3.bf16.msra.mxu1 %v1063_v3  ;;  %950 = vmatprep.subr.bf16.mxu0 %v1064_v4  ;;  %v1072_v12 = vld [vmem:[%s1402_s1 + $0x58] sm:$0xff]   ;;  %v1076_v16 = vld [vmem:[%s1402_s1 + $0x60] sm:$0xff]   ;;  %v1080_v20 = vld [vmem:[%s1402_s1 + $0x68] sm:$0xff]  }
   0x6   :  { %978 = vmatprep.subr.bf16.mxu1 %v1065_v5  ;;  %v1073_v13 = vld [vmem:[%s1402_s1 + $0xd8] sm:$0xff]   ;;  %v1077_v17 = vld [vmem:[%s1402_s1 + $0xe0] sm:$0xff]   ;;  %v1081_v21 = vld [vmem:[%s1402_s1 + $0xe8] sm:$0xff]  }
   0x7   :  { %v1074_v14 = vld [vmem:[%s1402_s1 + $0x18] sm:$0xff]   ;;  %v1078_v18 = vld [vmem:[%s1402_s1 + $0x20] sm:$0xff]   ;;  %v1082_v22 = vld [vmem:[%s1402_s1 + $0x28] sm:$0xff]  }
   0x8   :  { %951 = vmatpush3.bf16.msra.mxu0 %v1066_v6  ;;  %v1075_v15 = vld [vmem:[%s1402_s1 + $0x98] sm:$0xff]   ;;  %v1079_v19 = vld [vmem:[%s1402_s1 + $0xa0] sm:$0xff]   ;;  %v1083_v23 = vld [vmem:[%s1402_s1 + $0xa8] sm:$0xff]  }
   0x9   :  { %979 = vmatpush3.bf16.msra.mxu1 %v1067_v7  ;;  %952 = vmatprep.subr.bf16.mxu0 %v1068_v8  ;;  %v1084_v24 = vld [vmem:[%s1402_s1 + $0x70] sm:$0xff]   ;;  %v1088_v28 = vld [vmem:[%s1402_s1 + $0x78] sm:$0xff]   ;;  %v18_v32 = vld [vmem:[%s1403_s0] sm:$0xff] }
   0xa   :  { %980 = vmatprep.subr.bf16.mxu1 %v1069_v9  ;;  %v1085_v25 = vld [vmem:[%s1402_s1 + $0xf0] sm:$0xff]   ;;  %v1089_v29 = vld [vmem:[%s1402_s1 + $0xf8] sm:$0xff]   ;;  %v22_v33 = vld [vmem:[%s1403_s0 + $0x20] sm:$0xff] }
   0xb   :  { %v1086_v26 = vld [vmem:[%s1402_s1 + $0x30] sm:$0xff]   ;;  %v1090_v30 = vld [vmem:[%s1402_s1 + $0x38] sm:$0xff]   ;;  %v19_v34 = vld [vmem:[%s1403_s0 + $0x8] sm:$0xff]  ;;  %v868_v35 = vcombine.low %v18_v32, %v22_v33  ;;  %v869_v36 = vcombine.high %v18_v32, %v22_v33 }
   0xc   :  { %953 = vmatpush3.bf16.msra.mxu0 %v1070_v10  ;;  %v1087_v27 = vld [vmem:[%s1402_s1 + $0xb0] sm:$0xff]   ;;  %v1091_v31 = vld [vmem:[%s1402_s1 + $0xb8] sm:$0xff]   ;;  %v23_v37 = vld [vmem:[%s1403_s0 + $0x28] sm:$0xff] }
   0xd   :  { %981 = vmatpush3.bf16.msra.mxu1 %v1071_v11  ;;  %954 = vmatprep.subr.bf16.mxu0 %v1072_v12  ;;  %v870_v38 = vcombine.low %v19_v34, %v23_v37  ;;  %v871_v39 = vcombine.high %v19_v34, %v23_v37  ;;  %v1092_v40 = vld [vmem:[%s1402_s1 + $0x140] sm:$0xff]   ;;  %v1096_v44 = vld [vmem:[%s1402_s1 + $0x148] sm:$0xff]   ;;  %v1100_v48 = vld [vmem:[%s1402_s1 + $0x150] sm:$0xff]  }
   0xe   :  { %982 = vmatprep.subr.bf16.mxu1 %v1073_v13  ;;  %642 = vmatprep.mubr.bf16.mxu0 %v869_v36  ;;  %v1093_v41 = vld [vmem:[%s1402_s1 + $0x1c0] sm:$0xff]   ;;  %v1097_v45 = vld [vmem:[%s1402_s1 + $0x1c8] sm:$0xff]   ;;  %v1101_v49 = vld [vmem:[%s1402_s1 + $0x1d0] sm:$0xff]  }
   0xf   :  { %690 = vmatprep.mubr.bf16.mxu1 %v871_v39  ;;  %v1094_v42 = vld [vmem:[%s1402_s1 + $0x100] sm:$0xff]   ;;  %v1098_v46 = vld [vmem:[%s1402_s1 + $0x108] sm:$0xff]   ;;  %v1102_v50 = vld [vmem:[%s1402_s1 + $0x110] sm:$0xff]  }
  0x10   :  { %955 = vmatpush3.bf16.msra.mxu0 %v1074_v14  ;;  %v1095_v43 = vld [vmem:[%s1402_s1 + $0x180] sm:$0xff]   ;;  %v1099_v47 = vld [vmem:[%s1402_s1 + $0x188] sm:$0xff]   ;;  %v1103_v51 = vld [vmem:[%s1402_s1 + $0x190] sm:$0xff]  }
  0x11   :  { %983 = vmatpush3.bf16.msra.mxu1 %v1075_v15  ;;  %956 = vmatprep.subr.bf16.mxu0 %v1076_v16  ;;  %v1104_v52 = vld [vmem:[%s1402_s1 + $0x158] sm:$0xff]   ;;  %v1108_v56 = vld [vmem:[%s1402_s1 + $0x160] sm:$0xff]   ;;  %v1113_v62 = vld [vmem:[%s1402_s1 + $0x168] sm:$0xff]  }
  0x12   :  { %984 = vmatprep.subr.bf16.mxu1 %v1077_v17  ;;  %v1105_v53 = vld [vmem:[%s1402_s1 + $0x1d8] sm:$0xff]   ;;  %v1109_v57 = vld [vmem:[%s1402_s1 + $0x1e0] sm:$0xff]   ;;  %v1114_v0 = vld [vmem:[%s1402_s1 + $0x1e8] sm:$0xff]  }
  0x13   :  { %v1106_v54 = vld [vmem:[%s1402_s1 + $0x118] sm:$0xff]   ;;  %v1110_v58 = vld [vmem:[%s1402_s1 + $0x120] sm:$0xff]   ;;  %v1116_v1 = vld [vmem:[%s1402_s1 + $0x128] sm:$0xff]  }
  0x14   :  { %957 = vmatpush3.bf16.msra.mxu0 %v1078_v18  ;;  %v1107_v55 = vld [vmem:[%s1402_s1 + $0x198] sm:$0xff]   ;;  %v1111_v59 = vld [vmem:[%s1402_s1 + $0x1a0] sm:$0xff]   ;;  %v1117_v2 = vld [vmem:[%s1402_s1 + $0x1a8] sm:$0xff]  }
  0x15   :  { %985 = vmatpush3.bf16.msra.mxu1 %v1079_v19  ;;  %958 = vmatprep.subr.bf16.mxu0 %v1080_v20  ;;  %v26_v60 = vld [vmem:[%s1403_s0 + $0x40] sm:$0xff]  ;;  %v27_v3 = vld [vmem:[%s1403_s0 + $0x48] sm:$0xff]  ;;  %v1120_v6 = vld [vmem:[%s1402_s1 + $0x170] sm:$0xff]  }
  0x16   :  { %986 = vmatprep.subr.bf16.mxu1 %v1081_v21  ;;  %v877_v61 = vcombine.high %v26_v60, %v26_v60  ;;  %v876_v63 = vcombine.low %v26_v60, %v26_v60  ;;  %v879_v4 = vcombine.high %v27_v3, %v27_v3  ;;  %v878_v5 = vcombine.low %v27_v3, %v27_v3  ;;  %v1121_v7 = vld [vmem:[%s1402_s1 + $0x1f0] sm:$0xff]   ;;  %v1124_v10 = vld [vmem:[%s1402_s1 + $0x178] sm:$0xff]  }
  0x17   :  { %v1122_v8 = vld [vmem:[%s1402_s1 + $0x130] sm:$0xff]   ;;  %v1125_v11 = vld [vmem:[%s1402_s1 + $0x1f8] sm:$0xff]  }
  0x18   :  { %959 = vmatpush3.bf16.msra.mxu0 %v1082_v22  ;;  %v1123_v9 = vld [vmem:[%s1402_s1 + $0x1b0] sm:$0xff]   ;;  %v1126_v12 = vld [vmem:[%s1402_s1 + $0x138] sm:$0xff]  }
  0x19   :  { %987 = vmatpush3.bf16.msra.mxu1 %v1083_v23  ;;  %960 = vmatprep.subr.bf16.mxu0 %v1084_v24  ;;  %v1127_v13 = vld [vmem:[%s1402_s1 + $0x1b8] sm:$0xff]   ;;  %v20_v14 = vld [vmem:[%s1403_s0 + $0x10] sm:$0xff] }
  0x1a   :  { %988 = vmatprep.subr.bf16.mxu1 %v1085_v25  ;;  %v24_v15 = vld [vmem:[%s1403_s0 + $0x30] sm:$0xff]  ;;  %v21_v16 = vld [vmem:[%s1403_s0 + $0x18] sm:$0xff] }
  0x1b   :  { %v872_v17 = vcombine.low %v20_v14, %v24_v15  ;;  %v873_v18 = vcombine.high %v20_v14, %v24_v15  ;;  %v25_v19 = vld [vmem:[%s1403_s0 + $0x38] sm:$0xff]  ;;  %v28_v20 = vld [vmem:[%s1403_s0 + $0x50] sm:$0xff] }
  0x1c   :  { %961 = vmatpush3.bf16.msra.mxu0 %v1086_v26  ;;  %v29_v21 = vld [vmem:[%s1403_s0 + $0x58] sm:$0xff]  ;;  %v874_v22 = vcombine.low %v21_v16, %v25_v19  ;;  %v875_v23 = vcombine.high %v21_v16, %v25_v19  ;;  %v881_v24 = vcombine.high %v28_v20, %v28_v20  ;;  %v880_v26 = vcombine.low %v28_v20, %v28_v20 }
  0x1d   :  { %989 = vmatpush3.bf16.msra.mxu1 %v1087_v27  ;;  %962 = vmatprep.subr.bf16.mxu0 %v1088_v28  ;;  %v883_v25 = vcombine.high %v29_v21, %v29_v21  ;;  %v882_v27 = vcombine.low %v29_v21, %v29_v21 }
  0x1e   :  { %990 = vmatprep.subr.bf16.mxu1 %v1089_v29 }
  0x20   :  { %963 = vmatpush3.bf16.msra.mxu0 %v1090_v30 }
  0x21   :  { %991 = vmatpush3.bf16.msra.mxu1 %v1091_v31  ;;  %1004 = vmatprep.subr.bf16.mxu0 %v1092_v40 }
  0x22   :  { %1032 = vmatprep.subr.bf16.mxu1 %v1093_v41 }
  0x23   :  { %643 = vmatmul.mubr.bf16.vlgmr.msra.gmra.mrb[0].mxu0 %v868_v35 }
  0x24   :  { %691 = vmatmul.mubr.bf16.vlgmr.msra.gmra.mrb[0].mxu1 %v870_v38  ;;  %1005 = vmatpush3.bf16.msra.mxu0 %v1094_v42 }
  0x25   :  { %1033 = vmatpush3.bf16.msra.mxu1 %v1095_v43  ;;  %1006 = vmatprep.subr.bf16.mxu0 %v1096_v44 }
  0x26   :  { %1034 = vmatprep.subr.bf16.mxu1 %v1097_v45  ;;  %650 = vmatprep.mubr.bf16.mxu0 %v877_v61 }
  0x27   :  { %698 = vmatprep.mubr.bf16.mxu1 %v879_v4 }
  0x28   :  { %1007 = vmatpush3.bf16.msra.mxu0 %v1098_v46 }
  0x29   :  { %1035 = vmatpush3.bf16.msra.mxu1 %v1099_v47  ;;  %1008 = vmatprep.subr.bf16.mxu0 %v1100_v48 }
  0x2a   :  { %1036 = vmatprep.subr.bf16.mxu1 %v1101_v49 }
  0x2b   :  { %651 = vmatmul.mubr.bf16.gmra.mrb[4].mxu0 %v876_v63 }
  0x2c   :  { %1009 = vmatpush3.bf16.msra.mxu0 %v1102_v50  ;;  %699 = vmatmul.mubr.bf16.gmra.mrb[4].mxu1 %v878_v5 }
  0x2d   :  { %1037 = vmatpush3.bf16.msra.mxu1 %v1103_v51  ;;  %1010 = vmatprep.subr.bf16.mxu0 %v1104_v52 }
  0x2e   :  { %1038 = vmatprep.subr.bf16.mxu1 %v1105_v53  ;;  %738 = vmatprep.mubr.bf16.mxu0 %v873_v18 }
  0x2f   :  { %786 = vmatprep.mubr.bf16.mxu1 %v875_v23 }
  0x30   :  { %1011 = vmatpush3.bf16.msra.mxu0 %v1106_v54 }
  0x31   :  { %1039 = vmatpush3.bf16.msra.mxu1 %v1107_v55  ;;  %1012 = vmatprep.subr.bf16.mxu0 %v1108_v56 }
  0x32   :  { %1040 = vmatprep.subr.bf16.mxu1 %v1109_v57 }
  0x34   :  { %1013 = vmatpush3.bf16.msra.mxu0 %v1110_v58 }
  0x35   :  { %1041 = vmatpush3.bf16.msra.mxu1 %v1111_v59  ;;  %1014 = vmatprep.subr.bf16.mxu0 %v1113_v62 }
  0x36   :  { %1042 = vmatprep.subr.bf16.mxu1 %v1114_v0 }
  0x38   :  { %1015 = vmatpush3.bf16.msra.mxu0 %v1116_v1 }
  0x39   :  { %1043 = vmatpush3.bf16.msra.mxu1 %v1117_v2  ;;  %1016 = vmatprep.subr.bf16.mxu0 %v1120_v6 }
  0x3a   :  { %1044 = vmatprep.subr.bf16.mxu1 %v1121_v7 }
  0x3c   :  { %1017 = vmatpush3.bf16.msra.mxu0 %v1122_v8 }
  0x3d   :  { %1045 = vmatpush3.bf16.msra.mxu1 %v1123_v9  ;;  %1018 = vmatprep.subr.bf16.mxu0 %v1124_v10 }
  0x3e   :  { %1046 = vmatprep.subr.bf16.mxu1 %v1125_v11 }
  0x40   :  { %1019 = vmatpush3.bf16.msra.mxu0 %v1126_v12 }
  0x41   :  { %1047 = vmatpush3.bf16.msra.mxu1 %v1127_v13 }
  0x43   :  { %739 = vmatmul.mubr.bf16.vlgmr.msra.gmra.mrb[8].mxu0 %v872_v17 }
  0x44   :  { %787 = vmatmul.mubr.bf16.vlgmr.msra.gmra.mrb[8].mxu1 %v874_v22  ;;  %746 = vmatprep.mubr.bf16.mxu0 %v881_v24 }
  0x45   :  { %794 = vmatprep.mubr.bf16.mxu1 %v883_v25 }
  0x4b   :  { %747 = vmatmul.mubr.bf16.gmra.mrb[12].mxu0 %v880_v26 }
  0x4c   :  { %795 = vmatmul.mubr.bf16.gmra.mrb[12].mxu1 %v882_v27 }
  0xf6   :  { %v964_v28 = vpop.f32.mrb[0].mxu0 }
  0xf7   :  { %v992_v29 = vpop.f32.mrb[0].mxu1  ;;  %v965_v30 = vpop.f32.mrb[1].mxu0 }
  0xf8   :  { %v966_v31 = vadd.f32 %v965_v30, %v964_v28  ;;  %v993_v32 = vpop.f32.mrb[1].mxu1  ;;  %v967_v33 = vpop.f32.mrb[2].mxu0 }
  0xf9   :  { %v994_v34 = vadd.f32 %v993_v32, %v992_v29  ;;  %v995_v35 = vpop.f32.mrb[2].mxu1  ;;  %v968_v36 = vpop.f32.mrb[3].mxu0 }
  0xfa   :  { %v969_v37 = vadd.f32 %v968_v36, %v967_v33  ;;  %v996_v38 = vpop.f32.mrb[3].mxu1 }
  0xfb   :  { %v693_v39 = vadd.f32 %v994_v34, %v966_v31  ;;  %v997_v40 = vadd.f32 %v996_v38, %v995_v35 }
  0xfd   :  { %v696_v41 = vadd.f32 %v997_v40, %v969_v37 }
  0xfe   :  { %v970_v42 = vpop.f32.mrb[4].mxu0 }
  0xff   :  { %v971_v43 = vpop.f32.mrb[5].mxu0  ;;  %v998_v47 = vpop.f32.mrb[4].mxu1 }
 0x100   :  { %v972_v44 = vadd.f32 %v971_v43, %v970_v42  ;;  %v973_v45 = vpop.f32.mrb[6].mxu0  ;;  %v999_v48 = vpop.f32.mrb[5].mxu1  ;;  %v835_v42 = vlaneseq }
 0x101   :  { %v974_v46 = vpop.f32.mrb[7].mxu0  ;;  %v1000_v49 = vadd.f32 %v999_v48, %v998_v47  ;;  %v1001_v50 = vpop.f32.mrb[6].mxu1  ;;  %v831_v48 = vld [vmem:[%s1405_s3] sm:$0x1] }
 0x102   :  { %v1002_v51 = vpop.f32.mrb[7].mxu1  ;;  %v836_v43 = vshrl.u32 %v835_v42, 7 }
 0x103   :  { %v701_v52 = vadd.f32 %v1000_v49, %v972_v44  ;;  %v827_v44 = vld [vmem:[%s1404_s2] sm:$0x1] }
 0x104   :  { %v837_v45 = vsub.s32 0, %v836_v43 }
 0x116   :  { %v1020_v53 = vpop.f32.mrb[8].mxu0 }
 0x117   :  { %v1048_v54 = vpop.f32.mrb[8].mxu1  ;;  %v1021_v55 = vpop.f32.mrb[9].mxu0 }
 0x118   :  { %v1022_v56 = vadd.f32 %v1021_v55, %v1020_v53  ;;  %v1049_v57 = vpop.f32.mrb[9].mxu1  ;;  %v1023_v58 = vpop.f32.mrb[10].mxu0 }
 0x119   :  { %v1050_v59 = vadd.f32 %v1049_v57, %v1048_v54  ;;  %v1051_v60 = vpop.f32.mrb[10].mxu1  ;;  %v1024_v61 = vpop.f32.mrb[11].mxu0 }
 0x11a   :  { %v741_v62 = vadd.f32 %v1022_v56, %v693_v39  ;;  %v1025_v63 = vadd.f32 %v1024_v61, %v1023_v58  ;;  %v1052_v0 = vpop.f32.mrb[11].mxu1 }
 0x11b   :  { %v1053_v1 = vadd.f32 %v1052_v0, %v1051_v60 }
 0x11c   :  { %v789_v2 = vadd.f32 %v1050_v59, %v741_v62  ;;  %v744_v3 = vadd.f32 %v1025_v63, %v696_v41 }
 0x11e   :  { %v792_v4 = vadd.f32 %v1053_v1, %v744_v3  ;;  %v1026_v5 = vpop.f32.mrb[12].mxu0  ;;  %v812_v8 = vmul.f32 %v789_v2, %v789_v2 }
 0x11f   :  { %v1054_v6 = vpop.f32.mrb[12].mxu1  ;;  %v1027_v7 = vpop.f32.mrb[13].mxu0 }
 0x120   :  { %v802_v9 = vadd.f32 %v792_v4, %v789_v2  ;;  %v813_v10 = vmul.f32 %v792_v4, %v792_v4  ;;  %v1028_v11 = vadd.f32 %v1027_v7, %v1026_v5  ;;  %v1055_v12 = vpop.f32.mrb[13].mxu1  ;;  %v1029_v13 = vpop.f32.mrb[14].mxu0 }
 0x121   :  { %v1056_v14 = vadd.f32 %v1055_v12, %v1054_v6  ;;  %v1057_v15 = vpop.f32.mrb[14].mxu1  ;;  %v1030_v16 = vpop.f32.mrb[15].mxu0 }
 0x122   :  { %v815_v17 = vadd.f32 %v813_v10, %v812_v8  ;;  %v749_v18 = vadd.f32 %v1028_v11, %v701_v52  ;;  %v1058_v19 = vpop.f32.mrb[15].mxu1 }
 0x124   :  { %v797_v20 = vadd.f32 %v1056_v14, %v749_v18 }
 0x126   :  { %v803_v21 = vadd.f32 %v802_v9, %v797_v20  ;;  %v814_v22 = vmul.f32 %v797_v20, %v797_v20 }
 0x128   :  { %v804_v23 = vrot.slane %v803_v21, 4  ;;  %v816_v24 = vadd.f32 %v815_v17, %v814_v22 }
 0x12a   :  { %v805_v25 = vadd.f32 %v804_v23, %v803_v21  ;;  %v817_v26 = vrot.slane %v816_v24, 4 }
 0x12c   :  { %v806_v27 = vrot.slane %v805_v25, 2  ;;  %v818_v28 = vadd.f32 %v817_v26, %v816_v24 }
 0x12e   :  { %v807_v29 = vadd.f32 %v806_v27, %v805_v25  ;;  %v819_v30 = vrot.slane %v818_v28, 2 }
 0x130   :  { %v808_v31 = vrot.slane %v807_v29, 1  ;;  %v820_v32 = vadd.f32 %v819_v30, %v818_v28 }
 0x132   :  { %v809_v33 = vadd.f32 %v808_v31, %v807_v29  ;;  %v821_v34 = vrot.slane %v820_v32, 1 }
 0x134   :  { %v811_v35 = vmul.f32 0.041666668, %v809_v33  ;;  %v822_v36 = vadd.f32 %v821_v34, %v820_v32 }
 0x136   :  { %v823_v37 = vmul.f32 0.041666668, %v822_v36  ;;  %v824_v38 = vmul.f32 %v811_v35, %v811_v35 }
 0x138   :  { %v825_v39 = vsub.f32 %v823_v37, %v824_v38 }
 0x13a   :  { %v826_v40 = vmax.f32 %v825_v39, 0.0 }
 0x13c   :  { %v828_v41 = vadd.f32 1e-05, %v826_v40 }
 0x13e   :  { %1132 = vrsqrt.f32 %v828_v41 }
 0x148   :  { %v1133_v46 = vpop.eup %1132 }
 0x149   :  { %v830_v47 = vmul.f32 %v1133_v46, %v827_v44 }
 0x14b   :  { %v832_v49 = vmul.f32 %v830_v47, %v811_v35  ;;  %v838_v50 = vrot.slane %v830_v47, %v837_v45 }
 0x14d   :  { %v833_v51 = vsub.f32 %v831_v48, %v832_v49  ;;  %v840_v52 = vmul.f32 %v838_v50, %v789_v2  ;;  %v841_v53 = vmul.f32 %v838_v50, %v792_v4  ;;  %v842_v54 = vmul.f32 %v838_v50, %v797_v20 }
 0x14f   :  { %v847_v55 = vrot.slane %v833_v51, %v837_v45 }
 0x151   :  { %v849_v56 = vadd.f32 %v847_v55, %v840_v52  ;;  %v850_v57 = vadd.f32 %v847_v55, %v841_v53  ;;  %v851_v58 = vadd.f32 %v847_v55, %v842_v54 }
 0x153   :  { %vm852_vm0 = vcmp.ge.f32.partialorder %v849_v56, 0.0  ;;  %vm853_vm1 = vcmp.ge.f32.partialorder %v850_v57, 0.0  ;;  %vm854_vm2 = vcmp.ge.f32.partialorder %v851_v58, 0.0  ;;  %v855_v59 = vmul.f32 0.2, %v849_v56 }
 0x154   :  { %v856_v60 = vmul.f32 0.2, %v850_v57  ;;  %v857_v61 = vmul.f32 0.2, %v851_v58 }
 0x155   :  { %v858_v62 = vsel %vm852_vm0, %v849_v56, %v855_v59 }
 0x156   :  { %v859_v63 = vsel %vm853_vm1, %v850_v57, %v856_v60  ;;  %v860_v0 = vsel %vm854_vm2, %v851_v58, %v857_v61  ;;  %861 = vst [vmem:[%s1406_s4] sm:$0xff] %v858_v62 }
 0x157   :  { %862 = vst [vmem:[%s1406_s4 + $0x8] sm:$0xff] %v859_v63  ;;  %863 = vst [vmem:[%s1406_s4 + $0x10] sm:$0xff] %v860_v0 }

</bundles_post_ra>
